<compile_context>
chip_gen: v7x
topology: tpu7x:2x2x1
jax: 0.10.0
libtpu: 0.0.40
codegen_flags: <defaults>
</compile_context>

<pallas_src>
import functools

import jax
import jax.numpy as jnp
from jax import lax
from jax.experimental import pallas as pl
from jax.experimental.pallas import tpu as pltpu


# ---------------------------------------------------------------------------
# Glue: sinusoidal positional features (AllenNLP add_positional_features)
# ---------------------------------------------------------------------------
def add_positional_features(x, min_timescale=1.0, max_timescale=1.0e4):
    _, T, D = x.shape
    num_timescales = D // 2
    log_increment = jnp.log(max_timescale / min_timescale) / jnp.float32(
        max(num_timescales - 1, 1)
    )
    inv_timescales = min_timescale * jnp.exp(
        jnp.arange(num_timescales, dtype=jnp.float32) * -log_increment
    )
    scaled_time = jnp.arange(T, dtype=jnp.float32)[:, None] * inv_timescales[None, :]
    sinusoids = jnp.concatenate([jnp.sin(scaled_time), jnp.cos(scaled_time)], axis=1)
    if D % 2 != 0:
        sinusoids = jnp.concatenate(
            [sinusoids, jnp.zeros((T, 1), dtype=jnp.float32)], axis=1
        )
    return x + sinusoids[None, :, :].astype(x.dtype)


# ---------------------------------------------------------------------------
# In-kernel LayerNorm (AllenNLP: g * (x - mean) / (std + eps) + b, std unbiased)
# ---------------------------------------------------------------------------
def _layer_norm(h, g, b, feature_dim, eps=1e-6):
    mu = jnp.mean(h, axis=-1, keepdims=True)
    centered = h - mu
    var = jnp.sum(centered * centered, axis=-1, keepdims=True) * (
        1.0 / float(max(feature_dim - 1, 1))
    )
    inv_std = pl.reciprocal(jnp.sqrt(var) + eps, approx=True)   # EUP slot, not VALU
    return centered * inv_std * g + b


# ---------------------------------------------------------------------------
# Pallas kernel: one full transformer encoder layer for one block of batch rows
# ---------------------------------------------------------------------------
def encoder_layer_kernel(
    x_ref, bias_ref,
    wqkv_ref, bqkv_ref, wo_ref, bo_ref,
    ln1_g_ref, ln1_b_ref,
    w1_ref, b1_ref, w2_ref, b2_ref,
    ln2_g_ref, ln2_b_ref,
    out_ref,
    ctx_ref,
    *, block_b, seq_len, hidden_dim, num_heads, head_dim, value_head_dim,
    attn_dim, value_dim,
):
    T = seq_len
    x_bf = x_ref[...]                                # (block_b*T, D) bf16 matmul operand
    x_f32 = x_bf.astype(jnp.float32)                 # residual path in f32

    # ---- fused QKV projection: one bf16 MXU pass over all block_b*T rows ----
    # (1/sqrt(head_dim) is already folded into the Q slice of wqkv/bqkv.)
    qkv = (
        jnp.dot(x_bf, wqkv_ref[...], preferred_element_type=jnp.float32)
        + bqkv_ref[...]
    )                                                # (block_b*T, 2*attn_dim + value_dim)
    q = qkv[:, :attn_dim].astype(jnp.bfloat16)
    k = qkv[:, attn_dim:2 * attn_dim].astype(jnp.bfloat16)
    v = qkv[:, 2 * attn_dim:2 * attn_dim + value_dim].astype(jnp.bfloat16)

    # ---- per (batch row, head) attention; writes its lane-slice of ctx scratch ----
    # TODO(synk): for many heads / long T switch this static unroll to a lax.fori_loop
    # over a VMEM qkv scratch with pl.ds slices to bound vreg pressure.
    for bb in range(block_b):
        r0, r1 = bb * T, (bb + 1) * T
        bias = bias_ref[bb]                          # (1, T) additive key mask (0 / -1e9)
        for h in range(num_heads):
            qh = q[r0:r1, h * head_dim:(h + 1) * head_dim]
            kh = k[r0:r1, h * head_dim:(h + 1) * head_dim]
            vh = v[r0:r1, h * value_head_dim:(h + 1) * value_head_dim]

            s = lax.dot_general(                     # (T_q, T_k) f32
                qh, kh, (((1,), (1,)), ((), ())),
                preferred_element_type=jnp.float32,
            )
            s = s + bias                             # masked keys -> -1e9
            s = s - jnp.max(s, axis=-1, keepdims=True)
            p = jnp.exp(s)
            denom = jnp.sum(p, axis=-1, keepdims=True)        # (T, 1), >= 1

            ctx_h = jnp.dot(p.astype(jnp.bfloat16), vh,
                            preferred_element_type=jnp.float32)
            # Deferred softmax normalization: scale the (T, dv) context, not the
            # (T, T) probabilities; reciprocal stays on the EUP.
            ctx_h = ctx_h * pl.reciprocal(denom, approx=True)
            ctx_ref[r0:r1, h * value_head_dim:(h + 1) * value_head_dim] = (
                ctx_h.astype(jnp.bfloat16)
            )

    # ---- output projection (ctx scratch already bf16) ----
    attn_out = (
        jnp.dot(ctx_ref[...], wo_ref[...], preferred_element_type=jnp.float32)
        + bo_ref[...]
    )                                                # (block_b*T, D)

    # ---- residual + LayerNorm 1 ----
    h1 = _layer_norm(attn_out + x_f32, ln1_g_ref[...], ln1_b_ref[...], hidden_dim)

    # ---- FeedForward: relu(h @ W1 + b1) @ W2 + b2 (bf16 operands, f32 accum) ----
    ff = (
        jnp.dot(h1.astype(jnp.bfloat16), w1_ref[...],
                preferred_element_type=jnp.float32)
        + b1_ref[...]
    )
    ff = jnp.maximum(ff, 0.0)
    ff = (
        jnp.dot(ff.astype(jnp.bfloat16), w2_ref[...],
                preferred_element_type=jnp.float32)
        + b2_ref[...]
    )

    # ---- residual + LayerNorm 2 ----
    h2 = _layer_norm(ff + h1, ln2_g_ref[...], ln2_b_ref[...], hidden_dim)

    out_ref[...] = h2.astype(out_ref.dtype)


# ---------------------------------------------------------------------------
# Wrapper: one pallas_call per encoder layer, grid over batch blocks
# ---------------------------------------------------------------------------
_SINGLE_BUFFER_WEIGHTS_OK = [True]   # cached: does this JAX accept pl.Buffered(1)?


def _pick_block_b(batch, seq_len, target_rows=256):
    """Largest divisor of `batch` whose block fills the MXU M dim (<= target_rows)
    while keeping >= 2 grid steps when batch allows (both v7x TCs get work)."""
    best = 1
    for cand in range(1, batch + 1):
        if batch % cand:
            continue
        if cand * seq_len > target_rows:
            continue
        if batch // cand < 2 and batch > 1:
            continue
        best = cand
    return best


def _vmem_limit_bytes(block_b, T, D, value_dim, packed, in_dtype, out_dtype,
                      weight_buffers):
    act_in = block_b * T * D * jnp.dtype(in_dtype).itemsize
    act_out = block_b * T * D * jnp.dtype(out_dtype).itemsize
    mask_b = block_b * T * 4
    weight_bytes = weight_buffers * sum(
        int(w.size) * w.dtype.itemsize for w in packed
    )
    ctx_bytes = block_b * T * value_dim * 2          # bf16 scratch
    need = 2 * (act_in + act_out + mask_b) + weight_bytes + ctx_bytes + (8 << 20)
    try:
        cap = int(pltpu.get_tpu_info().vmem_capacity_bytes) - (8 << 20)
    except Exception:                                # pragma: no cover
        cap = (64 << 20) - (8 << 20)                 # conservative: v7x per-TC VMEM
    return int(min(cap, max(32 << 20, need)))


def encoder_layer(x, mask_bias, packed, *, num_heads, head_dim, value_head_dim,
                  out_dtype, block_b):
    B, T, D = x.shape
    attn_dim = num_heads * head_dim
    value_dim = num_heads * value_head_dim
    grid = B // block_b

    kernel = functools.partial(
        encoder_layer_kernel,
        block_b=block_b, seq_len=T, hidden_dim=D,
        num_heads=num_heads, head_dim=head_dim, value_head_dim=value_head_dim,
        attn_dim=attn_dim, value_dim=value_dim,
    )

    # Lane-dense 2-D activation slab: all matmuls and the output store see (rows, D).
    x2d = x.reshape(B * T, D)

    def make_call(single_buffer_weights):
        weight_kwargs = (
            dict(pipeline_mode=pl.Buffered(1)) if single_buffer_weights else {}
        )
        weight_specs = [
            pl.BlockSpec(w.shape, lambda b: (0, 0), **weight_kwargs) for w in packed
        ]
        in_specs = [
            pl.BlockSpec((block_b * T, D), lambda b: (b, 0)),     # activations
            pl.BlockSpec((block_b, 1, T), lambda b: (b, 0, 0)),   # additive mask bias
        ] + weight_specs
        vmem_limit = _vmem_limit_bytes(
            block_b, T, D, value_dim, packed, x.dtype, out_dtype,
            weight_buffers=1 if single_buffer_weights else 2,
        )
        # TODO(synk): on v7x with production D/ff_hidden, keep w1/w2 in HBM
        # (memory_space=pl.ANY) and stream tiles with pltpu.emit_pipeline.
        return pl.pallas_call(
            kernel,
            out_shape=jax.ShapeDtypeStruct((B * T, D), out_dtype),
            grid=(grid,),
            in_specs=in_specs,
            out_specs=pl.BlockSpec((block_b * T, D), lambda b: (b, 0)),
            scratch_shapes=[pltpu.VMEM((block_b * T, value_dim), jnp.bfloat16)],
            compiler_params=pltpu.CompilerParams(
                dimension_semantics=("parallel",),
                vmem_limit_bytes=vmem_limit,
            ),
        )

    if _SINGLE_BUFFER_WEIGHTS_OK[0]:
        try:
            out2d = make_call(True)(x2d, mask_bias, *packed)
            return out2d.reshape(B, T, D)
        except Exception:
            _SINGLE_BUFFER_WEIGHTS_OK[0] = False     # fall back to default buffering
    out2d = make_call(False)(x2d, mask_bias, *packed)
    return out2d.reshape(B, T, D)


def transformer_encoder(x, mask, packed_params, *, num_heads, head_dim,
                        value_head_dim, use_positional_embedding=True):
    B, T, _ = x.shape
    orig_dtype = x.dtype
    out = add_positional_features(x) if use_positional_embedding else x
    if not packed_params:
        return out.astype(orig_dtype)
    # Inter-layer activations carried in bf16 (halves inter-layer HBM traffic);
    # residual/LN math is f32 inside the kernel, final layer restores orig dtype.
    out = out.astype(jnp.bfloat16)
    # Additive key-mask bias, computed ONCE for all layers/heads: 0 = keep, -1e9 = pad.
    mask_bias = ((mask.astype(jnp.float32) - 1.0) * 1e9).reshape(B, 1, T)
    block_b = _pick_block_b(B, T)
    # TODO(synk): residual / attention / feedforward dropout are identity (eval mode).
    # TODO(synk): hide per-layer weight DMA via a cross-pallas_call prefetch
    # (semaphore + VMEM-ref future) started during the previous layer.
    n_layers = len(packed_params)
    for i, layer in enumerate(packed_params):
        layer_out_dtype = orig_dtype if i == n_layers - 1 else jnp.bfloat16
        out = encoder_layer(
            out, mask_bias, layer,
            num_heads=num_heads, head_dim=head_dim, value_head_dim=value_head_dim,
            out_dtype=layer_out_dtype, block_b=block_b,
        )
    return out


# ---------------------------------------------------------------------------
# Parameter init (f32, PyTorch-equivalent shapes) + one-time packing for the kernel
# ---------------------------------------------------------------------------
def init_params(key, num_layers, input_dim, num_heads, ff_hidden):
    D = input_dim
    head_dim = D // num_heads
    value_head_dim = D // num_heads
    attn_dim = head_dim * num_heads
    value_dim = value_head_dim * num_heads

    params = []
    for i in range(num_layers):
        lk = jax.random.fold_in(key, i)
        ks = jax.random.split(lk, 6)
        wq = 0.02 * jax.random.normal(ks[0], (D, attn_dim), jnp.float32)
        wk = 0.02 * jax.random.normal(ks[1], (D, attn_dim), jnp.float32)
        wv = 0.02 * jax.random.normal(ks[2], (D, value_dim), jnp.float32)
        wo = 0.02 * jax.random.normal(ks[3], (value_dim, D), jnp.float32)
        w1 = 0.02 * jax.random.normal(ks[4], (D, ff_hidden), jnp.float32)
        w2 = 0.02 * jax.random.normal(ks[5], (ff_hidden, D), jnp.float32)

        bq = jnp.zeros((1, attn_dim), jnp.float32)
        bk = jnp.zeros((1, attn_dim), jnp.float32)
        bv = jnp.zeros((1, value_dim), jnp.float32)
        bo = jnp.zeros((1, D), jnp.float32)
        b1 = jnp.zeros((1, ff_hidden), jnp.float32)
        b2 = jnp.zeros((1, D), jnp.float32)

        ln1_g = jnp.ones((1, D), jnp.float32)
        ln1_b = jnp.zeros((1, D), jnp.float32)
        ln2_g = jnp.ones((1, D), jnp.float32)
        ln2_b = jnp.zeros((1, D), jnp.float32)

        params.append((wq, bq, wk, bk, wv, bv, wo, bo,
                       ln1_g, ln1_b, w1, b1, w2, b2, ln2_g, ln2_b))
    return params, head_dim, value_head_dim


def pack_params(params, head_dim):
    """One-time prep: fuse QKV weights/biases, fold 1/sqrt(dk) into Q, cast matmul
    weights to bf16 (halves resident weight VMEM). Biases / LN params stay f32."""
    inv_scale = 1.0 / float(head_dim) ** 0.5
    packed = []
    for (wq, bq, wk, bk, wv, bv, wo, bo,
         ln1_g, ln1_b, w1, b1, w2, b2, ln2_g, ln2_b) in params:
        w_qkv = jnp.concatenate([wq * inv_scale, wk, wv], axis=1).astype(jnp.bfloat16)
        b_qkv = jnp.concatenate([bq * inv_scale, bk, bv], axis=1).astype(jnp.float32)
        packed.append((
            w_qkv, b_qkv,
            wo.astype(jnp.bfloat16), bo,
            ln1_g, ln1_b,
            w1.astype(jnp.bfloat16), b1,
            w2.astype(jnp.bfloat16), b2,
            ln2_g, ln2_b,
        ))
    return packed


# ---------------------------------------------------------------------------
# Pure-JAX f32 reference (matches the PyTorch module's forward in eval mode)
# ---------------------------------------------------------------------------
def _ref_layer_norm(h, g, b, eps=1e-6):
    mu = jnp.mean(h, axis=-1, keepdims=True)
    std = jnp.std(h, axis=-1, keepdims=True, ddof=1)
    return g * (h - mu) / (std + eps) + b


def transformer_encoder_reference(x, mask, params, *, num_heads, head_dim,
                                  value_head_dim, use_positional_embedding=True):
    out = add_positional_features(x) if use_positional_embedding else x
    neg = (mask.astype(jnp.float32) - 1.0) * 1e9     # (B, T)
    scale = 1.0 / float(head_dim) ** 0.5
    for (wq, bq, wk, bk, wv, bv, wo, bo,
         ln1_g, ln1_b, w1, b1, w2, b2, ln2_g, ln2_b) in params:
        q = out @ wq + bq
        k = out @ wk + bk
        v = out @ wv + bv
        heads = []
        for h in range(num_heads):
            qh = q[..., h * head_dim:(h + 1) * head_dim] * scale
            kh = k[..., h * head_dim:(h + 1) * head_dim]
            vh = v[..., h * value_head_dim:(h + 1) * value_head_dim]
            s = jnp.einsum('btd,bsd->bts', qh, kh) + neg[:, None, :]
            p = jax.nn.softmax(s, axis=-1)
            heads.append(jnp.einsum('bts,bsd->btd', p, vh))
        ctx = jnp.concatenate(heads, axis=-1)
        attn_out = ctx @ wo + bo
        h1 = _ref_layer_norm(attn_out + out, ln1_g, ln1_b)
        ff = jnp.maximum(h1 @ w1 + b1, 0.0) @ w2 + b2
        out = _ref_layer_norm(ff + h1, ln2_g, ln2_b)
    return out


if __name__ == "__main__":
    # Small shapes: batch=2, seq=8, hidden=32, heads=4, ff_hidden=32, layers=2.
    # NOTE: production shapes should use D / head dims / ff_hidden that are multiples
    # of 128 (and T a multiple of 8) for lane-dense tiles and full MXU fill.
    B, T, D = 2, 8, 32
    num_heads = 4
    ff_hidden = 32
    num_layers = 2

    key = jax.random.PRNGKey(0)
    k_x, k_p = jax.random.split(key)

    x = jax.random.normal(k_x, (B, T, D), jnp.float32)
    mask = jnp.ones((B, T), jnp.float32).at[1, 6:].set(0.0)  # batch 1: 2 padded steps

    params, head_dim, value_head_dim = init_params(
        k_p, num_layers, D, num_heads, ff_hidden
    )
    packed_params = pack_params(params, head_dim)

    out = transformer_encoder(
        x, mask, packed_params,
        num_heads=num_heads, head_dim=head_dim, value_head_dim=value_head_dim,
        use_positional_embedding=True,
    )
    out = jax.block_until_ready(out)

    ref = transformer_encoder_reference(
        x, mask, params,
        num_heads=num_heads, head_dim=head_dim, value_head_dim=value_head_dim,
        use_positional_embedding=True,
    )
    ref = jax.block_until_ready(ref)

    assert out.shape == (B, T, D) and out.dtype == jnp.float32
    assert bool(jnp.all(jnp.isfinite(out)))
    max_err = float(jnp.max(jnp.abs(out - ref)))
    # Loose tolerance: kernel uses bf16 matmul operands / bf16 inter-layer activations
    # and approx EUP reciprocals; reference is full f32.
    assert max_err < 0.15, f"max abs error vs f32 reference too large: {max_err}"
    print("KERNEL_OK")
</pallas_src>

<mosaic_0001>
module attributes {stable_mosaic.version = 11 : i64} {
  func.func @encoder_layer_kernel(%arg0: i32, %arg1: memref<8x32xbf16, #tpu.memory_space<vmem>>, %arg2: memref<1x1x8xf32, #tpu.memory_space<vmem>>, %arg3: memref<32x96xbf16, #tpu.memory_space<vmem>>, %arg4: memref<1x96xf32, #tpu.memory_space<vmem>>, %arg5: memref<32x32xbf16, #tpu.memory_space<vmem>>, %arg6: memref<1x32xf32, #tpu.memory_space<vmem>>, %arg7: memref<1x32xf32, #tpu.memory_space<vmem>>, %arg8: memref<1x32xf32, #tpu.memory_space<vmem>>, %arg9: memref<32x32xbf16, #tpu.memory_space<vmem>>, %arg10: memref<1x32xf32, #tpu.memory_space<vmem>>, %arg11: memref<32x32xbf16, #tpu.memory_space<vmem>>, %arg12: memref<1x32xf32, #tpu.memory_space<vmem>>, %arg13: memref<1x32xf32, #tpu.memory_space<vmem>>, %arg14: memref<1x32xf32, #tpu.memory_space<vmem>>, %arg15: memref<8x32xbf16, #tpu.memory_space<vmem>>, %arg16: memref<8x32xbf16, #tpu.memory_space<vmem>>) attributes {dimension_semantics = [#tpu.dimension_semantics<parallel>], iteration_bounds = array<i64: 2>, scalar_prefetch = 0 : i64, scratch_operands = 1 : i64, tpu.core_type = #tpu.core_type<tc>, window_params = [{transform_indices = @transform_0, window_bounds = array<i64: 8, 32>}, {transform_indices = @transform_1, window_bounds = array<i64: 1, 1, 8>}, {pipeline_mode = #tpu.pipeline_mode<synchronous>, transform_indices = @transform_2, window_bounds = array<i64: 32, 96>}, {pipeline_mode = #tpu.pipeline_mode<synchronous>, transform_indices = @transform_3, window_bounds = array<i64: 1, 96>}, {pipeline_mode = #tpu.pipeline_mode<synchronous>, transform_indices = @transform_4, window_bounds = array<i64: 32, 32>}, {pipeline_mode = #tpu.pipeline_mode<synchronous>, transform_indices = @transform_5, window_bounds = array<i64: 1, 32>}, {pipeline_mode = #tpu.pipeline_mode<synchronous>, transform_indices = @transform_6, window_bounds = array<i64: 1, 32>}, {pipeline_mode = #tpu.pipeline_mode<synchronous>, transform_indices = @transform_7, window_bounds = array<i64: 1, 32>}, {pipeline_mode = #tpu.pipeline_mode<synchronous>, transform_indices = @transform_8, window_bounds = array<i64: 32, 32>}, {pipeline_mode = #tpu.pipeline_mode<synchronous>, transform_indices = @transform_9, window_bounds = array<i64: 1, 32>}, {pipeline_mode = #tpu.pipeline_mode<synchronous>, transform_indices = @transform_10, window_bounds = array<i64: 32, 32>}, {pipeline_mode = #tpu.pipeline_mode<synchronous>, transform_indices = @transform_11, window_bounds = array<i64: 1, 32>}, {pipeline_mode = #tpu.pipeline_mode<synchronous>, transform_indices = @transform_12, window_bounds = array<i64: 1, 32>}, {pipeline_mode = #tpu.pipeline_mode<synchronous>, transform_indices = @transform_13, window_bounds = array<i64: 1, 32>}, {transform_indices = @transform_14, window_bounds = array<i64: 8, 32>}]} {
    %c0 = arith.constant 0 : index
    %c0_0 = arith.constant 0 : index
    %0 = vector.load %arg1[%c0, %c0_0] : memref<8x32xbf16, #tpu.memory_space<vmem>>, vector<8x32xbf16>
    %1 = arith.extf %0 : vector<8x32xbf16> to vector<8x32xf32>
    %c0_1 = arith.constant 0 : index
    %c0_2 = arith.constant 0 : index
    %2 = vector.load %arg3[%c0_1, %c0_2] : memref<32x96xbf16, #tpu.memory_space<vmem>>, vector<32x96xbf16>
    %cst = arith.constant dense<0.000000e+00> : vector<8x96xf32>
    %3 = tpu.matmul %0, %2, %cst {dimension_numbers = #tpu.dot_dimension_numbers<[1], [0], [0], [1], [0, 0, 1, 1], [], []>} : vector<8x32xbf16>, vector<32x96xbf16>, vector<8x96xf32> -> vector<8x96xf32>
    %c0_3 = arith.constant 0 : index
    %c0_4 = arith.constant 0 : index
    %4 = vector.load %arg4[%c0_3, %c0_4] : memref<1x96xf32, #tpu.memory_space<vmem>>, vector<1x96xf32>
    %5 = vector.broadcast %4 : vector<1x96xf32> to vector<8x96xf32>
    %6 = arith.addf %3, %5 : vector<8x96xf32>
    %7 = vector.extract_strided_slice %6 {offsets = [0, 0], sizes = [8, 32], strides = [1, 1]} : vector<8x96xf32> to vector<8x32xf32>
    %8 = arith.truncf %7 : vector<8x32xf32> to vector<8x32xbf16>
    %9 = vector.extract_strided_slice %6 {offsets = [0, 32], sizes = [8, 32], strides = [1, 1]} : vector<8x96xf32> to vector<8x32xf32>
    %10 = arith.truncf %9 : vector<8x32xf32> to vector<8x32xbf16>
    %11 = vector.extract_strided_slice %6 {offsets = [0, 64], sizes = [8, 32], strides = [1, 1]} : vector<8x96xf32> to vector<8x32xf32>
    %12 = arith.truncf %11 : vector<8x32xf32> to vector<8x32xbf16>
    %c0_5 = arith.constant 0 : index
    %c0_6 = arith.constant 0 : index
    %c0_7 = arith.constant 0 : index
    %13 = vector.load %arg2[%c0_5, %c0_6, %c0_7] : memref<1x1x8xf32, #tpu.memory_space<vmem>>, vector<1x1x8xf32>
    %14 = vector.shape_cast %13 : vector<1x1x8xf32> to vector<1x8xf32>
    %15 = vector.extract_strided_slice %8 {offsets = [0, 0], sizes = [8, 8], strides = [1, 1]} : vector<8x32xbf16> to vector<8x8xbf16>
    %16 = vector.extract_strided_slice %10 {offsets = [0, 0], sizes = [8, 8], strides = [1, 1]} : vector<8x32xbf16> to vector<8x8xbf16>
    %17 = vector.extract_strided_slice %12 {offsets = [0, 0], sizes = [8, 8], strides = [1, 1]} : vector<8x32xbf16> to vector<8x8xbf16>
    %cst_8 = arith.constant dense<0.000000e+00> : vector<8x8xf32>
    %18 = tpu.matmul %15, %16, %cst_8 {dimension_numbers = #tpu.dot_dimension_numbers<[1], [1], [0], [0], [0, 0, 1, 0], [], []>} : vector<8x8xbf16>, vector<8x8xbf16>, vector<8x8xf32> -> vector<8x8xf32>
    %19 = vector.broadcast %14 : vector<1x8xf32> to vector<8x8xf32>
    %20 = arith.addf %18, %19 : vector<8x8xf32>
    %cst_9 = arith.constant dense<0xFF800000> : vector<8xf32>
    %21 = vector.multi_reduction <maximumf>, %20, %cst_9 [1] : vector<8x8xf32> to vector<8xf32>
    %22 = vector.shape_cast %21 : vector<8xf32> to vector<8x1xf32>
    %23 = vector.broadcast %22 : vector<8x1xf32> to vector<8x8xf32>
    %24 = arith.subf %20, %23 : vector<8x8xf32>
    %25 = math.exp %24 : vector<8x8xf32>
    %cst_10 = arith.constant dense<0.000000e+00> : vector<8xf32>
    %26 = vector.multi_reduction <add>, %25, %cst_10 [1] : vector<8x8xf32> to vector<8xf32>
    %27 = vector.shape_cast %26 : vector<8xf32> to vector<8x1xf32>
    %28 = arith.truncf %25 : vector<8x8xf32> to vector<8x8xbf16>
    %cst_11 = arith.constant dense<0.000000e+00> : vector<8x8xf32>
    %29 = tpu.matmul %28, %17, %cst_11 {dimension_numbers = #tpu.dot_dimension_numbers<[1], [0], [0], [1], [0, 0, 1, 1], [], []>} : vector<8x8xbf16>, vector<8x8xbf16>, vector<8x8xf32> -> vector<8x8xf32>
    %30 = tpu.reciprocal %27 {approx = true} : vector<8x1xf32> -> vector<8x1xf32>
    %31 = vector.broadcast %30 : vector<8x1xf32> to vector<8x8xf32>
    %32 = arith.mulf %29, %31 : vector<8x8xf32>
    %33 = arith.truncf %32 : vector<8x8xf32> to vector<8x8xbf16>
    %c0_12 = arith.constant 0 : index
    %c0_13 = arith.constant 0 : index
    %34 = vector.load %arg16[%c0_12, %c0_13] : memref<8x32xbf16, #tpu.memory_space<vmem>>, vector<8x8xbf16>
    tpu.vector_store %arg16[%c0_12, %c0_13], %33 {strides = array<i32>} : memref<8x32xbf16, #tpu.memory_space<vmem>>, vector<8x8xbf16>,
    %35 = vector.extract_strided_slice %8 {offsets = [0, 8], sizes = [8, 8], strides = [1, 1]} : vector<8x32xbf16> to vector<8x8xbf16>
    %36 = vector.extract_strided_slice %10 {offsets = [0, 8], sizes = [8, 8], strides = [1, 1]} : vector<8x32xbf16> to vector<8x8xbf16>
    %37 = vector.extract_strided_slice %12 {offsets = [0, 8], sizes = [8, 8], strides = [1, 1]} : vector<8x32xbf16> to vector<8x8xbf16>
    %cst_14 = arith.constant dense<0.000000e+00> : vector<8x8xf32>
    %38 = tpu.matmul %35, %36, %cst_14 {dimension_numbers = #tpu.dot_dimension_numbers<[1], [1], [0], [0], [0, 0, 1, 0], [], []>} : vector<8x8xbf16>, vector<8x8xbf16>, vector<8x8xf32> -> vector<8x8xf32>
    %39 = vector.broadcast %14 : vector<1x8xf32> to vector<8x8xf32>
    %40 = arith.addf %38, %39 : vector<8x8xf32>
    %cst_15 = arith.constant dense<0xFF800000> : vector<8xf32>
    %41 = vector.multi_reduction <maximumf>, %40, %cst_15 [1] : vector<8x8xf32> to vector<8xf32>
    %42 = vector.shape_cast %41 : vector<8xf32> to vector<8x1xf32>
    %43 = vector.broadcast %42 : vector<8x1xf32> to vector<8x8xf32>
    %44 = arith.subf %40, %43 : vector<8x8xf32>
    %45 = math.exp %44 : vector<8x8xf32>
    %cst_16 = arith.constant dense<0.000000e+00> : vector<8xf32>
    %46 = vector.multi_reduction <add>, %45, %cst_16 [1] : vector<8x8xf32> to vector<8xf32>
    %47 = vector.shape_cast %46 : vector<8xf32> to vector<8x1xf32>
    %48 = arith.truncf %45 : vector<8x8xf32> to vector<8x8xbf16>
    %cst_17 = arith.constant dense<0.000000e+00> : vector<8x8xf32>
    %49 = tpu.matmul %48, %37, %cst_17 {dimension_numbers = #tpu.dot_dimension_numbers<[1], [0], [0], [1], [0, 0, 1, 1], [], []>} : vector<8x8xbf16>, vector<8x8xbf16>, vector<8x8xf32> -> vector<8x8xf32>
    %50 = tpu.reciprocal %47 {approx = true} : vector<8x1xf32> -> vector<8x1xf32>
    %51 = vector.broadcast %50 : vector<8x1xf32> to vector<8x8xf32>
    %52 = arith.mulf %49, %51 : vector<8x8xf32>
    %53 = arith.truncf %52 : vector<8x8xf32> to vector<8x8xbf16>
    %c0_18 = arith.constant 0 : index
    %c8 = arith.constant 8 : index
    %54 = vector.load %arg16[%c0_18, %c8] : memref<8x32xbf16, #tpu.memory_space<vmem>>, vector<8x8xbf16>
    tpu.vector_store %arg16[%c0_18, %c8], %53 {strides = array<i32>} : memref<8x32xbf16, #tpu.memory_space<vmem>>, vector<8x8xbf16>,
    %55 = vector.extract_strided_slice %8 {offsets = [0, 16], sizes = [8, 8], strides = [1, 1]} : vector<8x32xbf16> to vector<8x8xbf16>
    %56 = vector.extract_strided_slice %10 {offsets = [0, 16], sizes = [8, 8], strides = [1, 1]} : vector<8x32xbf16> to vector<8x8xbf16>
    %57 = vector.extract_strided_slice %12 {offsets = [0, 16], sizes = [8, 8], strides = [1, 1]} : vector<8x32xbf16> to vector<8x8xbf16>
    %cst_19 = arith.constant dense<0.000000e+00> : vector<8x8xf32>
    %58 = tpu.matmul %55, %56, %cst_19 {dimension_numbers = #tpu.dot_dimension_numbers<[1], [1], [0], [0], [0, 0, 1, 0], [], []>} : vector<8x8xbf16>, vector<8x8xbf16>, vector<8x8xf32> -> vector<8x8xf32>
    %59 = vector.broadcast %14 : vector<1x8xf32> to vector<8x8xf32>
    %60 = arith.addf %58, %59 : vector<8x8xf32>
    %cst_20 = arith.constant dense<0xFF800000> : vector<8xf32>
    %61 = vector.multi_reduction <maximumf>, %60, %cst_20 [1] : vector<8x8xf32> to vector<8xf32>
    %62 = vector.shape_cast %61 : vector<8xf32> to vector<8x1xf32>
    %63 = vector.broadcast %62 : vector<8x1xf32> to vector<8x8xf32>
    %64 = arith.subf %60, %63 : vector<8x8xf32>
    %65 = math.exp %64 : vector<8x8xf32>
    %cst_21 = arith.constant dense<0.000000e+00> : vector<8xf32>
    %66 = vector.multi_reduction <add>, %65, %cst_21 [1] : vector<8x8xf32> to vector<8xf32>
    %67 = vector.shape_cast %66 : vector<8xf32> to vector<8x1xf32>
    %68 = arith.truncf %65 : vector<8x8xf32> to vector<8x8xbf16>
    %cst_22 = arith.constant dense<0.000000e+00> : vector<8x8xf32>
    %69 = tpu.matmul %68, %57, %cst_22 {dimension_numbers = #tpu.dot_dimension_numbers<[1], [0], [0], [1], [0, 0, 1, 1], [], []>} : vector<8x8xbf16>, vector<8x8xbf16>, vector<8x8xf32> -> vector<8x8xf32>
    %70 = tpu.reciprocal %67 {approx = true} : vector<8x1xf32> -> vector<8x1xf32>
    %71 = vector.broadcast %70 : vector<8x1xf32> to vector<8x8xf32>
    %72 = arith.mulf %69, %71 : vector<8x8xf32>
    %73 = arith.truncf %72 : vector<8x8xf32> to vector<8x8xbf16>
    %c0_23 = arith.constant 0 : index
    %c16 = arith.constant 16 : index
    %74 = vector.load %arg16[%c0_23, %c16] : memref<8x32xbf16, #tpu.memory_space<vmem>>, vector<8x8xbf16>
    tpu.vector_store %arg16[%c0_23, %c16], %73 {strides = array<i32>} : memref<8x32xbf16, #tpu.memory_space<vmem>>, vector<8x8xbf16>,
    %75 = vector.extract_strided_slice %8 {offsets = [0, 24], sizes = [8, 8], strides = [1, 1]} : vector<8x32xbf16> to vector<8x8xbf16>
    %76 = vector.extract_strided_slice %10 {offsets = [0, 24], sizes = [8, 8], strides = [1, 1]} : vector<8x32xbf16> to vector<8x8xbf16>
    %77 = vector.extract_strided_slice %12 {offsets = [0, 24], sizes = [8, 8], strides = [1, 1]} : vector<8x32xbf16> to vector<8x8xbf16>
    %cst_24 = arith.constant dense<0.000000e+00> : vector<8x8xf32>
    %78 = tpu.matmul %75, %76, %cst_24 {dimension_numbers = #tpu.dot_dimension_numbers<[1], [1], [0], [0], [0, 0, 1, 0], [], []>} : vector<8x8xbf16>, vector<8x8xbf16>, vector<8x8xf32> -> vector<8x8xf32>
    %79 = vector.broadcast %14 : vector<1x8xf32> to vector<8x8xf32>
    %80 = arith.addf %78, %79 : vector<8x8xf32>
    %cst_25 = arith.constant dense<0xFF800000> : vector<8xf32>
    %81 = vector.multi_reduction <maximumf>, %80, %cst_25 [1] : vector<8x8xf32> to vector<8xf32>
    %82 = vector.shape_cast %81 : vector<8xf32> to vector<8x1xf32>
    %83 = vector.broadcast %82 : vector<8x1xf32> to vector<8x8xf32>
    %84 = arith.subf %80, %83 : vector<8x8xf32>
    %85 = math.exp %84 : vector<8x8xf32>
    %cst_26 = arith.constant dense<0.000000e+00> : vector<8xf32>
    %86 = vector.multi_reduction <add>, %85, %cst_26 [1] : vector<8x8xf32> to vector<8xf32>
    %87 = vector.shape_cast %86 : vector<8xf32> to vector<8x1xf32>
    %88 = arith.truncf %85 : vector<8x8xf32> to vector<8x8xbf16>
    %cst_27 = arith.constant dense<0.000000e+00> : vector<8x8xf32>
    %89 = tpu.matmul %88, %77, %cst_27 {dimension_numbers = #tpu.dot_dimension_numbers<[1], [0], [0], [1], [0, 0, 1, 1], [], []>} : vector<8x8xbf16>, vector<8x8xbf16>, vector<8x8xf32> -> vector<8x8xf32>
    %90 = tpu.reciprocal %87 {approx = true} : vector<8x1xf32> -> vector<8x1xf32>
    %91 = vector.broadcast %90 : vector<8x1xf32> to vector<8x8xf32>
    %92 = arith.mulf %89, %91 : vector<8x8xf32>
    %93 = arith.truncf %92 : vector<8x8xf32> to vector<8x8xbf16>
    %c0_28 = arith.constant 0 : index
    %c24 = arith.constant 24 : index
    %94 = vector.load %arg16[%c0_28, %c24] : memref<8x32xbf16, #tpu.memory_space<vmem>>, vector<8x8xbf16>
    tpu.vector_store %arg16[%c0_28, %c24], %93 {strides = array<i32>} : memref<8x32xbf16, #tpu.memory_space<vmem>>, vector<8x8xbf16>,
    %c0_29 = arith.constant 0 : index
    %c0_30 = arith.constant 0 : index
    %95 = vector.load %arg16[%c0_29, %c0_30] : memref<8x32xbf16, #tpu.memory_space<vmem>>, vector<8x32xbf16>
    %c0_31 = arith.constant 0 : index
    %c0_32 = arith.constant 0 : index
    %96 = vector.load %arg5[%c0_31, %c0_32] : memref<32x32xbf16, #tpu.memory_space<vmem>>, vector<32x32xbf16>
    %cst_33 = arith.constant dense<0.000000e+00> : vector<8x32xf32>
    %97 = tpu.matmul %95, %96, %cst_33 {dimension_numbers = #tpu.dot_dimension_numbers<[1], [0], [0], [1], [0, 0, 1, 1], [], []>} : vector<8x32xbf16>, vector<32x32xbf16>, vector<8x32xf32> -> vector<8x32xf32>
    %c0_34 = arith.constant 0 : index
    %c0_35 = arith.constant 0 : index
    %98 = vector.load %arg6[%c0_34, %c0_35] : memref<1x32xf32, #tpu.memory_space<vmem>>, vector<1x32xf32>
    %99 = vector.broadcast %98 : vector<1x32xf32> to vector<8x32xf32>
    %100 = arith.addf %97, %99 : vector<8x32xf32>
    %101 = arith.addf %100, %1 : vector<8x32xf32>
    %c0_36 = arith.constant 0 : index
    %c0_37 = arith.constant 0 : index
    %102 = vector.load %arg7[%c0_36, %c0_37] : memref<1x32xf32, #tpu.memory_space<vmem>>, vector<1x32xf32>
    %c0_38 = arith.constant 0 : index
    %c0_39 = arith.constant 0 : index
    %103 = vector.load %arg8[%c0_38, %c0_39] : memref<1x32xf32, #tpu.memory_space<vmem>>, vector<1x32xf32>
    %cst_40 = arith.constant dense<0.000000e+00> : vector<8xf32>
    %104 = vector.multi_reduction <add>, %101, %cst_40 [1] : vector<8x32xf32> to vector<8xf32>
    %105 = vector.shape_cast %104 : vector<8xf32> to vector<8x1xf32>
    %cst_41 = arith.constant 3.200000e+01 : f32
    %106 = vector.broadcast %cst_41 : f32 to vector<8x1xf32>
    %107 = arith.divf %105, %106 : vector<8x1xf32>
    %108 = vector.broadcast %107 : vector<8x1xf32> to vector<8x32xf32>
    %109 = arith.subf %101, %108 : vector<8x32xf32>
    %110 = arith.mulf %109, %109 : vector<8x32xf32>
    %cst_42 = arith.constant dense<0.000000e+00> : vector<8xf32>
    %111 = vector.multi_reduction <add>, %110, %cst_42 [1] : vector<8x32xf32> to vector<8xf32>
    %112 = vector.shape_cast %111 : vector<8xf32> to vector<8x1xf32>
    %cst_43 = arith.constant 0.0322580636 : f32
    %113 = vector.broadcast %cst_43 : f32 to vector<8x1xf32>
    %114 = arith.mulf %112, %113 : vector<8x1xf32>
    %115 = math.sqrt %114 : vector<8x1xf32>
    %cst_44 = arith.constant 9.99999997E-7 : f32
    %116 = vector.broadcast %cst_44 : f32 to vector<8x1xf32>
    %117 = arith.addf %115, %116 : vector<8x1xf32>
    %118 = tpu.reciprocal %117 {approx = true} : vector<8x1xf32> -> vector<8x1xf32>
    %119 = vector.broadcast %118 : vector<8x1xf32> to vector<8x32xf32>
    %120 = arith.mulf %109, %119 : vector<8x32xf32>
    %121 = vector.broadcast %102 : vector<1x32xf32> to vector<8x32xf32>
    %122 = arith.mulf %120, %121 : vector<8x32xf32>
    %123 = vector.broadcast %103 : vector<1x32xf32> to vector<8x32xf32>
    %124 = arith.addf %122, %123 : vector<8x32xf32>
    %125 = arith.truncf %124 : vector<8x32xf32> to vector<8x32xbf16>
    %c0_45 = arith.constant 0 : index
    %c0_46 = arith.constant 0 : index
    %126 = vector.load %arg9[%c0_45, %c0_46] : memref<32x32xbf16, #tpu.memory_space<vmem>>, vector<32x32xbf16>
    %cst_47 = arith.constant dense<0.000000e+00> : vector<8x32xf32>
    %127 = tpu.matmul %125, %126, %cst_47 {dimension_numbers = #tpu.dot_dimension_numbers<[1], [0], [0], [1], [0, 0, 1, 1], [], []>} : vector<8x32xbf16>, vector<32x32xbf16>, vector<8x32xf32> -> vector<8x32xf32>
    %c0_48 = arith.constant 0 : index
    %c0_49 = arith.constant 0 : index
    %128 = vector.load %arg10[%c0_48, %c0_49] : memref<1x32xf32, #tpu.memory_space<vmem>>, vector<1x32xf32>
    %129 = vector.broadcast %128 : vector<1x32xf32> to vector<8x32xf32>
    %130 = arith.addf %127, %129 : vector<8x32xf32>
    %cst_50 = arith.constant 0.000000e+00 : f32
    %131 = vector.broadcast %cst_50 : f32 to vector<8x32xf32>
    %132 = arith.maximumf %130, %131 : vector<8x32xf32>
    %133 = arith.truncf %132 : vector<8x32xf32> to vector<8x32xbf16>
    %c0_51 = arith.constant 0 : index
    %c0_52 = arith.constant 0 : index
    %134 = vector.load %arg11[%c0_51, %c0_52] : memref<32x32xbf16, #tpu.memory_space<vmem>>, vector<32x32xbf16>
    %cst_53 = arith.constant dense<0.000000e+00> : vector<8x32xf32>
    %135 = tpu.matmul %133, %134, %cst_53 {dimension_numbers = #tpu.dot_dimension_numbers<[1], [0], [0], [1], [0, 0, 1, 1], [], []>} : vector<8x32xbf16>, vector<32x32xbf16>, vector<8x32xf32> -> vector<8x32xf32>
    %c0_54 = arith.constant 0 : index
    %c0_55 = arith.constant 0 : index
    %136 = vector.load %arg12[%c0_54, %c0_55] : memref<1x32xf32, #tpu.memory_space<vmem>>, vector<1x32xf32>
    %137 = vector.broadcast %136 : vector<1x32xf32> to vector<8x32xf32>
    %138 = arith.addf %135, %137 : vector<8x32xf32>
    %139 = arith.addf %138, %124 : vector<8x32xf32>
    %c0_56 = arith.constant 0 : index
    %c0_57 = arith.constant 0 : index
    %140 = vector.load %arg13[%c0_56, %c0_57] : memref<1x32xf32, #tpu.memory_space<vmem>>, vector<1x32xf32>
    %c0_58 = arith.constant 0 : index
    %c0_59 = arith.constant 0 : index
    %141 = vector.load %arg14[%c0_58, %c0_59] : memref<1x32xf32, #tpu.memory_space<vmem>>, vector<1x32xf32>
    %cst_60 = arith.constant dense<0.000000e+00> : vector<8xf32>
    %142 = vector.multi_reduction <add>, %139, %cst_60 [1] : vector<8x32xf32> to vector<8xf32>
    %143 = vector.shape_cast %142 : vector<8xf32> to vector<8x1xf32>
    %cst_61 = arith.constant 3.200000e+01 : f32
    %144 = vector.broadcast %cst_61 : f32 to vector<8x1xf32>
    %145 = arith.divf %143, %144 : vector<8x1xf32>
    %146 = vector.broadcast %145 : vector<8x1xf32> to vector<8x32xf32>
    %147 = arith.subf %139, %146 : vector<8x32xf32>
    %148 = arith.mulf %147, %147 : vector<8x32xf32>
    %cst_62 = arith.constant dense<0.000000e+00> : vector<8xf32>
    %149 = vector.multi_reduction <add>, %148, %cst_62 [1] : vector<8x32xf32> to vector<8xf32>
    %150 = vector.shape_cast %149 : vector<8xf32> to vector<8x1xf32>
    %cst_63 = arith.constant 0.0322580636 : f32
    %151 = vector.broadcast %cst_63 : f32 to vector<8x1xf32>
    %152 = arith.mulf %150, %151 : vector<8x1xf32>
    %153 = math.sqrt %152 : vector<8x1xf32>
    %cst_64 = arith.constant 9.99999997E-7 : f32
    %154 = vector.broadcast %cst_64 : f32 to vector<8x1xf32>
    %155 = arith.addf %153, %154 : vector<8x1xf32>
    %156 = tpu.reciprocal %155 {approx = true} : vector<8x1xf32> -> vector<8x1xf32>
    %157 = vector.broadcast %156 : vector<8x1xf32> to vector<8x32xf32>
    %158 = arith.mulf %147, %157 : vector<8x32xf32>
    %159 = vector.broadcast %140 : vector<1x32xf32> to vector<8x32xf32>
    %160 = arith.mulf %158, %159 : vector<8x32xf32>
    %161 = vector.broadcast %141 : vector<1x32xf32> to vector<8x32xf32>
    %162 = arith.addf %160, %161 : vector<8x32xf32>
    %163 = arith.truncf %162 : vector<8x32xf32> to vector<8x32xbf16>
    %c0_65 = arith.constant 0 : index
    %c0_66 = arith.constant 0 : index
    %164 = vector.load %arg15[%c0_65, %c0_66] : memref<8x32xbf16, #tpu.memory_space<vmem>>, vector<8x32xbf16>
    tpu.vector_store %arg15[%c0_65, %c0_66], %163 {strides = array<i32>} : memref<8x32xbf16, #tpu.memory_space<vmem>>, vector<8x32xbf16>,
    return
  }
  func.func @transform_0(%arg0: i32) -> (i32, i32) {
    %c0_i32 = arith.constant 0 : i32
    %c0_i32_0 = arith.constant 0 : i32
    return %arg0, %c0_i32 : i32, i32
  }
  func.func @transform_1(%arg0: i32) -> (i32, i32, i32) {
    %c0_i32 = arith.constant 0 : i32
    %c0_i32_0 = arith.constant 0 : i32
    %c0_i32_1 = arith.constant 0 : i32
    return %arg0, %c0_i32, %c0_i32_0 : i32, i32, i32
  }
  func.func @transform_2(%arg0: i32) -> (i32, i32) {
    %c0_i32 = arith.constant 0 : i32
    %c0_i32_0 = arith.constant 0 : i32
    %c0_i32_1 = arith.constant 0 : i32
    return %c0_i32, %c0_i32_0 : i32, i32
  }
  func.func @transform_3(%arg0: i32) -> (i32, i32) {
    %c0_i32 = arith.constant 0 : i32
    %c0_i32_0 = arith.constant 0 : i32
    %c0_i32_1 = arith.constant 0 : i32
    return %c0_i32, %c0_i32_0 : i32, i32
  }
  func.func @transform_4(%arg0: i32) -> (i32, i32) {
    %c0_i32 = arith.constant 0 : i32
    %c0_i32_0 = arith.constant 0 : i32
    %c0_i32_1 = arith.constant 0 : i32
    return %c0_i32, %c0_i32_0 : i32, i32
  }
  func.func @transform_5(%arg0: i32) -> (i32, i32) {
    %c0_i32 = arith.constant 0 : i32
    %c0_i32_0 = arith.constant 0 : i32
    %c0_i32_1 = arith.constant 0 : i32
    return %c0_i32, %c0_i32_0 : i32, i32
  }
  func.func @transform_6(%arg0: i32) -> (i32, i32) {
    %c0_i32 = arith.constant 0 : i32
    %c0_i32_0 = arith.constant 0 : i32
    %c0_i32_1 = arith.constant 0 : i32
    return %c0_i32, %c0_i32_0 : i32, i32
  }
  func.func @transform_7(%arg0: i32) -> (i32, i32) {
    %c0_i32 = arith.constant 0 : i32
    %c0_i32_0 = arith.constant 0 : i32
    %c0_i32_1 = arith.constant 0 : i32
    return %c0_i32, %c0_i32_0 : i32, i32
  }
  func.func @transform_8(%arg0: i32) -> (i32, i32) {
    %c0_i32 = arith.constant 0 : i32
    %c0_i32_0 = arith.constant 0 : i32
    %c0_i32_1 = arith.constant 0 : i32
    return %c0_i32, %c0_i32_0 : i32, i32
  }
  func.func @transform_9(%arg0: i32) -> (i32, i32) {
    %c0_i32 = arith.constant 0 : i32
    %c0_i32_0 = arith.constant 0 : i32
    %c0_i32_1 = arith.constant 0 : i32
    return %c0_i32, %c0_i32_0 : i32, i32
  }
  func.func @transform_10(%arg0: i32) -> (i32, i32) {
    %c0_i32 = arith.constant 0 : i32
    %c0_i32_0 = arith.constant 0 : i32
    %c0_i32_1 = arith.constant 0 : i32
    return %c0_i32, %c0_i32_0 : i32, i32
  }
  func.func @transform_11(%arg0: i32) -> (i32, i32) {
    %c0_i32 = arith.constant 0 : i32
    %c0_i32_0 = arith.constant 0 : i32
    %c0_i32_1 = arith.constant 0 : i32
    return %c0_i32, %c0_i32_0 : i32, i32
  }
  func.func @transform_12(%arg0: i32) -> (i32, i32) {
    %c0_i32 = arith.constant 0 : i32
    %c0_i32_0 = arith.constant 0 : i32
    %c0_i32_1 = arith.constant 0 : i32
    return %c0_i32, %c0_i32_0 : i32, i32
  }
  func.func @transform_13(%arg0: i32) -> (i32, i32) {
    %c0_i32 = arith.constant 0 : i32
    %c0_i32_0 = arith.constant 0 : i32
    %c0_i32_1 = arith.constant 0 : i32
    return %c0_i32, %c0_i32_0 : i32, i32
  }
  func.func @transform_14(%arg0: i32) -> (i32, i32) {
    %c0_i32 = arith.constant 0 : i32
    %c0_i32_0 = arith.constant 0 : i32
    return %arg0, %c0_i32 : i32, i32
  }
}

module attributes {stable_mosaic.version = 11 : i64} {
  func.func @encoder_layer_kernel(%arg0: i32, %arg1: memref<8x32xbf16, #tpu.memory_space<vmem>>, %arg2: memref<1x1x8xf32, #tpu.memory_space<vmem>>, %arg3: memref<32x96xbf16, #tpu.memory_space<vmem>>, %arg4: memref<1x96xf32, #tpu.memory_space<vmem>>, %arg5: memref<32x32xbf16, #tpu.memory_space<vmem>>, %arg6: memref<1x32xf32, #tpu.memory_space<vmem>>, %arg7: memref<1x32xf32, #tpu.memory_space<vmem>>, %arg8: memref<1x32xf32, #tpu.memory_space<vmem>>, %arg9: memref<32x32xbf16, #tpu.memory_space<vmem>>, %arg10: memref<1x32xf32, #tpu.memory_space<vmem>>, %arg11: memref<32x32xbf16, #tpu.memory_space<vmem>>, %arg12: memref<1x32xf32, #tpu.memory_space<vmem>>, %arg13: memref<1x32xf32, #tpu.memory_space<vmem>>, %arg14: memref<1x32xf32, #tpu.memory_space<vmem>>, %arg15: memref<8x32xbf16, #tpu.memory_space<vmem>>, %arg16: memref<8x32xbf16, #tpu.memory_space<vmem>>) attributes {dimension_semantics = [#tpu.dimension_semantics<parallel>], iteration_bounds = array<i64: 2>, scalar_prefetch = 0 : i64, scratch_operands = 1 : i64, tpu.core_type = #tpu.core_type<tc>, window_params = [{transform_indices = @transform_0, window_bounds = array<i64: 8, 32>}, {transform_indices = @transform_1, window_bounds = array<i64: 1, 1, 8>}, {pipeline_mode = #tpu.pipeline_mode<synchronous>, transform_indices = @transform_2, window_bounds = array<i64: 32, 96>}, {pipeline_mode = #tpu.pipeline_mode<synchronous>, transform_indices = @transform_3, window_bounds = array<i64: 1, 96>}, {pipeline_mode = #tpu.pipeline_mode<synchronous>, transform_indices = @transform_4, window_bounds = array<i64: 32, 32>}, {pipeline_mode = #tpu.pipeline_mode<synchronous>, transform_indices = @transform_5, window_bounds = array<i64: 1, 32>}, {pipeline_mode = #tpu.pipeline_mode<synchronous>, transform_indices = @transform_6, window_bounds = array<i64: 1, 32>}, {pipeline_mode = #tpu.pipeline_mode<synchronous>, transform_indices = @transform_7, window_bounds = array<i64: 1, 32>}, {pipeline_mode = #tpu.pipeline_mode<synchronous>, transform_indices = @transform_8, window_bounds = array<i64: 32, 32>}, {pipeline_mode = #tpu.pipeline_mode<synchronous>, transform_indices = @transform_9, window_bounds = array<i64: 1, 32>}, {pipeline_mode = #tpu.pipeline_mode<synchronous>, transform_indices = @transform_10, window_bounds = array<i64: 32, 32>}, {pipeline_mode = #tpu.pipeline_mode<synchronous>, transform_indices = @transform_11, window_bounds = array<i64: 1, 32>}, {pipeline_mode = #tpu.pipeline_mode<synchronous>, transform_indices = @transform_12, window_bounds = array<i64: 1, 32>}, {pipeline_mode = #tpu.pipeline_mode<synchronous>, transform_indices = @transform_13, window_bounds = array<i64: 1, 32>}, {transform_indices = @transform_14, window_bounds = array<i64: 8, 32>}]} {
    %c0 = arith.constant 0 : index
    %c0_0 = arith.constant 0 : index
    %0 = vector.load %arg1[%c0, %c0_0] : memref<8x32xbf16, #tpu.memory_space<vmem>>, vector<8x32xbf16>
    %1 = arith.extf %0 : vector<8x32xbf16> to vector<8x32xf32>
    %c0_1 = arith.constant 0 : index
    %c0_2 = arith.constant 0 : index
    %2 = vector.load %arg3[%c0_1, %c0_2] : memref<32x96xbf16, #tpu.memory_space<vmem>>, vector<32x96xbf16>
    %cst = arith.constant dense<0.000000e+00> : vector<8x96xf32>
    %3 = tpu.matmul %0, %2, %cst {dimension_numbers = #tpu.dot_dimension_numbers<[1], [0], [0], [1], [0, 0, 1, 1], [], []>} : vector<8x32xbf16>, vector<32x96xbf16>, vector<8x96xf32> -> vector<8x96xf32>
    %c0_3 = arith.constant 0 : index
    %c0_4 = arith.constant 0 : index
    %4 = vector.load %arg4[%c0_3, %c0_4] : memref<1x96xf32, #tpu.memory_space<vmem>>, vector<1x96xf32>
    %5 = vector.broadcast %4 : vector<1x96xf32> to vector<8x96xf32>
    %6 = arith.addf %3, %5 : vector<8x96xf32>
    %7 = vector.extract_strided_slice %6 {offsets = [0, 0], sizes = [8, 32], strides = [1, 1]} : vector<8x96xf32> to vector<8x32xf32>
    %8 = arith.truncf %7 : vector<8x32xf32> to vector<8x32xbf16>
    %9 = vector.extract_strided_slice %6 {offsets = [0, 32], sizes = [8, 32], strides = [1, 1]} : vector<8x96xf32> to vector<8x32xf32>
    %10 = arith.truncf %9 : vector<8x32xf32> to vector<8x32xbf16>
    %11 = vector.extract_strided_slice %6 {offsets = [0, 64], sizes = [8, 32], strides = [1, 1]} : vector<8x96xf32> to vector<8x32xf32>
    %12 = arith.truncf %11 : vector<8x32xf32> to vector<8x32xbf16>
    %c0_5 = arith.constant 0 : index
    %c0_6 = arith.constant 0 : index
    %c0_7 = arith.constant 0 : index
    %13 = vector.load %arg2[%c0_5, %c0_6, %c0_7] : memref<1x1x8xf32, #tpu.memory_space<vmem>>, vector<1x1x8xf32>
    %14 = vector.shape_cast %13 : vector<1x1x8xf32> to vector<1x8xf32>
    %15 = vector.extract_strided_slice %8 {offsets = [0, 0], sizes = [8, 8], strides = [1, 1]} : vector<8x32xbf16> to vector<8x8xbf16>
    %16 = vector.extract_strided_slice %10 {offsets = [0, 0], sizes = [8, 8], strides = [1, 1]} : vector<8x32xbf16> to vector<8x8xbf16>
    %17 = vector.extract_strided_slice %12 {offsets = [0, 0], sizes = [8, 8], strides = [1, 1]} : vector<8x32xbf16> to vector<8x8xbf16>
    %cst_8 = arith.constant dense<0.000000e+00> : vector<8x8xf32>
    %18 = tpu.matmul %15, %16, %cst_8 {dimension_numbers = #tpu.dot_dimension_numbers<[1], [1], [0], [0], [0, 0, 1, 0], [], []>} : vector<8x8xbf16>, vector<8x8xbf16>, vector<8x8xf32> -> vector<8x8xf32>
    %19 = vector.broadcast %14 : vector<1x8xf32> to vector<8x8xf32>
    %20 = arith.addf %18, %19 : vector<8x8xf32>
    %cst_9 = arith.constant dense<0xFF800000> : vector<8xf32>
    %21 = vector.multi_reduction <maximumf>, %20, %cst_9 [1] : vector<8x8xf32> to vector<8xf32>
    %22 = vector.shape_cast %21 : vector<8xf32> to vector<8x1xf32>
    %23 = vector.broadcast %22 : vector<8x1xf32> to vector<8x8xf32>
    %24 = arith.subf %20, %23 : vector<8x8xf32>
    %25 = math.exp %24 : vector<8x8xf32>
    %cst_10 = arith.constant dense<0.000000e+00> : vector<8xf32>
    %26 = vector.multi_reduction <add>, %25, %cst_10 [1] : vector<8x8xf32> to vector<8xf32>
    %27 = vector.shape_cast %26 : vector<8xf32> to vector<8x1xf32>
    %28 = arith.truncf %25 : vector<8x8xf32> to vector<8x8xbf16>
    %cst_11 = arith.constant dense<0.000000e+00> : vector<8x8xf32>
    %29 = tpu.matmul %28, %17, %cst_11 {dimension_numbers = #tpu.dot_dimension_numbers<[1], [0], [0], [1], [0, 0, 1, 1], [], []>} : vector<8x8xbf16>, vector<8x8xbf16>, vector<8x8xf32> -> vector<8x8xf32>
    %30 = tpu.reciprocal %27 {approx = true} : vector<8x1xf32> -> vector<8x1xf32>
    %31 = vector.broadcast %30 : vector<8x1xf32> to vector<8x8xf32>
    %32 = arith.mulf %29, %31 : vector<8x8xf32>
    %33 = arith.truncf %32 : vector<8x8xf32> to vector<8x8xbf16>
    %c0_12 = arith.constant 0 : index
    %c0_13 = arith.constant 0 : index
    %34 = vector.load %arg16[%c0_12, %c0_13] : memref<8x32xbf16, #tpu.memory_space<vmem>>, vector<8x8xbf16>
    tpu.vector_store %arg16[%c0_12, %c0_13], %33 {strides = array<i32>} : memref<8x32xbf16, #tpu.memory_space<vmem>>, vector<8x8xbf16>,
    %35 = vector.extract_strided_slice %8 {offsets = [0, 8], sizes = [8, 8], strides = [1, 1]} : vector<8x32xbf16> to vector<8x8xbf16>
    %36 = vector.extract_strided_slice %10 {offsets = [0, 8], sizes = [8, 8], strides = [1, 1]} : vector<8x32xbf16> to vector<8x8xbf16>
    %37 = vector.extract_strided_slice %12 {offsets = [0, 8], sizes = [8, 8], strides = [1, 1]} : vector<8x32xbf16> to vector<8x8xbf16>
    %cst_14 = arith.constant dense<0.000000e+00> : vector<8x8xf32>
    %38 = tpu.matmul %35, %36, %cst_14 {dimension_numbers = #tpu.dot_dimension_numbers<[1], [1], [0], [0], [0, 0, 1, 0], [], []>} : vector<8x8xbf16>, vector<8x8xbf16>, vector<8x8xf32> -> vector<8x8xf32>
    %39 = vector.broadcast %14 : vector<1x8xf32> to vector<8x8xf32>
    %40 = arith.addf %38, %39 : vector<8x8xf32>
    %cst_15 = arith.constant dense<0xFF800000> : vector<8xf32>
    %41 = vector.multi_reduction <maximumf>, %40, %cst_15 [1] : vector<8x8xf32> to vector<8xf32>
    %42 = vector.shape_cast %41 : vector<8xf32> to vector<8x1xf32>
    %43 = vector.broadcast %42 : vector<8x1xf32> to vector<8x8xf32>
    %44 = arith.subf %40, %43 : vector<8x8xf32>
    %45 = math.exp %44 : vector<8x8xf32>
    %cst_16 = arith.constant dense<0.000000e+00> : vector<8xf32>
    %46 = vector.multi_reduction <add>, %45, %cst_16 [1] : vector<8x8xf32> to vector<8xf32>
    %47 = vector.shape_cast %46 : vector<8xf32> to vector<8x1xf32>
    %48 = arith.truncf %45 : vector<8x8xf32> to vector<8x8xbf16>
    %cst_17 = arith.constant dense<0.000000e+00> : vector<8x8xf32>
    %49 = tpu.matmul %48, %37, %cst_17 {dimension_numbers = #tpu.dot_dimension_numbers<[1], [0], [0], [1], [0, 0, 1, 1], [], []>} : vector<8x8xbf16>, vector<8x8xbf16>, vector<8x8xf32> -> vector<8x8xf32>
    %50 = tpu.reciprocal %47 {approx = true} : vector<8x1xf32> -> vector<8x1xf32>
    %51 = vector.broadcast %50 : vector<8x1xf32> to vector<8x8xf32>
    %52 = arith.mulf %49, %51 : vector<8x8xf32>
    %53 = arith.truncf %52 : vector<8x8xf32> to vector<8x8xbf16>
    %c0_18 = arith.constant 0 : index
    %c8 = arith.constant 8 : index
    %54 = vector.load %arg16[%c0_18, %c8] : memref<8x32xbf16, #tpu.memory_space<vmem>>, vector<8x8xbf16>
    tpu.vector_store %arg16[%c0_18, %c8], %53 {strides = array<i32>} : memref<8x32xbf16, #tpu.memory_space<vmem>>, vector<8x8xbf16>,
    %55 = vector.extract_strided_slice %8 {offsets = [0, 16], sizes = [8, 8], strides = [1, 1]} : vector<8x32xbf16> to vector<8x8xbf16>
    %56 = vector.extract_strided_slice %10 {offsets = [0, 16], sizes = [8, 8], strides = [1, 1]} : vector<8x32xbf16> to vector<8x8xbf16>
    %57 = vector.extract_strided_slice %12 {offsets = [0, 16], sizes = [8, 8], strides = [1, 1]} : vector<8x32xbf16> to vector<8x8xbf16>
    %cst_19 = arith.constant dense<0.000000e+00> : vector<8x8xf32>
    %58 = tpu.matmul %55, %56, %cst_19 {dimension_numbers = #tpu.dot_dimension_numbers<[1], [1], [0], [0], [0, 0, 1, 0], [], []>} : vector<8x8xbf16>, vector<8x8xbf16>, vector<8x8xf32> -> vector<8x8xf32>
    %59 = vector.broadcast %14 : vector<1x8xf32> to vector<8x8xf32>
    %60 = arith.addf %58, %59 : vector<8x8xf32>
    %cst_20 = arith.constant dense<0xFF800000> : vector<8xf32>
    %61 = vector.multi_reduction <maximumf>, %60, %cst_20 [1] : vector<8x8xf32> to vector<8xf32>
    %62 = vector.shape_cast %61 : vector<8xf32> to vector<8x1xf32>
    %63 = vector.broadcast %62 : vector<8x1xf32> to vector<8x8xf32>
    %64 = arith.subf %60, %63 : vector<8x8xf32>
    %65 = math.exp %64 : vector<8x8xf32>
    %cst_21 = arith.constant dense<0.000000e+00> : vector<8xf32>
    %66 = vector.multi_reduction <add>, %65, %cst_21 [1] : vector<8x8xf32> to vector<8xf32>
    %67 = vector.shape_cast %66 : vector<8xf32> to vector<8x1xf32>
    %68 = arith.truncf %65 : vector<8x8xf32> to vector<8x8xbf16>
    %cst_22 = arith.constant dense<0.000000e+00> : vector<8x8xf32>
    %69 = tpu.matmul %68, %57, %cst_22 {dimension_numbers = #tpu.dot_dimension_numbers<[1], [0], [0], [1], [0, 0, 1, 1], [], []>} : vector<8x8xbf16>, vector<8x8xbf16>, vector<8x8xf32> -> vector<8x8xf32>
    %70 = tpu.reciprocal %67 {approx = true} : vector<8x1xf32> -> vector<8x1xf32>
    %71 = vector.broadcast %70 : vector<8x1xf32> to vector<8x8xf32>
    %72 = arith.mulf %69, %71 : vector<8x8xf32>
    %73 = arith.truncf %72 : vector<8x8xf32> to vector<8x8xbf16>
    %c0_23 = arith.constant 0 : index
    %c16 = arith.constant 16 : index
    %74 = vector.load %arg16[%c0_23, %c16] : memref<8x32xbf16, #tpu.memory_space<vmem>>, vector<8x8xbf16>
    tpu.vector_store %arg16[%c0_23, %c16], %73 {strides = array<i32>} : memref<8x32xbf16, #tpu.memory_space<vmem>>, vector<8x8xbf16>,
    %75 = vector.extract_strided_slice %8 {offsets = [0, 24], sizes = [8, 8], strides = [1, 1]} : vector<8x32xbf16> to vector<8x8xbf16>
    %76 = vector.extract_strided_slice %10 {offsets = [0, 24], sizes = [8, 8], strides = [1, 1]} : vector<8x32xbf16> to vector<8x8xbf16>
    %77 = vector.extract_strided_slice %12 {offsets = [0, 24], sizes = [8, 8], strides = [1, 1]} : vector<8x32xbf16> to vector<8x8xbf16>
    %cst_24 = arith.constant dense<0.000000e+00> : vector<8x8xf32>
    %78 = tpu.matmul %75, %76, %cst_24 {dimension_numbers = #tpu.dot_dimension_numbers<[1], [1], [0], [0], [0, 0, 1, 0], [], []>} : vector<8x8xbf16>, vector<8x8xbf16>, vector<8x8xf32> -> vector<8x8xf32>
    %79 = vector.broadcast %14 : vector<1x8xf32> to vector<8x8xf32>
    %80 = arith.addf %78, %79 : vector<8x8xf32>
    %cst_25 = arith.constant dense<0xFF800000> : vector<8xf32>
    %81 = vector.multi_reduction <maximumf>, %80, %cst_25 [1] : vector<8x8xf32> to vector<8xf32>
    %82 = vector.shape_cast %81 : vector<8xf32> to vector<8x1xf32>
    %83 = vector.broadcast %82 : vector<8x1xf32> to vector<8x8xf32>
    %84 = arith.subf %80, %83 : vector<8x8xf32>
    %85 = math.exp %84 : vector<8x8xf32>
    %cst_26 = arith.constant dense<0.000000e+00> : vector<8xf32>
    %86 = vector.multi_reduction <add>, %85, %cst_26 [1] : vector<8x8xf32> to vector<8xf32>
    %87 = vector.shape_cast %86 : vector<8xf32> to vector<8x1xf32>
    %88 = arith.truncf %85 : vector<8x8xf32> to vector<8x8xbf16>
    %cst_27 = arith.constant dense<0.000000e+00> : vector<8x8xf32>
    %89 = tpu.matmul %88, %77, %cst_27 {dimension_numbers = #tpu.dot_dimension_numbers<[1], [0], [0], [1], [0, 0, 1, 1], [], []>} : vector<8x8xbf16>, vector<8x8xbf16>, vector<8x8xf32> -> vector<8x8xf32>
    %90 = tpu.reciprocal %87 {approx = true} : vector<8x1xf32> -> vector<8x1xf32>
    %91 = vector.broadcast %90 : vector<8x1xf32> to vector<8x8xf32>
    %92 = arith.mulf %89, %91 : vector<8x8xf32>
    %93 = arith.truncf %92 : vector<8x8xf32> to vector<8x8xbf16>
    %c0_28 = arith.constant 0 : index
    %c24 = arith.constant 24 : index
    %94 = vector.load %arg16[%c0_28, %c24] : memref<8x32xbf16, #tpu.memory_space<vmem>>, vector<8x8xbf16>
    tpu.vector_store %arg16[%c0_28, %c24], %93 {strides = array<i32>} : memref<8x32xbf16, #tpu.memory_space<vmem>>, vector<8x8xbf16>,
    %c0_29 = arith.constant 0 : index
    %c0_30 = arith.constant 0 : index
    %95 = vector.load %arg16[%c0_29, %c0_30] : memref<8x32xbf16, #tpu.memory_space<vmem>>, vector<8x32xbf16>
    %c0_31 = arith.constant 0 : index
    %c0_32 = arith.constant 0 : index
    %96 = vector.load %arg5[%c0_31, %c0_32] : memref<32x32xbf16, #tpu.memory_space<vmem>>, vector<32x32xbf16>
    %cst_33 = arith.constant dense<0.000000e+00> : vector<8x32xf32>
    %97 = tpu.matmul %95, %96, %cst_33 {dimension_numbers = #tpu.dot_dimension_numbers<[1], [0], [0], [1], [0, 0, 1, 1], [], []>} : vector<8x32xbf16>, vector<32x32xbf16>, vector<8x32xf32> -> vector<8x32xf32>
    %c0_34 = arith.constant 0 : index
    %c0_35 = arith.constant 0 : index
    %98 = vector.load %arg6[%c0_34, %c0_35] : memref<1x32xf32, #tpu.memory_space<vmem>>, vector<1x32xf32>
    %99 = vector.broadcast %98 : vector<1x32xf32> to vector<8x32xf32>
    %100 = arith.addf %97, %99 : vector<8x32xf32>
    %101 = arith.addf %100, %1 : vector<8x32xf32>
    %c0_36 = arith.constant 0 : index
    %c0_37 = arith.constant 0 : index
    %102 = vector.load %arg7[%c0_36, %c0_37] : memref<1x32xf32, #tpu.memory_space<vmem>>, vector<1x32xf32>
    %c0_38 = arith.constant 0 : index
    %c0_39 = arith.constant 0 : index
    %103 = vector.load %arg8[%c0_38, %c0_39] : memref<1x32xf32, #tpu.memory_space<vmem>>, vector<1x32xf32>
    %cst_40 = arith.constant dense<0.000000e+00> : vector<8xf32>
    %104 = vector.multi_reduction <add>, %101, %cst_40 [1] : vector<8x32xf32> to vector<8xf32>
    %105 = vector.shape_cast %104 : vector<8xf32> to vector<8x1xf32>
    %cst_41 = arith.constant 3.200000e+01 : f32
    %106 = vector.broadcast %cst_41 : f32 to vector<8x1xf32>
    %107 = arith.divf %105, %106 : vector<8x1xf32>
    %108 = vector.broadcast %107 : vector<8x1xf32> to vector<8x32xf32>
    %109 = arith.subf %101, %108 : vector<8x32xf32>
    %110 = arith.mulf %109, %109 : vector<8x32xf32>
    %cst_42 = arith.constant dense<0.000000e+00> : vector<8xf32>
    %111 = vector.multi_reduction <add>, %110, %cst_42 [1] : vector<8x32xf32> to vector<8xf32>
    %112 = vector.shape_cast %111 : vector<8xf32> to vector<8x1xf32>
    %cst_43 = arith.constant 0.0322580636 : f32
    %113 = vector.broadcast %cst_43 : f32 to vector<8x1xf32>
    %114 = arith.mulf %112, %113 : vector<8x1xf32>
    %115 = math.sqrt %114 : vector<8x1xf32>
    %cst_44 = arith.constant 9.99999997E-7 : f32
    %116 = vector.broadcast %cst_44 : f32 to vector<8x1xf32>
    %117 = arith.addf %115, %116 : vector<8x1xf32>
    %118 = tpu.reciprocal %117 {approx = true} : vector<8x1xf32> -> vector<8x1xf32>
    %119 = vector.broadcast %118 : vector<8x1xf32> to vector<8x32xf32>
    %120 = arith.mulf %109, %119 : vector<8x32xf32>
    %121 = vector.broadcast %102 : vector<1x32xf32> to vector<8x32xf32>
    %122 = arith.mulf %120, %121 : vector<8x32xf32>
    %123 = vector.broadcast %103 : vector<1x32xf32> to vector<8x32xf32>
    %124 = arith.addf %122, %123 : vector<8x32xf32>
    %125 = arith.truncf %124 : vector<8x32xf32> to vector<8x32xbf16>
    %c0_45 = arith.constant 0 : index
    %c0_46 = arith.constant 0 : index
    %126 = vector.load %arg9[%c0_45, %c0_46] : memref<32x32xbf16, #tpu.memory_space<vmem>>, vector<32x32xbf16>
    %cst_47 = arith.constant dense<0.000000e+00> : vector<8x32xf32>
    %127 = tpu.matmul %125, %126, %cst_47 {dimension_numbers = #tpu.dot_dimension_numbers<[1], [0], [0], [1], [0, 0, 1, 1], [], []>} : vector<8x32xbf16>, vector<32x32xbf16>, vector<8x32xf32> -> vector<8x32xf32>
    %c0_48 = arith.constant 0 : index
    %c0_49 = arith.constant 0 : index
    %128 = vector.load %arg10[%c0_48, %c0_49] : memref<1x32xf32, #tpu.memory_space<vmem>>, vector<1x32xf32>
    %129 = vector.broadcast %128 : vector<1x32xf32> to vector<8x32xf32>
    %130 = arith.addf %127, %129 : vector<8x32xf32>
    %cst_50 = arith.constant 0.000000e+00 : f32
    %131 = vector.broadcast %cst_50 : f32 to vector<8x32xf32>
    %132 = arith.maximumf %130, %131 : vector<8x32xf32>
    %133 = arith.truncf %132 : vector<8x32xf32> to vector<8x32xbf16>
    %c0_51 = arith.constant 0 : index
    %c0_52 = arith.constant 0 : index
    %134 = vector.load %arg11[%c0_51, %c0_52] : memref<32x32xbf16, #tpu.memory_space<vmem>>, vector<32x32xbf16>
    %cst_53 = arith.constant dense<0.000000e+00> : vector<8x32xf32>
    %135 = tpu.matmul %133, %134, %cst_53 {dimension_numbers = #tpu.dot_dimension_numbers<[1], [0], [0], [1], [0, 0, 1, 1], [], []>} : vector<8x32xbf16>, vector<32x32xbf16>, vector<8x32xf32> -> vector<8x32xf32>
    %c0_54 = arith.constant 0 : index
    %c0_55 = arith.constant 0 : index
    %136 = vector.load %arg12[%c0_54, %c0_55] : memref<1x32xf32, #tpu.memory_space<vmem>>, vector<1x32xf32>
    %137 = vector.broadcast %136 : vector<1x32xf32> to vector<8x32xf32>
    %138 = arith.addf %135, %137 : vector<8x32xf32>
    %139 = arith.addf %138, %124 : vector<8x32xf32>
    %c0_56 = arith.constant 0 : index
    %c0_57 = arith.constant 0 : index
    %140 = vector.load %arg13[%c0_56, %c0_57] : memref<1x32xf32, #tpu.memory_space<vmem>>, vector<1x32xf32>
    %c0_58 = arith.constant 0 : index
    %c0_59 = arith.constant 0 : index
    %141 = vector.load %arg14[%c0_58, %c0_59] : memref<1x32xf32, #tpu.memory_space<vmem>>, vector<1x32xf32>
    %cst_60 = arith.constant dense<0.000000e+00> : vector<8xf32>
    %142 = vector.multi_reduction <add>, %139, %cst_60 [1] : vector<8x32xf32> to vector<8xf32>
    %143 = vector.shape_cast %142 : vector<8xf32> to vector<8x1xf32>
    %cst_61 = arith.constant 3.200000e+01 : f32
    %144 = vector.broadcast %cst_61 : f32 to vector<8x1xf32>
    %145 = arith.divf %143, %144 : vector<8x1xf32>
    %146 = vector.broadcast %145 : vector<8x1xf32> to vector<8x32xf32>
    %147 = arith.subf %139, %146 : vector<8x32xf32>
    %148 = arith.mulf %147, %147 : vector<8x32xf32>
    %cst_62 = arith.constant dense<0.000000e+00> : vector<8xf32>
    %149 = vector.multi_reduction <add>, %148, %cst_62 [1] : vector<8x32xf32> to vector<8xf32>
    %150 = vector.shape_cast %149 : vector<8xf32> to vector<8x1xf32>
    %cst_63 = arith.constant 0.0322580636 : f32
    %151 = vector.broadcast %cst_63 : f32 to vector<8x1xf32>
    %152 = arith.mulf %150, %151 : vector<8x1xf32>
    %153 = math.sqrt %152 : vector<8x1xf32>
    %cst_64 = arith.constant 9.99999997E-7 : f32
    %154 = vector.broadcast %cst_64 : f32 to vector<8x1xf32>
    %155 = arith.addf %153, %154 : vector<8x1xf32>
    %156 = tpu.reciprocal %155 {approx = true} : vector<8x1xf32> -> vector<8x1xf32>
    %157 = vector.broadcast %156 : vector<8x1xf32> to vector<8x32xf32>
    %158 = arith.mulf %147, %157 : vector<8x32xf32>
    %159 = vector.broadcast %140 : vector<1x32xf32> to vector<8x32xf32>
    %160 = arith.mulf %158, %159 : vector<8x32xf32>
    %161 = vector.broadcast %141 : vector<1x32xf32> to vector<8x32xf32>
    %162 = arith.addf %160, %161 : vector<8x32xf32>
    %163 = arith.truncf %162 : vector<8x32xf32> to vector<8x32xbf16>
    %c0_65 = arith.constant 0 : index
    %c0_66 = arith.constant 0 : index
    %164 = vector.load %arg15[%c0_65, %c0_66] : memref<8x32xbf16, #tpu.memory_space<vmem>>, vector<8x32xbf16>
    tpu.vector_store %arg15[%c0_65, %c0_66], %163 {strides = array<i32>} : memref<8x32xbf16, #tpu.memory_space<vmem>>, vector<8x32xbf16>,
    return
  }
  func.func @transform_0(%arg0: i32) -> (i32, i32) {
    %c0_i32 = arith.constant 0 : i32
    %c0_i32_0 = arith.constant 0 : i32
    return %arg0, %c0_i32 : i32, i32
  }
  func.func @transform_1(%arg0: i32) -> (i32, i32, i32) {
    %c0_i32 = arith.constant 0 : i32
    %c0_i32_0 = arith.constant 0 : i32
    %c0_i32_1 = arith.constant 0 : i32
    return %arg0, %c0_i32, %c0_i32_0 : i32, i32, i32
  }
  func.func @transform_2(%arg0: i32) -> (i32, i32) {
    %c0_i32 = arith.constant 0 : i32
    %c0_i32_0 = arith.constant 0 : i32
    %c0_i32_1 = arith.constant 0 : i32
    return %c0_i32, %c0_i32_0 : i32, i32
  }
  func.func @transform_3(%arg0: i32) -> (i32, i32) {
    %c0_i32 = arith.constant 0 : i32
    %c0_i32_0 = arith.constant 0 : i32
    %c0_i32_1 = arith.constant 0 : i32
    return %c0_i32, %c0_i32_0 : i32, i32
  }
  func.func @transform_4(%arg0: i32) -> (i32, i32) {
    %c0_i32 = arith.constant 0 : i32
    %c0_i32_0 = arith.constant 0 : i32
    %c0_i32_1 = arith.constant 0 : i32
    return %c0_i32, %c0_i32_0 : i32, i32
  }
  func.func @transform_5(%arg0: i32) -> (i32, i32) {
    %c0_i32 = arith.constant 0 : i32
    %c0_i32_0 = arith.constant 0 : i32
    %c0_i32_1 = arith.constant 0 : i32
    return %c0_i32, %c0_i32_0 : i32, i32
  }
  func.func @transform_6(%arg0: i32) -> (i32, i32) {
    %c0_i32 = arith.constant 0 : i32
    %c0_i32_0 = arith.constant 0 : i32
    %c0_i32_1 = arith.constant 0 : i32
    return %c0_i32, %c0_i32_0 : i32, i32
  }
  func.func @transform_7(%arg0: i32) -> (i32, i32) {
    %c0_i32 = arith.constant 0 : i32
    %c0_i32_0 = arith.constant 0 : i32
    %c0_i32_1 = arith.constant 0 : i32
    return %c0_i32, %c0_i32_0 : i32, i32
  }
  func.func @transform_8(%arg0: i32) -> (i32, i32) {
    %c0_i32 = arith.constant 0 : i32
    %c0_i32_0 = arith.constant 0 : i32
    %c0_i32_1 = arith.constant 0 : i32
    return %c0_i32, %c0_i32_0 : i32, i32
  }
  func.func @transform_9(%arg0: i32) -> (i32, i32) {
    %c0_i32 = arith.constant 0 : i32
    %c0_i32_0 = arith.constant 0 : i32
    %c0_i32_1 = arith.constant 0 : i32
    return %c0_i32, %c0_i32_0 : i32, i32
  }
  func.func @transform_10(%arg0: i32) -> (i32, i32) {
    %c0_i32 = arith.constant 0 : i32
    %c0_i32_0 = arith.constant 0 : i32
    %c0_i32_1 = arith.constant 0 : i32
    return %c0_i32, %c0_i32_0 : i32, i32
  }
  func.func @transform_11(%arg0: i32) -> (i32, i32) {
    %c0_i32 = arith.constant 0 : i32
    %c0_i32_0 = arith.constant 0 : i32
    %c0_i32_1 = arith.constant 0 : i32
    return %c0_i32, %c0_i32_0 : i32, i32
  }
  func.func @transform_12(%arg0: i32) -> (i32, i32) {
    %c0_i32 = arith.constant 0 : i32
    %c0_i32_0 = arith.constant 0 : i32
    %c0_i32_1 = arith.constant 0 : i32
    return %c0_i32, %c0_i32_0 : i32, i32
  }
  func.func @transform_13(%arg0: i32) -> (i32, i32) {
    %c0_i32 = arith.constant 0 : i32
    %c0_i32_0 = arith.constant 0 : i32
    %c0_i32_1 = arith.constant 0 : i32
    return %c0_i32, %c0_i32_0 : i32, i32
  }
  func.func @transform_14(%arg0: i32) -> (i32, i32) {
    %c0_i32 = arith.constant 0 : i32
    %c0_i32_0 = arith.constant 0 : i32
    return %arg0, %c0_i32 : i32, i32
  }
}

</mosaic_0001>

<bundles_post_ra>
// kernel: tpu_custom_call.1
= control target key start
LH: loop header
LB: loop body
LE: loop exit
PB: predicated region body
PF: predicated region fallthrough
CT: control target
= control target key end

     0   :  { %s2783_s0 = inlined_call_operand.hbm [shape: bf16[16,32], index: 0, kind: input, shape index: {}]   ;;  %s2784_s1 = inlined_call_operand.vmem [shape: f32[2,1,8], index: 1, kind: input, shape index: {}]   ;;  %s2785_s2 = inlined_call_operand.hbm [shape: bf16[32,96], index: 2, kind: input, shape index: {}]   ;;  %s2786_s3 = inlined_call_operand.hbm [shape: f32[1,96], index: 3, kind: input, shape index: {}]   ;;  %s2787_s4 = inlined_call_operand.hbm [shape: bf16[32,32], index: 4, kind: input, shape index: {}]   ;;  %s2788_s5 = inlined_call_operand.hbm [shape: f32[1,32], index: 5, kind: input, shape index: {}]   ;;  %s2789_s6 = inlined_call_operand.hbm [shape: f32[1,32], index: 6, kind: input, shape index: {}]   ;;  %s2790_s7 = inlined_call_operand.hbm [shape: f32[1,32], index: 7, kind: input, shape index: {}]   ;;  %s2791_s8 = inlined_call_operand.vmem [shape: bf16[32,32], index: 8, kind: input, shape index: {}]   ;;  %s2792_s9 = inlined_call_operand.hbm [shape: f32[1,32], index: 9, kind: input, shape index: {}]   ;;  %s2793_s10 = inlined_call_operand.vmem [shape: bf16[32,32], index: 10, kind: input, shape index: {}]   ;;  %s2794_s11 = inlined_call_operand.vmem [shape: f32[1,32], index: 11, kind: input, shape index: {}]   ;;  %s2795_s12 = inlined_call_operand.vmem [shape: f32[1,32], index: 12, kind: input, shape index: {}]   ;;  %s2796_s13 = inlined_call_operand.vmem [shape: f32[1,32], index: 13, kind: input, shape index: {}]   ;;  %s2797_s14 = inlined_call_operand.hbm [shape: bf16[16,32], index: 14, kind: output, shape index: {}]  }
   0x1   :  { %2804 = sst [smem:[#allocation24_spill]] %s2783_s0 }
   0x2   :  { %2805 = sst [smem:[#allocation25_spill]] %s2784_s1 }
   0x3   :  { %2806 = sst [smem:[#allocation26_spill]] %s2785_s2 }
   0x4   :  { %2807 = sst [smem:[#allocation27_spill]] %s2786_s3 }
   0x5   :  { %2808 = sst [smem:[#allocation28_spill]] %s2791_s8 }
   0x6   :  { %2809 = sst [smem:[#allocation29_spill]] %s2793_s10 }
   0x7   :  { %2810 = sst [smem:[#allocation30_spill]] %s2794_s11 }
   0x8   :  { %2811 = sst [smem:[#allocation31_spill]] %s2795_s12 }
   0x9   :  { %2812 = sst [smem:[#allocation32_spill]] %s2796_s13 }
   0xa   :  { %2813 = sst [smem:[#allocation33_spill]] %s2797_s14 }
   0xb   :  { %19 = vsyncpa [#allocation4], 0 }
   0xc   :  { %21 = vsyncpa [#allocation4 + $0x1], 0 }
   0xd   :  { %22 = vsyncpa [#allocation7], 0 }
   0xe   :  { %23 = vsyncpa [#allocation10], 0 }
   0xf   :  { %24 = vsyncpa [#allocation13], 0 }
  0x10   :  { %25 = vsyncpa [#allocation16], 0 }
  0x11   :  { %26 = vsyncpa [#allocation5], 0 }
  0x12   :  { %28 = vsyncpa [#allocation5 + $0x1], 0  ;;  %s2326_s29 = smov 0   ;;  %s2328_s30 = smov 0  }
  0x13   :  { %s2330_s15 = smov 0   ;;  %s2332_s16 = smov 0  }
  0x14 LB: > { %s2224_s17 = smov [#allocation6]   ;;  %s2347_s19 = sadd.s32 4294967295, %s2222_s16   ;;  %s2222_s16 = sphi %s2332_s16, %s2847_s16   ;;  %s2218_s15 = sphi %s2330_s15, %s2846_s15   ;;  %s2214_s30 = sphi %s2328_s30, %s2845_s30   ;;  %s2210_s29 = sphi %s2326_s29, %s2844_s29  }
  0x15   : > { %s381_s18 = sshll.u32 %s2224_s17, 4  ;;  %p1579_p0 = scmp.ge.s32.totalorder %s2222_s16, 1  ;;  %s2352_s18 = int_to_ptr.vmem [resolvable:$true] %s381_s18 }
  0x16   : > { %p2801_p1 = scmp.eq.s32.totalorder %s2347_s19, 0  ;;  %p369_p2 = scmp.lt.s32.totalorder %s2222_s16, 3 }
  0x17   : > { %s2225_s21 = smov [#allocation9]   ;;  %s2226_s24 = smov [#allocation12]  }
  0x18   : > { %p2354_p3 = pnand %p1579_p0, %p369_p2  ;;  %s405_s22 = sshll.u32 %s2225_s21, 4  ;;  %s2367_s22 = int_to_ptr.vmem [resolvable:$true] %s405_s22 }
  0x19   : > { %s430_s25 = sshll.u32 %s2226_s24, 4  ;;  %s2816_s2 = sld [smem:[#allocation26_spill]]  ;;  %s2369_s25 = int_to_ptr.vmem [resolvable:$true] %s430_s25 }
  0x1a   : > { %s2814_s20 = scalar_select %p2354_p3, 1, 0 }
  0x1b   : > { %p1779_p5 = pneg %p2354_p3 }
  0x1d   : > { %p2363_p6 = pnand %p1779_p5, %p2801_p1 }
  0x1f   : > { %s1914_s28 = scalar_lea.hbm %s2816_s2, 256  ;;  %p2379_p8 = pneg %p2363_p6 }
  0x20   : > { %p1915_p7 = scmp.ne.s32.totalorder %s2816_s2, %s1914_s28  ;;  %p1921_p11 = scmp.lt.u32.totalorder %s1914_s28, %s2816_s2 }
  0x22   : > { %p1917_p9 = pnand %p2379_p8, %p1915_p7 }
  0x24   : > { %p1918_p10 = pneg %p1917_p9 }
  0x26   : > { %p1923_p12 = pnand %p1921_p11, %p1918_p10 }
  0x28   : > { %1926 = shalt.err (!%p1923_p12)
}
  0x29   : > { %s1927_s14 = scalar_lea.vmem %s2352_s18, 256  ;;  %p1935_p5 = scmp.lt.s32.totalorder %s2352_s18, %s2352_s18 }
  0x2a   : > { %p1928_p13 = scmp.ne.s32.totalorder %s2352_s18, %s1927_s14  ;;  %p1936_p4 = scmp.lt.s32.totalorder %s1927_s14, %s1927_s14 }
  0x2c   : > { %p1930_p0 = pnand %p1928_p13, %p2379_p8  ;;  %p1937_p7 = por %p1936_p4, %p1935_p5 }
  0x2e   : > { %p1931_p2 = pneg %p1930_p0 }
  0x30   : > { %p1938_p9 = pnand %p1937_p7, %p1931_p2 }
  0x32   : > { %1941 = shalt.err (!%p1938_p9)
}
  0x33   : > { %s2227_s26 = smov 64   ;;  %s2228_s13 = smov 4  }
  0x34   : > { %1782 = dma.hbm_to_vmem [thread:$0]  (!%p2363_p6), %s2816_s2, 256, %s2352_s18, [#allocation7], %s2227_s26, %s2227_s26, %s2228_s13  }
  0x35   : > { %s1942_s12 = scalar_lea.hbm %s2787_s4, 256 }
  0x36   : > { %p1943_p4 = scmp.ne.s32.totalorder %s2787_s4, %s1942_s12  ;;  %p1949_p12 = scmp.lt.u32.totalorder %s1942_s12, %s2787_s4 }
  0x38   : > { %p1945_p10 = pnand %p1943_p4, %p2379_p8 }
  0x3a   : > { %p1946_p11 = pneg %p1945_p10 }
  0x3c   : > { %p1951_p13 = pnand %p1949_p12, %p1946_p11 }
  0x3e   : > { %1954 = shalt.err (!%p1951_p13)
}
  0x3f   : > { %s1955_s18 = scalar_lea.vmem %s2367_s22, 256  ;;  %p1963_p7 = scmp.lt.s32.totalorder %s2367_s22, %s2367_s22 }
  0x40   : > { %p1956_p0 = scmp.ne.s32.totalorder %s2367_s22, %s1955_s18  ;;  %p1964_p9 = scmp.lt.s32.totalorder %s1955_s18, %s1955_s18 }
  0x42   : > { %p1958_p2 = pnand %p1956_p0, %p2379_p8  ;;  %p1965_p4 = por %p1964_p9, %p1963_p7 }
  0x44   : > { %p1959_p5 = pneg %p1958_p2 }
  0x46   : > { %p1966_p10 = pnand %p1965_p4, %p1959_p5 }
  0x48   : > { %1969 = shalt.err (!%p1966_p10)
}
  0x49   : > { %1788 = dma.hbm_to_vmem [thread:$0]  (!%p2363_p6), %s2787_s4, 256, %s2367_s22, [#allocation10], %s2227_s26, %s2227_s26, %s2228_s13  }
  0x4a   : > { %s1970_s27 = scalar_lea.hbm %s2789_s6, 16 }
  0x4b   : > { %p1971_p11 = scmp.ne.s32.totalorder %s2789_s6, %s1970_s27  ;;  %p1977_p0 = scmp.lt.u32.totalorder %s1970_s27, %s2789_s6 }
  0x4d   : > { %p1973_p12 = pnand %p1971_p11, %p2379_p8 }
  0x4f   : > { %p1974_p13 = pneg %p1973_p12 }
  0x51   : > { %p1979_p2 = pnand %p1977_p0, %p1974_p13 }
  0x53   : > { %1982 = shalt.err (!%p1979_p2)
}
  0x54   : > { %s1983_s22 = scalar_lea.vmem %s2369_s25, 16  ;;  %s1990_s26 = scalar_lea.vmem %s2369_s25, 32 }
  0x55   : > { %p1984_p5 = scmp.ne.s32.totalorder %s2369_s25, %s1983_s22  ;;  %p1991_p4 = scmp.lt.s32.totalorder %s2369_s25, %s2369_s25 }
  0x56   : > { %p1992_p10 = scmp.lt.s32.totalorder %s1990_s26, %s1983_s22 }
  0x57   : > { %p1986_p7 = pnand %p1984_p5, %p2379_p8 }
  0x58   : > { %p1993_p11 = por %p1992_p10, %p1991_p4 }
  0x59   : > { %p1987_p9 = pneg %p1986_p7 }
  0x5b   : > { %p1994_p12 = pnand %p1993_p11, %p1987_p9 }
  0x5d   : > { %1997 = shalt.err (!%p1994_p12)
}
  0x5e   : > { %1794 = dma.hbm_to_vmem [thread:$0]  (!%p2363_p6), %s2789_s6, 16, %s2369_s25, [#allocation13]  }
  0x5f   : > { %s2229_s8 = smov [#allocation8]   ;;  %s2230_s11 = smov [#allocation11]  }
  0x60   : > { %s395_s10 = sshll.u32 %s2229_s8, 4  ;;  %s419_s12 = sshll.u32 %s2230_s11, 4  ;;  %s396_s10 = int_to_ptr.vmem [resolvable:$true] %s395_s10  ;;  %s420_s12 = int_to_ptr.vmem [resolvable:$true] %s419_s12 }
  0x61   : > { %s2818_s3 = sld [smem:[#allocation27_spill]] }
  0x67   : > { %s1998_s17 = scalar_lea.hbm %s2818_s3, 16 }
  0x68   : > { %p1999_p13 = scmp.ne.s32.totalorder %s2818_s3, %s1998_s17  ;;  %p2005_p5 = scmp.lt.u32.totalorder %s1998_s17, %s2818_s3 }
  0x6a   : > { %p2001_p0 = pnand %p1999_p13, %p2379_p8 }
  0x6c   : > { %p2002_p2 = pneg %p2001_p0 }
  0x6e   : > { %p2007_p7 = pnand %p2005_p5, %p2002_p2 }
  0x70   : > { %2010 = shalt.err (!%p2007_p7)
}
  0x71   : > { %s2011_s25 = scalar_lea.vmem %s396_s10, 16  ;;  %s2018_s13 = scalar_lea.vmem %s396_s10, 32 }
  0x72   : > { %p2012_p9 = scmp.ne.s32.totalorder %s396_s10, %s2011_s25  ;;  %p2019_p11 = scmp.lt.s32.totalorder %s396_s10, %s396_s10 }
  0x73   : > { %p2020_p12 = scmp.lt.s32.totalorder %s2018_s13, %s2011_s25 }
  0x74   : > { %p2014_p4 = pnand %p2012_p9, %p2379_p8 }
  0x75   : > { %p2021_p1 = por %p2020_p12, %p2019_p11 }
  0x76   : > { %p2015_p10 = pneg %p2014_p4 }
  0x78   : > { %p2022_p3 = pnand %p2021_p1, %p2015_p10 }
  0x7a   : > { %2025 = shalt.err (!%p2022_p3)
}
  0x7b   : > { %1785 = dma.hbm_to_vmem [thread:$0]  (!%p2363_p6), %s2818_s3, 16, %s396_s10, [#allocation7]  }
  0x7c   : > { %s2026_s28 = scalar_lea.hbm %s2788_s5, 16 }
  0x7d   : > { %p2027_p13 = scmp.ne.s32.totalorder %s2788_s5, %s2026_s28  ;;  %p2033_p3 = scmp.lt.u32.totalorder %s2026_s28, %s2788_s5 }
  0x7f   : > { %p2029_p0 = pnand %p2027_p13, %p2379_p8 }
  0x81   : > { %p2030_p1 = pneg %p2029_p0 }
  0x83   : > { %p2035_p2 = pnand %p2033_p3, %p2030_p1 }
  0x85   : > { %2038 = shalt.err (!%p2035_p2)
}
  0x86   : > { %s2039_s26 = scalar_lea.vmem %s420_s12, 16  ;;  %s2046_s10 = scalar_lea.vmem %s420_s12, 32 }
  0x87   : > { %p2040_p5 = scmp.ne.s32.totalorder %s420_s12, %s2039_s26  ;;  %p2047_p4 = scmp.lt.s32.totalorder %s420_s12, %s420_s12 }
  0x88   : > { %p2048_p10 = scmp.lt.s32.totalorder %s2046_s10, %s2039_s26 }
  0x89   : > { %p2042_p7 = pnand %p2040_p5, %p2379_p8 }
  0x8a   : > { %p2049_p11 = por %p2048_p10, %p2047_p4 }
  0x8b   : > { %p2043_p9 = pneg %p2042_p7 }
  0x8d   : > { %p2050_p12 = pnand %p2049_p11, %p2043_p9 }
  0x8f   : > { %2053 = shalt.err (!%p2050_p12)
}
  0x90   : > { %1791 = dma.hbm_to_vmem [thread:$0]  (!%p2363_p6), %s2788_s5, 16, %s420_s12, [#allocation10]  }
  0x91   : > { %s2231_s18 = smov [#allocation14]   ;;  %s2232_s11 = smov [#allocation15]  }
  0x92   : > { %s441_s8 = sshll.u32 %s2231_s18, 4  ;;  %s455_s27 = sshll.u32 %s2232_s11, 4  ;;  %s442_s8 = int_to_ptr.vmem [resolvable:$true] %s441_s8  ;;  %s456_s27 = int_to_ptr.vmem [resolvable:$true] %s455_s27 }
  0x93   : > { %s2054_s24 = scalar_lea.hbm %s2790_s7, 16 }
  0x94   : > { %p2055_p13 = scmp.ne.s32.totalorder %s2790_s7, %s2054_s24  ;;  %p2061_p3 = scmp.lt.u32.totalorder %s2054_s24, %s2790_s7 }
  0x96   : > { %p2057_p0 = pnand %p2055_p13, %p2379_p8 }
  0x98   : > { %p2058_p1 = pneg %p2057_p0 }
  0x9a   : > { %p2063_p2 = pnand %p2061_p3, %p2058_p1 }
  0x9c   : > { %2066 = shalt.err (!%p2063_p2)
}
  0x9d   : > { %s2067_s12 = scalar_lea.vmem %s442_s8, 16  ;;  %s2074_s25 = scalar_lea.vmem %s442_s8, 32 }
  0x9e   : > { %p2068_p5 = scmp.ne.s32.totalorder %s442_s8, %s2067_s12  ;;  %p2075_p4 = scmp.lt.s32.totalorder %s442_s8, %s442_s8 }
  0x9f   : > { %p2076_p10 = scmp.lt.s32.totalorder %s2074_s25, %s2067_s12 }
  0xa0   : > { %p2070_p7 = pnand %p2068_p5, %p2379_p8 }
  0xa1   : > { %p2077_p11 = por %p2076_p10, %p2075_p4 }
  0xa2   : > { %p2071_p9 = pneg %p2070_p7 }
  0xa4   : > { %p2078_p12 = pnand %p2077_p11, %p2071_p9 }
  0xa6   : > { %2081 = shalt.err (!%p2078_p12)
}
  0xa7   : > { %1797 = dma.hbm_to_vmem [thread:$0]  (!%p2363_p6), %s2790_s7, 16, %s442_s8, [#allocation13]  }
  0xa8   : > { %s2082_s17 = scalar_lea.hbm %s2792_s9, 16 }
  0xa9   : > { %p2083_p13 = scmp.ne.s32.totalorder %s2792_s9, %s2082_s17  ;;  %p2089_p3 = scmp.lt.u32.totalorder %s2082_s17, %s2792_s9 }
  0xab   : > { %p2085_p0 = pnand %p2083_p13, %p2379_p8 }
  0xad   : > { %p2086_p1 = pneg %p2085_p0 }
  0xaf   : > { %p2091_p2 = pnand %p2089_p3, %p2086_p1 }
  0xb1   : > { %2094 = shalt.err (!%p2091_p2)
}
  0xb2   : > { %s2095_s10 = scalar_lea.vmem %s456_s27, 16  ;;  %s2102_s8 = scalar_lea.vmem %s456_s27, 32 }
  0xb3   : > { %p2096_p5 = scmp.ne.s32.totalorder %s456_s27, %s2095_s10  ;;  %p2103_p4 = scmp.lt.s32.totalorder %s456_s27, %s456_s27 }
  0xb4   : > { %p2104_p10 = scmp.lt.s32.totalorder %s2102_s8, %s2095_s10 }
  0xb5   : > { %p2098_p7 = pnand %p2096_p5, %p2379_p8 }
  0xb6   : > { %p2105_p11 = por %p2104_p10, %p2103_p4 }
  0xb7   : > { %p2099_p9 = pneg %p2098_p7 }
  0xb9   : > { %p2106_p12 = pnand %p2105_p11, %p2099_p9 }
  0xbb   : > { %2109 = shalt.err (!%p2106_p12)
}
  0xbc   : > { %1800 = dma.hbm_to_vmem [thread:$0]  (!%p2363_p6), %s2792_s9, 16, %s456_s27, [#allocation16]  }
  0xbd   : > { %s1578_s21 = sadd.s32 4294967294, %s2222_s16   ;;  %s2521_s23 = sadd.s32 1, %s2222_s16  }
  0xbe   : > { %s41_s13 = sadd.s32 1, %s2218_s15  ;;  %s38_s18 = ssub.s32 %s2222_s16, %s2521_s23 }
  0xbf   : > { %p48_p8 = scmp.ne.s32.totalorder %s2218_s15, %s2214_s30  ;;  %p39_p13 = scmp.eq.s32.totalorder %s38_s18, 0 }
  0xc0   : > { %p49_p0 = scmp.eq.s32.totalorder %s2222_s16, 0  ;;  %p54_p1 = scmp.ne.s32.totalorder %s2214_s30, %s2210_s29 }
  0xc1   : > { %p356_p3 = scmp.eq.s32.totalorder %s2347_s19, 1  ;;  %p2819_p5 = scmp.eq.s32.totalorder %s2347_s19, 0 }
  0xc2   : > { %s2533_s11 = scalar_select %p39_p13, %s2218_s15, %s41_s13  }
  0xc3   : > { %p50_p2 = por %p49_p0, %p48_p8  ;;  %p2537_p7 = por %p2819_p5, %p54_p1 }
  0xc4   : > { %p2541_p6 = por %p356_p3, %p48_p8  ;;  %p362_p9 = scmp.eq.s32.totalorder %s1578_s21, 1 }
  0xc5   : > { %p1816_p4 = scmp.lt.s32.totalorder %s2222_s16, 2  ;;  %s478_s17 = sand.u32 1, %s2218_s15  }
  0xc6   : > { %s2821_s27 = scalar_select %p2541_p6, 1, 0 }
  0xc7   : > { %p2547_p10 = por %p362_p9, %p54_p1  ;;  %s1588_s14 = sshll.u32 %s478_s17, 2 }
  0xc8   : > { %s1589_s22 = sshll.u32 %s2222_s16, 6  ;;  %s2823_s0 = sld [smem:[#allocation24_spill]] }
  0xc9   : > { %s2822_s24 = scalar_select %p2547_p10, 1, 0 }
  0xca   : > { %s482_s12 = scalar_lea.vmem [#allocation3], %s1588_s14  ;;  %p2557_p11 = pnand %p1816_p4, %p50_p2 }
  0xcb   : > { %s489_s25 = sshll.u32 %s482_s12, 4  ;;  %s479_s13 = scalar_lea.sflag [#allocation4], %s478_s17  ;;  %s2561_s25 = int_to_ptr.vmem [resolvable:$true] %s489_s25 }
  0xcc   : > { %p2112_p8 = pneg %p2557_p11 }
  0xce   : > { %s2555_s8 = scalar_lea.hbm %s2823_s0, %s1589_s22  ;;  %s2115_s26 = scalar_lea.hbm %s2823_s0, 128 }
  0xcf   : > { %s2110_s18 = scalar_lea.hbm %s2555_s8, 64  ;;  %p2116_p1 = scmp.lt.u32.totalorder %s2555_s8, %s2823_s0 }
  0xd0   : > { %p2111_p12 = scmp.ne.s32.totalorder %s2555_s8, %s2110_s18  ;;  %p2117_p3 = scmp.lt.u32.totalorder %s2115_s26, %s2110_s18 }
  0xd1   : > { %p2119_p5 = scmp.lt.u32.totalorder %s2110_s18, %s2555_s8 }
  0xd2   : > { %p2113_p13 = pnand %p2112_p8, %p2111_p12  ;;  %p2118_p2 = por %p2117_p3, %p2116_p1 }
  0xd4   : > { %p2114_p0 = pneg %p2113_p13  ;;  %p2120_p9 = por %p2119_p5, %p2118_p2 }
  0xd6   : > { %p2121_p4 = pnand %p2120_p9, %p2114_p0 }
  0xd8   : > { %2124 = shalt.err (!%p2121_p4)
}
  0xd9   : > { %s2125_s17 = scalar_lea.vmem %s2561_s25, 64  ;;  %s2233_s22 = smov [#allocation3]  }
  0xda   : > { %p2126_p12 = scmp.ne.s32.totalorder %s2561_s25, %s2125_s17  ;;  %s2130_s14 = sshll.u32 %s2233_s22, 4  ;;  %s2131_s14 = int_to_ptr.vmem [resolvable:$false] %s2130_s14 }
  0xdb   : > { %s2132_s10 = scalar_lea.vmem %s2131_s14, 128  ;;  %p2133_p6 = scmp.lt.s32.totalorder %s2561_s25, %s2131_s14 }
  0xdc   : > { %p2128_p13 = pnand %p2126_p12, %p2112_p8  ;;  %p2134_p1 = scmp.lt.s32.totalorder %s2132_s10, %s2125_s17 }
  0xde   : > { %p2129_p10 = pneg %p2128_p13  ;;  %p2135_p3 = por %p2134_p1, %p2133_p6 }
  0xe0   : > { %p2136_p2 = pnand %p2135_p3, %p2129_p10 }
  0xe2   : > { %2139 = shalt.err (!%p2136_p2)
}
  0xe3   : > { %1804 = dma.hbm_to_vmem [thread:$0]  (!%p2557_p11), %s2555_s8, 64, %s2561_s25, %s479_s13  }
  0xe4   : > { %p2825_p0 = scmp.ne.s32.totalorder %s2814_s20, 0 }
  0xe5   : > { %s2591_s18 = sand.u32 (!%p2825_p0), 1, %s2214_s30  }
  0xe6   : > { %504 = sbr.rel (%p2825_p0) target bundleno = 2689 (0xa81), region = 76  ;;  %s1591_s26 = sshll.u32 (!%p2825_p0), %s2591_s18, 2 }
  0xe7   : > { %s507_s12 = scalar_lea.sflag (!%p2825_p0), [#allocation4], %s2591_s18  ;;  %s510_s17 = scalar_lea.vmem (!%p2825_p0), [#allocation3], %s1591_s26 }
  0xed   : > { %2185 = dma.done.wait (%p2537_p7), %s507_s12, 64  }
  0xee   : > { %2187 = vsyncadd (%p2537_p7), %s507_s12, 4294967232  ;;  %p2826_p6 = scmp.eq.s32.totalorder %s2347_s19, 0 }
  0xf0   : > { %2189 = dma.done.wait (%p2826_p6), [#allocation7], 272   ;;  %p2827_p10 = pmov %p2826_p6 }
  0xf1   : > { %p2828_p11 = pmov %p2826_p6 }
  0xf2   : > { %2191 = vsyncadd (%p2827_p10), [#allocation7], 4294967024 }
  0xf3   : > { %2193 = dma.done.wait (%p2828_p11), [#allocation10], 272   ;;  %p2829_p8 = pmov %p2826_p6 }
  0xf4   : > { %p2830_p5 = pmov %p2826_p6 }
  0xf5   : > { %2195 = vsyncadd (%p2829_p8), [#allocation10], 4294967024 }
  0xf6   : > { %2197 = dma.done.wait (%p2830_p5), [#allocation13], 32   ;;  %p2831_p9 = pmov %p2830_p5 }
  0xf7   : > { %p2832_p7 = pmov %p2830_p5 }
  0xf8   : > { %2199 = vsyncadd (%p2831_p9), [#allocation13], 4294967264 }
  0xf9   : > { %2201 = dma.done.wait (%p2832_p7), [#allocation16], 16   ;;  %p2833_p4 = pmov %p2830_p5 }
  0xfa   : > { %v2234_v0 = vmov 0.0   ;;  %vm2235_vm0 = vmmov 0   ;;  %v1882_v1 = vld [vmem:[#allocation6] sm:$0xff]   ;;  %v1883_v2 = vld [vmem:[#allocation6 + $0x8] sm:$0xff]   ;;  %vm615_vm1 = vcmask 261120   ;;  %s2236_s20 = smov 120  }
  0xfb   : > { %2203 = vsyncadd (%p2833_p4), [#allocation16], 4294967280  ;;  %1667 = vmatprep.subr.bf16.mxu0 %v2234_v0  ;;  %1671 = vmatprep.mubr.msk.bf16.mxu0 %vm2235_vm0, %v2234_v0  ;;  %v2624_v3 = vld [vmem:[%s510_s17] sm:$0xf]  ;;  %v1600_v4 = vld [vmem:[#allocation8] ss:$0 sm:$0xff] }
  0xfc   : > { %1675 = vmatprep.subr.bf16.mxu1 %v2234_v0  ;;  %1677 = vmatprep.mubr.msk.bf16.mxu1 %vm2235_vm0, %v2234_v0  ;;  %s2237_s28 = smov 96   ;;  %s2238_s8 = smov 80   ;;  %vm670_vm2 = vcmask 64512   ;;  %vm732_vm3 = vcmask 1043456   ;;  %vm779_vm4 = vcmask 60416   ;;  %vm898_vm5 = vcmask 126016  }
  0xfd   : > { %1668 = vmatpush3.bf16.msra.mxu0 %v1882_v1  ;;  %s2239_s25 = smov 88   ;;  %s2240_s21 = smov 72   ;;  %vm1017_vm6 = vcmask 191616   ;;  %vm1136_vm7 = vcmask 257216   ;;  %vm1416_vm12 = vcmask 257024  }
  0xfe   : > { %1669 = vmatprep.subr.bf16.mxu0 %v2234_v0  ;;  %s2241_s13 = smov 112   ;;  %s2242_s22 = smov 104  }
  0xff   : > { %p586_p12 = scmp.lt.s32.totalorder %s2347_s19, 1  ;;  %s2834_s1 = sld [smem:[#allocation25_spill]] }
 0x100   : > { %s2835_s12 = sld [smem:[#allocation28_spill]]  ;;  %s2837_s10 = sld [smem:[#allocation30_spill]] }
 0x101   : > { %1670 = vmatpush3.bf16.msra.mxu0 %v1883_v2  ;;  %s587_s14 = scalar_select %p586_p12, %s2347_s19, 1 }
 0x102   : > { %1681 = vmatprep.subr.bf16.mxu0 %v2234_v0  ;;  %s2840_s2 = sld [smem:[#allocation33_spill]]  ;;  %p2841_p1 = scmp.ne.s32.totalorder %s2821_s27, 0 }
 0x104   : > { %1672 = vmatmul.mubr.msk.bf16.vlgmr.msra.gmra.mrb[0].mxu0 %vm615_vm1, %v2624_v3 }
 0x105   : > { %1683 = vmatprep.mubr.msk.bf16.mxu0 %vm2235_vm0, %v2234_v0  ;;  %s588_s17 = scalar_lea.vmem %s2834_s1, %s587_s14  ;;  %s585_s14 = scalar_lea.vmem [#allocation17], %s1591_s26 }
 0x106   : > { %v1604_v22 = vld [vmem:[%s588_s17] ss:$0 sm:$0xff]  ;;  %s1419_s17 = scalar_lea.sflag [#allocation5], %s2591_s18 }
 0x1d7   : > { %v653_v5 = vpop.f32.mrb[0].mxu0 }
 0x1d8   : > { %v654_v6 = vadd.f32 %v1600_v4, %v653_v5  ;;  %v1673_v7 = vpop.f32.mrb[1].mxu0 }
 0x1d9   : > { %v656_v8 = vpop.f32.mrb[2].mxu0 }
 0x1da   : > { %v2631_v9 = vpack.c.bf16 %v654_v6, %v654_v6  ;;  %v1674_v10 = vpop.f32.mrb[3].mxu0 }
 0x1dc   : > { %781 = vrot.lane.b32.xlu1 %v2631_v9, %s2236_s20  ;;  %668 = vrot.lane.b32.xlu0 %v2631_v9, %s2237_s28  ;;  %s2243_s20 = smov 56   ;;  %s2244_s28 = smov 64  }
 0x1e0   : > { %902 = vrot.lane.b32.xlu1 %v2631_v9, %s2238_s8  ;;  %783 = vrot.lane.b32.xlu0 %v2631_v9, %s2239_s25  ;;  %s2245_s8 = smov 40   ;;  %s2246_s25 = smov 48  }
 0x1e4   : > { %1021 = vrot.lane.b32.xlu1 %v2631_v9, %s2240_s21  ;;  %900 = vrot.lane.b32.xlu0 %v2631_v9, %s2241_s13  ;;  %s2247_s21 = smov 8   ;;  %s2248_s13 = smov 16  }
 0x1e8   : > { %1019 = vrot.lane.b32.xlu0 %v2631_v9, %s2242_s22  ;;  %s2249_s22 = smov 24  }
 0x24e   : > { %v669_v11 = vpop.permute.xlu0 %668  ;;  %v782_v14 = vpop.permute.xlu1 %781 }
 0x24f   : > { %v675_v12 = vsel %vm670_vm2, %v669_v11, 0 }
 0x250   : > { %1676 = vmatpush3.bf16.xpose.msra.mxu1 %v675_v12 }
 0x251   : > { %1687 = vmatprep.subr.bf16.mxu1 %v2234_v0 }
 0x252   : > { %v784_v13 = vpop.permute.xlu0 %783  ;;  %v903_v16 = vpop.permute.xlu1 %902 }
 0x253   : > { %v789_v15 = vsel %vm670_vm2, %v784_v13, 0  ;;  %v908_v17 = vsel %vm670_vm2, %v903_v16, 0 }
 0x256   : > { %v1022_v18 = vpop.permute.xlu1 %1021  ;;  %v901_v19 = vpop.permute.xlu0 %900 }
 0x257   : > { %1678 = vmatmul.mubr.msk.bf16.vlgmr.msra.gmra.mrb[0].mxu1 %vm670_vm2, %v2631_v9  ;;  %v1027_v20 = vsel %vm670_vm2, %v1022_v18, 0 }
 0x258   : > { %1688 = vmatpush3.bf16.xpose.msra.mxu1 %v789_v15  ;;  %1689 = vmatprep.mubr.msk.bf16.mxu1 %vm2235_vm0, %v2234_v0 }
 0x259   : > { %1699 = vmatprep.subr.bf16.mxu1 %v2234_v0 }
 0x25a   : > { %v1020_v21 = vpop.permute.xlu0 %1019 }
 0x25f   : > { %1690 = vmatmul.mubr.msk.bf16.vlgmr.msra.gmra.mrb[4].mxu1 %vm670_vm2, %v782_v14 }
 0x260   : > { %1700 = vmatpush3.bf16.xpose.msra.mxu1 %v908_v17  ;;  %1701 = vmatprep.mubr.msk.bf16.mxu1 %vm2235_vm0, %v2234_v0 }
 0x261   : > { %1711 = vmatprep.subr.bf16.mxu1 %v2234_v0 }
 0x267   : > { %1702 = vmatmul.mubr.msk.bf16.vlgmr.msra.gmra.mrb[8].mxu1 %vm670_vm2, %v901_v19 }
 0x268   : > { %1712 = vmatpush3.bf16.xpose.msra.mxu1 %v1027_v20  ;;  %1713 = vmatprep.mubr.msk.bf16.mxu1 %vm2235_vm0, %v2234_v0 }
 0x269   : > { %1723 = vmatprep.subr.bf16.mxu1 %v2234_v0 }
 0x26f   : > { %1714 = vmatmul.mubr.msk.bf16.vlgmr.msra.gmra.mrb[12].mxu1 %vm670_vm2, %v1020_v21 }
 0x270   : > { %1727 = vmatprep.mubr.msk.bf16.mxu1 %vm2235_vm0, %v2234_v0 }
 0x32a   : > { %v711_v23 = vpop.f32.mrb[0].mxu1 }
 0x32b   : > { %v712_v24 = vadd.f32 %v1604_v22, %v711_v23  ;;  %v1679_v25 = vpop.f32.mrb[1].mxu1 }
 0x32c   : > { %v714_v26 = vpop.f32.mrb[2].mxu1 }
 0x32d   : > { %v1680_v27 = vpop.f32.mrb[3].mxu1  ;;  %v717_v28 = vsel %vm670_vm2, %v712_v24, -inf }
 0x32e   : > { %718 = vmax.xlane.f32.xlu1 %v717_v28 }
 0x332   : > { %v825_v29 = vpop.f32.mrb[4].mxu1 }
 0x333   : > { %v826_v30 = vadd.f32 %v1604_v22, %v825_v29  ;;  %v1691_v31 = vpop.f32.mrb[5].mxu1 }
 0x334   : > { %v828_v32 = vpop.f32.mrb[6].mxu1 }
 0x335   : > { %v1692_v33 = vpop.f32.mrb[7].mxu1  ;;  %v831_v34 = vsel %vm670_vm2, %v826_v30, -inf }
 0x336   : > { %832 = vmax.xlane.f32.xlu0 %v831_v34 }
 0x33a   : > { %v944_v35 = vpop.f32.mrb[8].mxu1 }
 0x33b   : > { %v945_v36 = vadd.f32 %v1604_v22, %v944_v35  ;;  %v1703_v37 = vpop.f32.mrb[9].mxu1 }
 0x33c   : > { %v947_v38 = vpop.f32.mrb[10].mxu1  ;;  %v1884_v37 = vld [vmem:[#allocation9] sm:$0xff]  }
 0x33d   : > { %v1704_v39 = vpop.f32.mrb[11].mxu1  ;;  %v950_v40 = vsel %vm670_vm2, %v945_v36, -inf  ;;  %1724 = vmatpush3.bf16.msra.mxu1 %v1884_v37 }
 0x33e   : > { %951 = vmax.xlane.f32.xlu0 %v950_v40  ;;  %1725 = vmatprep.subr.bf16.mxu1 %v2234_v0 }
 0x33f   : > { %841 = vrot.lane.b32.xlu1 %v2631_v9, %s2243_s20 }
 0x342   : > { %v1063_v41 = vpop.f32.mrb[12].mxu1 }
 0x343   : > { %v1715_v42 = vpop.f32.mrb[13].mxu1  ;;  %v1064_v45 = vadd.f32 %v1604_v22, %v1063_v41  ;;  %v1885_v41 = vld [vmem:[#allocation9 + $0x8] sm:$0xff]  }
 0x344   : > { %v1066_v43 = vpop.f32.mrb[14].mxu1  ;;  %1726 = vmatpush3.bf16.msra.mxu1 %v1885_v41 }
 0x345   : > { %v1716_v44 = vpop.f32.mrb[15].mxu1  ;;  %v1069_v46 = vsel %vm670_vm2, %v1064_v45, -inf  ;;  %1739 = vmatprep.subr.bf16.mxu1 %v2234_v0 }
 0x354   : > { %727 = vrot.lane.b32.xlu0 %v2631_v9, %s2244_s28  ;;  %s2838_s28 = sld [smem:[#allocation31_spill]] }
 0x358   : > { %1079 = vrot.lane.b32.xlu0 %v2631_v9, %s2245_s8 }
 0x363   : > { %1070 = vmax.xlane.f32.xlu1 %v1069_v46 }
 0x374   : > { %960 = vrot.lane.b32.xlu1 %v2631_v9, %s2246_s25  ;;  %s2836_s25 = sld [smem:[#allocation29_spill]] }
 0x3bb   : > { %v719_v47 = vpop.xlane.xlu1 %718 }
 0x3bc   : > { %v720_v48 = vsub.f32 %v712_v24, %v719_v47 }
 0x3be   : > { %v721_v49 = vmul.f32 1.442695, %v720_v48 }
 0x3bf   : > { %v842_v59 = vpop.permute.xlu1 %841 }
 0x3c0   : > { %1890 = vpow2.f32 %v721_v49  ;;  %v847_v63 = vsel %vm732_vm3, %v842_v59, 0 }
 0x3c3   : > { %v833_v50 = vpop.xlane.xlu0 %832 }
 0x3c4   : > { %v834_v51 = vsub.f32 %v826_v30, %v833_v50 }
 0x3c6   : > { %v835_v52 = vmul.f32 1.442695, %v834_v51 }
 0x3c8   : > { %1892 = vpow2.f32 %v835_v52 }
 0x3ca   : > { %v1891_v56 = vpop.eup %1890 }
 0x3cb   : > { %v952_v53 = vpop.xlane.xlu0 %951  ;;  %v726_v61 = vpack.c.bf16 %v1891_v56, %v1891_v56  ;;  %v723_v1 = vsel %vm670_vm2, %v1891_v56, 0.0  ;;  %v591_v56 = vunpack.c.l.bf16 %v2624_v3  ;;  %v1886_v3 = vld [vmem:[%s2835_s12] sm:$0xff]  }
 0x3cc   : > { %v953_v54 = vsub.f32 %v945_v36, %v952_v53 }
 0x3ce   : > { %v954_v55 = vmul.f32 1.442695, %v953_v54 }
 0x3cf   : > { %v728_v57 = vpop.permute.xlu0 %727 }
 0x3d0   : > { %1894 = vpow2.f32 %v954_v55  ;;  %v734_v58 = vsel %vm732_vm3, %v728_v57, 0  ;;  %v1616_v55 = vld [vmem:[#allocation11] ss:$0 sm:$0xff] }
 0x3d1   : > { %1682 = vmatpush3.bf16.msra.mxu0 %v734_v58 }
 0x3d2   : > { %v1893_v60 = vpop.eup %1892  ;;  %1693 = vmatprep.subr.bf16.mxu0 %v2234_v0 }
 0x3d3   : > { %v837_v62 = vsel %vm670_vm2, %v1893_v60, 0.0  ;;  %v840_v4 = vpack.c.bf16 %v1893_v60, %v1893_v60  ;;  %v1080_v11 = vpop.permute.xlu0 %1079 }
 0x3d4   : > { %838 = vadd.xlane.f32.xlu1 %v837_v62  ;;  %1684 = vmatmul.mubr.msk.bf16.vlgmr.msra.gmra.mrb[4].mxu0 %vm670_vm2, %v726_v61  ;;  %v1085_v13 = vsel %vm732_vm3, %v1080_v11, 0 }
 0x3d5   : > { %1694 = vmatpush3.bf16.msra.mxu0 %v847_v63  ;;  %1695 = vmatprep.mubr.msk.bf16.mxu0 %vm2235_vm0, %v2234_v0 }
 0x3d6   : > { %1705 = vmatprep.subr.bf16.mxu0 %v2234_v0 }
 0x3d8   : > { %724 = vadd.xlane.f32.xlu1 %v723_v1 }
 0x3da   : > { %v1895_v2 = vpop.eup %1894 }
 0x3db   : > { %v956_v5 = vsel %vm670_vm2, %v1895_v2, 0.0  ;;  %v959_v12 = vpack.c.bf16 %v1895_v2, %v1895_v2 }
 0x3dc   : > { %957 = vadd.xlane.f32.xlu0 %v956_v5  ;;  %1696 = vmatmul.mubr.msk.bf16.vlgmr.msra.gmra.mrb[8].mxu0 %vm670_vm2, %v840_v4 }
 0x3dd   : > { %1707 = vmatprep.mubr.msk.bf16.mxu0 %vm2235_vm0, %v2234_v0 }
 0x3f0   : > { %v1071_v6 = vpop.xlane.xlu1 %1070 }
 0x3f1   : > { %v1072_v7 = vsub.f32 %v1064_v45, %v1071_v6 }
 0x3f3   : > { %v1073_v8 = vmul.f32 1.442695, %v1072_v7  ;;  %v1887_v7 = vld [vmem:[%s2835_s12 + $0x8] sm:$0xff]  }
 0x3f4   : > { %v961_v9 = vpop.permute.xlu1 %960 }
 0x3f5   : > { %1896 = vpow2.f32 %v1073_v8  ;;  %v966_v10 = vsel %vm732_vm3, %v961_v9, 0 }
 0x3f6   : > { %1706 = vmatpush3.bf16.msra.mxu0 %v966_v10 }
 0x3f7   : > { %1717 = vmatprep.subr.bf16.mxu0 %v2234_v0 }
 0x3f9   : > { %1708 = vmatmul.mubr.msk.bf16.vlgmr.msra.gmra.mrb[12].mxu0 %vm670_vm2, %v959_v12 }
 0x3fa   : > { %1718 = vmatpush3.bf16.msra.mxu0 %v1085_v13  ;;  %1719 = vmatprep.mubr.msk.bf16.mxu0 %vm2235_vm0, %v2234_v0 }
 0x3fb   : > { %1731 = vmatprep.subr.bf16.mxu0 %v2234_v0 }
 0x3ff   : > { %v1897_v14 = vpop.eup %1896 }
 0x400   : > { %v1075_v15 = vsel %vm670_vm2, %v1897_v14, 0.0  ;;  %v1078_v16 = vpack.c.bf16 %v1897_v14, %v1897_v14 }
 0x401   : > { %1076 = vadd.xlane.f32.xlu0 %v1075_v15 }
 0x402   : > { %1720 = vmatmul.mubr.msk.bf16.vlgmr.msra.gmra.mrb[16].mxu0 %vm670_vm2, %v1078_v16 }
 0x403   : > { %1735 = vmatprep.mubr.msk.bf16.mxu0 %vm2235_vm0, %v2234_v0  ;;  %1732 = vmatpush3.bf16.msra.mxu0 %v1886_v3 }
 0x404   : > { %1733 = vmatprep.subr.bf16.mxu0 %v2234_v0 }
 0x407   : > { %1734 = vmatpush3.bf16.msra.mxu0 %v1887_v7 }
 0x461   : > { %v839_v17 = vpop.xlane.xlu1 %838 }
 0x465   : > { %v725_v18 = vpop.xlane.xlu1 %724 }
 0x466   : > { %1898 = vrcp.f32 %v725_v18 }
 0x467   : > { %1900 = vrcp.f32 %v839_v17  ;;  %v1620_v17 = vld [vmem:[#allocation12] ss:$0 sm:$0xff] }
 0x469   : > { %v958_v33 = vpop.xlane.xlu0 %957 }
 0x46a   : > { %1902 = vrcp.f32 %v958_v33  ;;  %v1626_v33 = vld [vmem:[%s2837_s10] ss:$0 sm:$0xff]  ;;  %s1432_s10 = sshll.u32 %s585_s14, 4  ;;  %s2741_s10 = int_to_ptr.vmem [resolvable:$true] %s1432_s10 }
 0x46b   : > { %s2140_s20 = scalar_lea.vmem %s2741_s10, 64 }
 0x46c   : > { %p2141_p13 = scmp.ne.s32.totalorder %s2741_s10, %s2140_s20 }
 0x46e   : > { %p2142_p3 = pnand %p2141_p13, %p2841_p1 }
 0x470   : > { %v1899_v19 = vpop.eup %1898  ;;  %p2143_p2 = pneg %p2142_p3 }
 0x471   : > { %v1901_v26 = vpop.eup %1900 }
 0x474   : > { %v1903_v35 = vpop.eup %1902 }
 0x48e   : > { %v1077_v34 = vpop.xlane.xlu0 %1076 }
 0x48f   : > { %1904 = vrcp.f32 %v1077_v34 }
 0x499   : > { %v1905_v44 = vpop.eup %1904 }
 0x4a7   : > { %v770_v20 = vpop.f32.mrb[4].mxu0 }
 0x4a8   : > { %v777_v21 = vmul.f32 %v1899_v19, %v770_v20  ;;  %v1685_v22 = vpop.f32.mrb[5].mxu0  ;;  %v1621_v19 = vld [vmem:[#allocation14] ss:$0 sm:$0xff] }
 0x4a9   : > { %v773_v23 = vpop.f32.mrb[6].mxu0 }
 0x4aa   : > { %v778_v24 = vpack.c.bf16 %v777_v21, %v777_v21  ;;  %v1686_v25 = vpop.f32.mrb[7].mxu0  ;;  %v1888_v23 = vld [vmem:[%s2836_s25] sm:$0xff]  }
 0x4ab   : > { %v1622_v25 = vld [vmem:[#allocation15] ss:$0 sm:$0xff] }
 0x4ac   : > { %780 = vst.msk [vmem:[#allocation2] sm:$0xf] %vm779_vm4, %v778_v24  ;;  %v1889_v24 = vld [vmem:[%s2836_s25 + $0x8] sm:$0xff]  }
 0x4af   : > { %v883_v27 = vpop.f32.mrb[8].mxu0 }
 0x4b0   : > { %v890_v28 = vmul.f32 %v1901_v26, %v883_v27  ;;  %v1697_v29 = vpop.f32.mrb[9].mxu0 }
 0x4b1   : > { %v886_v30 = vpop.f32.mrb[10].mxu0 }
 0x4b2   : > { %v1636_v31 = vpack.c.bf16 %v890_v28, %v890_v28  ;;  %v1698_v32 = vpop.f32.mrb[11].mxu0 }
 0x4b4   : > { %895 = vrot.lane.b32.xlu0 %v1636_v31, %s2247_s21 }
 0x4cc   : > { %v1002_v36 = vpop.f32.mrb[12].mxu0 }
 0x4cd   : > { %v1009_v38 = vmul.f32 %v1903_v35, %v1002_v36  ;;  %v1709_v39 = vpop.f32.mrb[13].mxu0 }
 0x4ce   : > { %v1005_v40 = vpop.f32.mrb[14].mxu0 }
 0x4cf   : > { %v1637_v42 = vpack.c.bf16 %v1009_v38, %v1009_v38  ;;  %v1710_v43 = vpop.f32.mrb[15].mxu0 }
 0x4d1   : > { %1014 = vrot.lane.b32.xlu1 %v1637_v42, %s2248_s13  ;;  %s2839_s13 = sld [smem:[#allocation32_spill]] }
 0x4d5   : > { %v1121_v45 = vpop.f32.mrb[16].mxu0 }
 0x4d6   : > { %v1128_v46 = vmul.f32 %v1905_v44, %v1121_v45  ;;  %v1721_v47 = vpop.f32.mrb[17].mxu0 }
 0x4d7   : > { %v1124_v48 = vpop.f32.mrb[18].mxu0 }
 0x4d8   : > { %v1638_v49 = vpack.c.bf16 %v1128_v46, %v1128_v46  ;;  %v1722_v50 = vpop.f32.mrb[19].mxu0 }
 0x4da   : > { %1133 = vrot.lane.b32.xlu1 %v1638_v49, %s2249_s22  ;;  %s1633_s22 = sshll.u32 %s2347_s19, 6  ;;  %s2250_s19 = smov [#allocation17]  }
 0x4db   : > { %s2739_s3 = scalar_lea.hbm %s2840_s2, %s1633_s22  ;;  %s2144_s26 = sshll.u32 %s2250_s19, 4  ;;  %s2145_s26 = int_to_ptr.vmem [resolvable:$false] %s2144_s26 }
 0x4dc   : > { %p2147_p0 = scmp.lt.s32.totalorder %s2741_s10, %s2145_s26 }
 0x526   : > { %v896_v51 = vpop.permute.xlu0 %895 }
 0x527   : > { %899 = vst.msk [vmem:[#allocation2] sm:$0xf] %vm898_vm5, %v896_v51 }
 0x543   : > { %v1015_v52 = vpop.permute.xlu1 %1014 }
 0x544   : > { %1018 = vst.msk [vmem:[#allocation2] sm:$0xf] %vm1017_vm6, %v1015_v52 }
 0x54c   : > { %v1134_v53 = vpop.permute.xlu1 %1133 }
 0x54d   : > { %1137 = vst.msk [vmem:[#allocation2] sm:$0xf] %vm1136_vm7, %v1134_v53 }
 0x554   : > { %v1138_v54 = vld [vmem:[#allocation2] sm:$0xf] }
 0x555   : > { %1728 = vmatmul.mubr.msk.bf16.vlgmr.msra.gmra.mrb[16].mxu1 %vm615_vm1, %v1138_v54  ;;  %v1630_v54 = vld [vmem:[%s2838_s28] ss:$0 sm:$0xff]  ;;  %s2146_s28 = scalar_lea.vmem %s2145_s26, 128 }
 0x556   : > { %1743 = vmatprep.mubr.msk.bf16.mxu1 %vm2235_vm0, %v2234_v0  ;;  %1740 = vmatpush3.bf16.msra.mxu1 %v1888_v23  ;;  %p2148_p6 = scmp.lt.s32.totalorder %s2146_s28, %s2140_s20 }
 0x557   : > { %1741 = vmatprep.subr.bf16.mxu1 %v2234_v0 }
 0x558   : > { %p2149_p10 = por %p2148_p6, %p2147_p0 }
 0x55a   : > { %1742 = vmatpush3.bf16.msra.mxu1 %v1889_v24  ;;  %p2150_p11 = pnand %p2149_p10, %p2143_p2 }
 0x628   : > { %v1199_v57 = vpop.f32.mrb[16].mxu1 }
 0x629   : > { %v1200_v58 = vadd.f32 %v1616_v55, %v1199_v57  ;;  %v1729_v59 = vpop.f32.mrb[17].mxu1 }
 0x62a   : > { %v1202_v60 = vpop.f32.mrb[18].mxu1 }
 0x62b   : > { %v1730_v61 = vpop.f32.mrb[19].mxu1  ;;  %v1205_v62 = vadd.f32 %v1200_v58, %v591_v56  ;;  %v1631_v56 = vld [vmem:[%s2839_s13] ss:$0 sm:$0xff] }
 0x62d   : > { %v1208_v63 = vsel %vm615_vm1, %v1205_v62, 0.0 }
 0x62e   : > { %1209 = vadd.xlane.f32.xlu0 %v1208_v63 }
 0x6bb   : > { %v1210_v1 = vpop.xlane.xlu0 %1209 }
 0x6bc   : > { %v1212_v2 = vmul.f32 0.03125, %v1210_v1 }
 0x6be   : > { %v1213_v4 = vsub.f32 %v1205_v62, %v1212_v2 }
 0x6c0   : > { %v1214_v5 = vmul.f32 %v1213_v4, %v1213_v4 }
 0x6c2   : > { %v1215_v6 = vsel %vm615_vm1, %v1214_v5, 0.0 }
 0x6c3   : > { %1216 = vadd.xlane.f32.xlu1 %v1215_v6 }
 0x750   : > { %v1217_v8 = vpop.xlane.xlu1 %1216 }
 0x751   : > { %v1218_v9 = vmul.f32 0.032258064, %v1217_v8 }
 0x753   : > { %1906 = vrsqrt.f32 %v1218_v9  ;;  %vm1221_vm8 = vcmp.eq.f32.partialorder %v1218_v9, inf  ;;  %v1224_v12 = vand.u32 2147483648, %v1218_v9  ;;  %vm1223_vm9 = vcmp.eq.f32.partialorder %v1218_v9, 0.0 }
 0x75d   : > { %v1907_v10 = vpop.eup %1906 }
 0x75e   : > { %v1220_v11 = vmul.f32 %v1907_v10, %v1218_v9 }
 0x760   : > { %v1222_v13 = vsel %vm1221_vm8, %v1218_v9, %v1220_v11 }
 0x761   : > { %v1225_v14 = vsel %vm1223_vm9, %v1224_v12, %v1222_v13 }
 0x762   : > { %v1226_v15 = vadd.f32 1e-06, %v1225_v14 }
 0x764   : > { %1908 = vrcp.f32 %v1226_v15 }
 0x76e   : > { %v1909_v16 = vpop.eup %1908 }
 0x76f   : > { %v1228_v18 = vmul.f32 %v1909_v16, %v1213_v4 }
 0x771   : > { %v1235_v20 = vmul.f32 %v1620_v17, %v1228_v18 }
 0x773   : > { %v1242_v21 = vadd.f32 %v1621_v19, %v1235_v20 }
 0x775   : > { %v1243_v22 = vpack.c.bf16 %v1242_v21, %v1242_v21 }
 0x777   : > { %1736 = vmatmul.mubr.msk.bf16.vlgmr.msra.gmra.mrb[20].mxu0 %vm615_vm1, %v1243_v22 }
 0x84a   : > { %v1304_v26 = vpop.f32.mrb[20].mxu0 }
 0x84b   : > { %v1305_v27 = vadd.f32 %v1622_v25, %v1304_v26  ;;  %v1737_v28 = vpop.f32.mrb[21].mxu0 }
 0x84c   : > { %v1307_v29 = vpop.f32.mrb[22].mxu0 }
 0x84d   : > { %v1310_v30 = vmax.f32 %v1305_v27, 0.0  ;;  %v1738_v31 = vpop.f32.mrb[23].mxu0 }
 0x84f   : > { %v1311_v32 = vpack.c.bf16 %v1310_v30, %v1310_v30 }
 0x851   : > { %1744 = vmatmul.mubr.msk.bf16.vlgmr.msra.gmra.mrb[20].mxu1 %vm615_vm1, %v1311_v32 }
 0x924   : > { %v1372_v0 = vpop.f32.mrb[20].mxu1 }
 0x925   : > { %v1373_v34 = vadd.f32 %v1626_v33, %v1372_v0  ;;  %v1745_v35 = vpop.f32.mrb[21].mxu1 }
 0x926   : > { %v1375_v36 = vpop.f32.mrb[22].mxu1 }
 0x927   : > { %v1746_v37 = vpop.f32.mrb[23].mxu1  ;;  %v1378_v38 = vadd.f32 %v1373_v34, %v1242_v21 }
 0x929   : > { %v1381_v39 = vsel %vm615_vm1, %v1378_v38, 0.0 }
 0x92a   : > { %1382 = vadd.xlane.f32.xlu0 %v1381_v39 }
 0x9b7   : > { %v1383_v40 = vpop.xlane.xlu0 %1382 }
 0x9b8   : > { %v1384_v41 = vmul.f32 0.03125, %v1383_v40 }
 0x9ba   : > { %v1385_v42 = vsub.f32 %v1378_v38, %v1384_v41 }
 0x9bc   : > { %v1386_v43 = vmul.f32 %v1385_v42, %v1385_v42 }
 0x9be   : > { %v1387_v44 = vsel %vm615_vm1, %v1386_v43, 0.0 }
 0x9bf   : > { %1388 = vadd.xlane.f32.xlu0 %v1387_v44 }
 0xa4c   : > { %v1389_v45 = vpop.xlane.xlu0 %1388 }
 0xa4d   : > { %v1390_v46 = vmul.f32 0.032258064, %v1389_v45 }
 0xa4f   : > { %1910 = vrsqrt.f32 %v1390_v46  ;;  %vm1393_vm10 = vcmp.eq.f32.partialorder %v1390_v46, inf  ;;  %v1396_v49 = vand.u32 2147483648, %v1390_v46  ;;  %vm1395_vm11 = vcmp.eq.f32.partialorder %v1390_v46, 0.0 }
 0xa59   : > { %v1911_v47 = vpop.eup %1910 }
 0xa5a   : > { %v1392_v48 = vmul.f32 %v1911_v47, %v1390_v46 }
 0xa5c   : > { %v1394_v50 = vsel %vm1393_vm10, %v1390_v46, %v1392_v48 }
 0xa5d   : > { %v1397_v51 = vsel %vm1395_vm11, %v1396_v49, %v1394_v50 }
 0xa5e   : > { %v1398_v52 = vadd.f32 1e-06, %v1397_v51 }
 0xa60   : > { %1912 = vrcp.f32 %v1398_v52 }
 0xa6a   : > { %v1913_v53 = vpop.eup %1912 }
 0xa6b   : > { %v1400_v55 = vmul.f32 %v1913_v53, %v1385_v42 }
 0xa6d   : > { %v1407_v57 = vmul.f32 %v1630_v54, %v1400_v55 }
 0xa6f   : > { %v1414_v58 = vadd.f32 %v1631_v56, %v1407_v57 }
 0xa71   : > { %v1415_v59 = vpack.c.bf16 %v1414_v58, %v1414_v58 }
 0xa73   : > { %1417 = vst.msk [vmem:[%s585_s14] sm:$0xf] %vm1416_vm12, %v1415_v59 }
 0xa74   : > { %2153 = shalt.err (!%p2150_p11)
}
 0xa75   : > { %s2154_s0 = scalar_lea.hbm %s2739_s3, 64  ;;  %s2158_s8 = scalar_lea.hbm %s2840_s2, 128 }
 0xa76   : > { %p2155_p8 = scmp.ne.s32.totalorder %s2739_s3, %s2154_s0  ;;  %p2159_p7 = scmp.lt.u32.totalorder %s2739_s3, %s2840_s2 }
 0xa77   : > { %p2160_p4 = scmp.lt.u32.totalorder %s2158_s8, %s2154_s0  ;;  %p2162_p13 = scmp.lt.u32.totalorder %s2154_s0, %s2739_s3 }
 0xa78   : > { %p2156_p5 = pnand %p2155_p8, %p2841_p1 }
 0xa79   : > { %p2161_p12 = por %p2160_p4, %p2159_p7 }
 0xa7a   : > { %p2157_p9 = pneg %p2156_p5 }
 0xa7b   : > { %p2163_p3 = por %p2162_p13, %p2161_p12 }
 0xa7d   : > { %p2164_p2 = pnand %p2163_p3, %p2157_p9 }
 0xa7f   : > { %2167 = shalt.err (!%p2164_p2)
}
 0xa80   : > { %1777 = dma.vmem_to_hbm [thread:$0]  (%p2841_p1), %s2741_s10, 64, %s2739_s3, %s1419_s17  }
 0xa81 PF: > { %s1444_s22 = sand.u32 1, %s2210_s29   ;;  %p2842_p0 = scmp.ne.s32.totalorder %s2822_s24, 0 }
 0xa82   : > { %p2843_p6 = scmp.ge.s32.totalorder %s2222_s16, 2  ;;  %s1445_s14 = scalar_lea.sflag [#allocation5], %s1444_s22 }
 0xa84   : > { %p1806_p10 = pnand %p2843_p6, %p2842_p0 }
 0xa86   : > { %2205 = dma.done.wait (!%p1806_p10), %s1445_s14, 64  }
 0xa87   : > { %2207 = vsyncadd (!%p1806_p10), %s1445_s14, 4294967232  ;;  %p31_p11 = scmp.ge.s32.totalorder %s2521_s23, 4   ;;  %s2844_s29 = smov %s2214_s30 }
 0xa88   : > { %s2845_s30 = smov %s2218_s15  ;;  %s2846_s15 = smov %s2533_s11 }
 0xa89   : > { %s2847_s16 = smov %s2521_s23  ;;  %33 = sbr.rel (!%p31_p11) target bundleno = 20 (0x14), region = 152 }
 0xa90   :  { %1450 = vsyncpa [#allocation4], 1 }
 0xa91   :  { %1452 = vsyncpa [#allocation4 + $0x1], 1 }
 0xa92   :  { %1453 = vsyncpa [#allocation7], 1 }
 0xa93   :  { %1454 = vsyncpa [#allocation10], 1 }
 0xa94   :  { %1455 = vsyncpa [#allocation13], 1 }
 0xa95   :  { %1456 = vsyncpa [#allocation16], 1 }
 0xa96   :  { %1457 = vsyncpa [#allocation5], 1 }
 0xa97   :  { %1459 = vsyncpa [#allocation5 + $0x1], 1 }

// kernel: tpu_custom_call.1
= control target key start
LH: loop header
LB: loop body
LE: loop exit
PB: predicated region body
PF: predicated region fallthrough
CT: control target
= control target key end

     0   :  { %s2783_s0 = inlined_call_operand.hbm [shape: bf16[16,32], index: 0, kind: input, shape index: {}]   ;;  %s2784_s1 = inlined_call_operand.vmem [shape: f32[2,1,8], index: 1, kind: input, shape index: {}]   ;;  %s2785_s2 = inlined_call_operand.hbm [shape: bf16[32,96], index: 2, kind: input, shape index: {}]   ;;  %s2786_s3 = inlined_call_operand.hbm [shape: f32[1,96], index: 3, kind: input, shape index: {}]   ;;  %s2787_s4 = inlined_call_operand.hbm [shape: bf16[32,32], index: 4, kind: input, shape index: {}]   ;;  %s2788_s5 = inlined_call_operand.hbm [shape: f32[1,32], index: 5, kind: input, shape index: {}]   ;;  %s2789_s6 = inlined_call_operand.hbm [shape: f32[1,32], index: 6, kind: input, shape index: {}]   ;;  %s2790_s7 = inlined_call_operand.hbm [shape: f32[1,32], index: 7, kind: input, shape index: {}]   ;;  %s2791_s8 = inlined_call_operand.vmem [shape: bf16[32,32], index: 8, kind: input, shape index: {}]   ;;  %s2792_s9 = inlined_call_operand.hbm [shape: f32[1,32], index: 9, kind: input, shape index: {}]   ;;  %s2793_s10 = inlined_call_operand.vmem [shape: bf16[32,32], index: 10, kind: input, shape index: {}]   ;;  %s2794_s11 = inlined_call_operand.vmem [shape: f32[1,32], index: 11, kind: input, shape index: {}]   ;;  %s2795_s12 = inlined_call_operand.vmem [shape: f32[1,32], index: 12, kind: input, shape index: {}]   ;;  %s2796_s13 = inlined_call_operand.vmem [shape: f32[1,32], index: 13, kind: input, shape index: {}]   ;;  %s2797_s14 = inlined_call_operand.hbm [shape: bf16[16,32], index: 14, kind: output, shape index: {}]  }
   0x1   :  { %2804 = sst [smem:[#allocation24_spill]] %s2783_s0 }
   0x2   :  { %2805 = sst [smem:[#allocation25_spill]] %s2784_s1 }
   0x3   :  { %2806 = sst [smem:[#allocation26_spill]] %s2785_s2 }
   0x4   :  { %2807 = sst [smem:[#allocation27_spill]] %s2786_s3 }
   0x5   :  { %2808 = sst [smem:[#allocation28_spill]] %s2791_s8 }
   0x6   :  { %2809 = sst [smem:[#allocation29_spill]] %s2793_s10 }
   0x7   :  { %2810 = sst [smem:[#allocation30_spill]] %s2794_s11 }
   0x8   :  { %2811 = sst [smem:[#allocation31_spill]] %s2795_s12 }
   0x9   :  { %2812 = sst [smem:[#allocation32_spill]] %s2796_s13 }
   0xa   :  { %2813 = sst [smem:[#allocation33_spill]] %s2797_s14 }
   0xb   :  { %19 = vsyncpa [#allocation4], 0 }
   0xc   :  { %21 = vsyncpa [#allocation4 + $0x1], 0 }
   0xd   :  { %22 = vsyncpa [#allocation7], 0 }
   0xe   :  { %23 = vsyncpa [#allocation10], 0 }
   0xf   :  { %24 = vsyncpa [#allocation13], 0 }
  0x10   :  { %25 = vsyncpa [#allocation16], 0 }
  0x11   :  { %26 = vsyncpa [#allocation5], 0 }
  0x12   :  { %28 = vsyncpa [#allocation5 + $0x1], 0  ;;  %s2326_s29 = smov 0   ;;  %s2328_s30 = smov 0  }
  0x13   :  { %s2330_s15 = smov 0   ;;  %s2332_s16 = smov 0  }
  0x14 LB: > { %s2224_s17 = smov [#allocation6]   ;;  %s2347_s19 = sadd.s32 4294967295, %s2222_s16   ;;  %s2222_s16 = sphi %s2332_s16, %s2847_s16   ;;  %s2218_s15 = sphi %s2330_s15, %s2846_s15   ;;  %s2214_s30 = sphi %s2328_s30, %s2845_s30   ;;  %s2210_s29 = sphi %s2326_s29, %s2844_s29  }
  0x15   : > { %s381_s18 = sshll.u32 %s2224_s17, 4  ;;  %p1579_p0 = scmp.ge.s32.totalorder %s2222_s16, 1  ;;  %s2352_s18 = int_to_ptr.vmem [resolvable:$true] %s381_s18 }
  0x16   : > { %p2801_p1 = scmp.eq.s32.totalorder %s2347_s19, 0  ;;  %p369_p2 = scmp.lt.s32.totalorder %s2222_s16, 3 }
  0x17   : > { %s2225_s21 = smov [#allocation9]   ;;  %s2226_s24 = smov [#allocation12]  }
  0x18   : > { %p2354_p3 = pnand %p1579_p0, %p369_p2  ;;  %s405_s22 = sshll.u32 %s2225_s21, 4  ;;  %s2367_s22 = int_to_ptr.vmem [resolvable:$true] %s405_s22 }
  0x19   : > { %s430_s25 = sshll.u32 %s2226_s24, 4  ;;  %s2816_s2 = sld [smem:[#allocation26_spill]]  ;;  %s2369_s25 = int_to_ptr.vmem [resolvable:$true] %s430_s25 }
  0x1a   : > { %s2814_s20 = scalar_select %p2354_p3, 1, 0 }
  0x1b   : > { %p1779_p5 = pneg %p2354_p3 }
  0x1d   : > { %p2363_p6 = pnand %p1779_p5, %p2801_p1 }
  0x1f   : > { %s1914_s28 = scalar_lea.hbm %s2816_s2, 256  ;;  %p2379_p8 = pneg %p2363_p6 }
  0x20   : > { %p1915_p7 = scmp.ne.s32.totalorder %s2816_s2, %s1914_s28  ;;  %p1921_p11 = scmp.lt.u32.totalorder %s1914_s28, %s2816_s2 }
  0x22   : > { %p1917_p9 = pnand %p2379_p8, %p1915_p7 }
  0x24   : > { %p1918_p10 = pneg %p1917_p9 }
  0x26   : > { %p1923_p12 = pnand %p1921_p11, %p1918_p10 }
  0x28   : > { %1926 = shalt.err (!%p1923_p12)
}
  0x29   : > { %s1927_s14 = scalar_lea.vmem %s2352_s18, 256  ;;  %p1935_p5 = scmp.lt.s32.totalorder %s2352_s18, %s2352_s18 }
  0x2a   : > { %p1928_p13 = scmp.ne.s32.totalorder %s2352_s18, %s1927_s14  ;;  %p1936_p4 = scmp.lt.s32.totalorder %s1927_s14, %s1927_s14 }
  0x2c   : > { %p1930_p0 = pnand %p1928_p13, %p2379_p8  ;;  %p1937_p7 = por %p1936_p4, %p1935_p5 }
  0x2e   : > { %p1931_p2 = pneg %p1930_p0 }
  0x30   : > { %p1938_p9 = pnand %p1937_p7, %p1931_p2 }
  0x32   : > { %1941 = shalt.err (!%p1938_p9)
}
  0x33   : > { %s2227_s26 = smov 64   ;;  %s2228_s13 = smov 4  }
  0x34   : > { %1782 = dma.hbm_to_vmem [thread:$0]  (!%p2363_p6), %s2816_s2, 256, %s2352_s18, [#allocation7], %s2227_s26, %s2227_s26, %s2228_s13  }
  0x35   : > { %s1942_s12 = scalar_lea.hbm %s2787_s4, 256 }
  0x36   : > { %p1943_p4 = scmp.ne.s32.totalorder %s2787_s4, %s1942_s12  ;;  %p1949_p12 = scmp.lt.u32.totalorder %s1942_s12, %s2787_s4 }
  0x38   : > { %p1945_p10 = pnand %p1943_p4, %p2379_p8 }
  0x3a   : > { %p1946_p11 = pneg %p1945_p10 }
  0x3c   : > { %p1951_p13 = pnand %p1949_p12, %p1946_p11 }
  0x3e   : > { %1954 = shalt.err (!%p1951_p13)
}
  0x3f   : > { %s1955_s18 = scalar_lea.vmem %s2367_s22, 256  ;;  %p1963_p7 = scmp.lt.s32.totalorder %s2367_s22, %s2367_s22 }
  0x40   : > { %p1956_p0 = scmp.ne.s32.totalorder %s2367_s22, %s1955_s18  ;;  %p1964_p9 = scmp.lt.s32.totalorder %s1955_s18, %s1955_s18 }
  0x42   : > { %p1958_p2 = pnand %p1956_p0, %p2379_p8  ;;  %p1965_p4 = por %p1964_p9, %p1963_p7 }
  0x44   : > { %p1959_p5 = pneg %p1958_p2 }
  0x46   : > { %p1966_p10 = pnand %p1965_p4, %p1959_p5 }
  0x48   : > { %1969 = shalt.err (!%p1966_p10)
}
  0x49   : > { %1788 = dma.hbm_to_vmem [thread:$0]  (!%p2363_p6), %s2787_s4, 256, %s2367_s22, [#allocation10], %s2227_s26, %s2227_s26, %s2228_s13  }
  0x4a   : > { %s1970_s27 = scalar_lea.hbm %s2789_s6, 16 }
  0x4b   : > { %p1971_p11 = scmp.ne.s32.totalorder %s2789_s6, %s1970_s27  ;;  %p1977_p0 = scmp.lt.u32.totalorder %s1970_s27, %s2789_s6 }
  0x4d   : > { %p1973_p12 = pnand %p1971_p11, %p2379_p8 }
  0x4f   : > { %p1974_p13 = pneg %p1973_p12 }
  0x51   : > { %p1979_p2 = pnand %p1977_p0, %p1974_p13 }
  0x53   : > { %1982 = shalt.err (!%p1979_p2)
}
  0x54   : > { %s1983_s22 = scalar_lea.vmem %s2369_s25, 16  ;;  %s1990_s26 = scalar_lea.vmem %s2369_s25, 32 }
  0x55   : > { %p1984_p5 = scmp.ne.s32.totalorder %s2369_s25, %s1983_s22  ;;  %p1991_p4 = scmp.lt.s32.totalorder %s2369_s25, %s2369_s25 }
  0x56   : > { %p1992_p10 = scmp.lt.s32.totalorder %s1990_s26, %s1983_s22 }
  0x57   : > { %p1986_p7 = pnand %p1984_p5, %p2379_p8 }
  0x58   : > { %p1993_p11 = por %p1992_p10, %p1991_p4 }
  0x59   : > { %p1987_p9 = pneg %p1986_p7 }
  0x5b   : > { %p1994_p12 = pnand %p1993_p11, %p1987_p9 }
  0x5d   : > { %1997 = shalt.err (!%p1994_p12)
}
  0x5e   : > { %1794 = dma.hbm_to_vmem [thread:$0]  (!%p2363_p6), %s2789_s6, 16, %s2369_s25, [#allocation13]  }
  0x5f   : > { %s2229_s8 = smov [#allocation8]   ;;  %s2230_s11 = smov [#allocation11]  }
  0x60   : > { %s395_s10 = sshll.u32 %s2229_s8, 4  ;;  %s419_s12 = sshll.u32 %s2230_s11, 4  ;;  %s396_s10 = int_to_ptr.vmem [resolvable:$true] %s395_s10  ;;  %s420_s12 = int_to_ptr.vmem [resolvable:$true] %s419_s12 }
  0x61   : > { %s2818_s3 = sld [smem:[#allocation27_spill]] }
  0x67   : > { %s1998_s17 = scalar_lea.hbm %s2818_s3, 16 }
  0x68   : > { %p1999_p13 = scmp.ne.s32.totalorder %s2818_s3, %s1998_s17  ;;  %p2005_p5 = scmp.lt.u32.totalorder %s1998_s17, %s2818_s3 }
  0x6a   : > { %p2001_p0 = pnand %p1999_p13, %p2379_p8 }
  0x6c   : > { %p2002_p2 = pneg %p2001_p0 }
  0x6e   : > { %p2007_p7 = pnand %p2005_p5, %p2002_p2 }
  0x70   : > { %2010 = shalt.err (!%p2007_p7)
}
  0x71   : > { %s2011_s25 = scalar_lea.vmem %s396_s10, 16  ;;  %s2018_s13 = scalar_lea.vmem %s396_s10, 32 }
  0x72   : > { %p2012_p9 = scmp.ne.s32.totalorder %s396_s10, %s2011_s25  ;;  %p2019_p11 = scmp.lt.s32.totalorder %s396_s10, %s396_s10 }
  0x73   : > { %p2020_p12 = scmp.lt.s32.totalorder %s2018_s13, %s2011_s25 }
  0x74   : > { %p2014_p4 = pnand %p2012_p9, %p2379_p8 }
  0x75   : > { %p2021_p1 = por %p2020_p12, %p2019_p11 }
  0x76   : > { %p2015_p10 = pneg %p2014_p4 }
  0x78   : > { %p2022_p3 = pnand %p2021_p1, %p2015_p10 }
  0x7a   : > { %2025 = shalt.err (!%p2022_p3)
}
  0x7b   : > { %1785 = dma.hbm_to_vmem [thread:$0]  (!%p2363_p6), %s2818_s3, 16, %s396_s10, [#allocation7]  }
  0x7c   : > { %s2026_s28 = scalar_lea.hbm %s2788_s5, 16 }
  0x7d   : > { %p2027_p13 = scmp.ne.s32.totalorder %s2788_s5, %s2026_s28  ;;  %p2033_p3 = scmp.lt.u32.totalorder %s2026_s28, %s2788_s5 }
  0x7f   : > { %p2029_p0 = pnand %p2027_p13, %p2379_p8 }
  0x81   : > { %p2030_p1 = pneg %p2029_p0 }
  0x83   : > { %p2035_p2 = pnand %p2033_p3, %p2030_p1 }
  0x85   : > { %2038 = shalt.err (!%p2035_p2)
}
  0x86   : > { %s2039_s26 = scalar_lea.vmem %s420_s12, 16  ;;  %s2046_s10 = scalar_lea.vmem %s420_s12, 32 }
  0x87   : > { %p2040_p5 = scmp.ne.s32.totalorder %s420_s12, %s2039_s26  ;;  %p2047_p4 = scmp.lt.s32.totalorder %s420_s12, %s420_s12 }
  0x88   : > { %p2048_p10 = scmp.lt.s32.totalorder %s2046_s10, %s2039_s26 }
  0x89   : > { %p2042_p7 = pnand %p2040_p5, %p2379_p8 }
  0x8a   : > { %p2049_p11 = por %p2048_p10, %p2047_p4 }
  0x8b   : > { %p2043_p9 = pneg %p2042_p7 }
  0x8d   : > { %p2050_p12 = pnand %p2049_p11, %p2043_p9 }
  0x8f   : > { %2053 = shalt.err (!%p2050_p12)
}
  0x90   : > { %1791 = dma.hbm_to_vmem [thread:$0]  (!%p2363_p6), %s2788_s5, 16, %s420_s12, [#allocation10]  }
  0x91   : > { %s2231_s18 = smov [#allocation14]   ;;  %s2232_s11 = smov [#allocation15]  }
  0x92   : > { %s441_s8 = sshll.u32 %s2231_s18, 4  ;;  %s455_s27 = sshll.u32 %s2232_s11, 4  ;;  %s442_s8 = int_to_ptr.vmem [resolvable:$true] %s441_s8  ;;  %s456_s27 = int_to_ptr.vmem [resolvable:$true] %s455_s27 }
  0x93   : > { %s2054_s24 = scalar_lea.hbm %s2790_s7, 16 }
  0x94   : > { %p2055_p13 = scmp.ne.s32.totalorder %s2790_s7, %s2054_s24  ;;  %p2061_p3 = scmp.lt.u32.totalorder %s2054_s24, %s2790_s7 }
  0x96   : > { %p2057_p0 = pnand %p2055_p13, %p2379_p8 }
  0x98   : > { %p2058_p1 = pneg %p2057_p0 }
  0x9a   : > { %p2063_p2 = pnand %p2061_p3, %p2058_p1 }
  0x9c   : > { %2066 = shalt.err (!%p2063_p2)
}
  0x9d   : > { %s2067_s12 = scalar_lea.vmem %s442_s8, 16  ;;  %s2074_s25 = scalar_lea.vmem %s442_s8, 32 }
  0x9e   : > { %p2068_p5 = scmp.ne.s32.totalorder %s442_s8, %s2067_s12  ;;  %p2075_p4 = scmp.lt.s32.totalorder %s442_s8, %s442_s8 }
  0x9f   : > { %p2076_p10 = scmp.lt.s32.totalorder %s2074_s25, %s2067_s12 }
  0xa0   : > { %p2070_p7 = pnand %p2068_p5, %p2379_p8 }
  0xa1   : > { %p2077_p11 = por %p2076_p10, %p2075_p4 }
  0xa2   : > { %p2071_p9 = pneg %p2070_p7 }
  0xa4   : > { %p2078_p12 = pnand %p2077_p11, %p2071_p9 }
  0xa6   : > { %2081 = shalt.err (!%p2078_p12)
}
  0xa7   : > { %1797 = dma.hbm_to_vmem [thread:$0]  (!%p2363_p6), %s2790_s7, 16, %s442_s8, [#allocation13]  }
  0xa8   : > { %s2082_s17 = scalar_lea.hbm %s2792_s9, 16 }
  0xa9   : > { %p2083_p13 = scmp.ne.s32.totalorder %s2792_s9, %s2082_s17  ;;  %p2089_p3 = scmp.lt.u32.totalorder %s2082_s17, %s2792_s9 }
  0xab   : > { %p2085_p0 = pnand %p2083_p13, %p2379_p8 }
  0xad   : > { %p2086_p1 = pneg %p2085_p0 }
  0xaf   : > { %p2091_p2 = pnand %p2089_p3, %p2086_p1 }
  0xb1   : > { %2094 = shalt.err (!%p2091_p2)
}
  0xb2   : > { %s2095_s10 = scalar_lea.vmem %s456_s27, 16  ;;  %s2102_s8 = scalar_lea.vmem %s456_s27, 32 }
  0xb3   : > { %p2096_p5 = scmp.ne.s32.totalorder %s456_s27, %s2095_s10  ;;  %p2103_p4 = scmp.lt.s32.totalorder %s456_s27, %s456_s27 }
  0xb4   : > { %p2104_p10 = scmp.lt.s32.totalorder %s2102_s8, %s2095_s10 }
  0xb5   : > { %p2098_p7 = pnand %p2096_p5, %p2379_p8 }
  0xb6   : > { %p2105_p11 = por %p2104_p10, %p2103_p4 }
  0xb7   : > { %p2099_p9 = pneg %p2098_p7 }
  0xb9   : > { %p2106_p12 = pnand %p2105_p11, %p2099_p9 }
  0xbb   : > { %2109 = shalt.err (!%p2106_p12)
}
  0xbc   : > { %1800 = dma.hbm_to_vmem [thread:$0]  (!%p2363_p6), %s2792_s9, 16, %s456_s27, [#allocation16]  }
  0xbd   : > { %s1578_s21 = sadd.s32 4294967294, %s2222_s16   ;;  %s2521_s23 = sadd.s32 1, %s2222_s16  }
  0xbe   : > { %s41_s13 = sadd.s32 1, %s2218_s15  ;;  %s38_s18 = ssub.s32 %s2222_s16, %s2521_s23 }
  0xbf   : > { %p48_p8 = scmp.ne.s32.totalorder %s2218_s15, %s2214_s30  ;;  %p39_p13 = scmp.eq.s32.totalorder %s38_s18, 0 }
  0xc0   : > { %p49_p0 = scmp.eq.s32.totalorder %s2222_s16, 0  ;;  %p54_p1 = scmp.ne.s32.totalorder %s2214_s30, %s2210_s29 }
  0xc1   : > { %p356_p3 = scmp.eq.s32.totalorder %s2347_s19, 1  ;;  %p2819_p5 = scmp.eq.s32.totalorder %s2347_s19, 0 }
  0xc2   : > { %s2533_s11 = scalar_select %p39_p13, %s2218_s15, %s41_s13  }
  0xc3   : > { %p50_p2 = por %p49_p0, %p48_p8  ;;  %p2537_p7 = por %p2819_p5, %p54_p1 }
  0xc4   : > { %p2541_p6 = por %p356_p3, %p48_p8  ;;  %p362_p9 = scmp.eq.s32.totalorder %s1578_s21, 1 }
  0xc5   : > { %p1816_p4 = scmp.lt.s32.totalorder %s2222_s16, 2  ;;  %s478_s17 = sand.u32 1, %s2218_s15  }
  0xc6   : > { %s2821_s27 = scalar_select %p2541_p6, 1, 0 }
  0xc7   : > { %p2547_p10 = por %p362_p9, %p54_p1  ;;  %s1588_s14 = sshll.u32 %s478_s17, 2 }
  0xc8   : > { %s1589_s22 = sshll.u32 %s2222_s16, 6  ;;  %s2823_s0 = sld [smem:[#allocation24_spill]] }
  0xc9   : > { %s2822_s24 = scalar_select %p2547_p10, 1, 0 }
  0xca   : > { %s482_s12 = scalar_lea.vmem [#allocation3], %s1588_s14  ;;  %p2557_p11 = pnand %p1816_p4, %p50_p2 }
  0xcb   : > { %s489_s25 = sshll.u32 %s482_s12, 4  ;;  %s479_s13 = scalar_lea.sflag [#allocation4], %s478_s17  ;;  %s2561_s25 = int_to_ptr.vmem [resolvable:$true] %s489_s25 }
  0xcc   : > { %p2112_p8 = pneg %p2557_p11 }
  0xce   : > { %s2555_s8 = scalar_lea.hbm %s2823_s0, %s1589_s22  ;;  %s2115_s26 = scalar_lea.hbm %s2823_s0, 128 }
  0xcf   : > { %s2110_s18 = scalar_lea.hbm %s2555_s8, 64  ;;  %p2116_p1 = scmp.lt.u32.totalorder %s2555_s8, %s2823_s0 }
  0xd0   : > { %p2111_p12 = scmp.ne.s32.totalorder %s2555_s8, %s2110_s18  ;;  %p2117_p3 = scmp.lt.u32.totalorder %s2115_s26, %s2110_s18 }
  0xd1   : > { %p2119_p5 = scmp.lt.u32.totalorder %s2110_s18, %s2555_s8 }
  0xd2   : > { %p2113_p13 = pnand %p2112_p8, %p2111_p12  ;;  %p2118_p2 = por %p2117_p3, %p2116_p1 }
  0xd4   : > { %p2114_p0 = pneg %p2113_p13  ;;  %p2120_p9 = por %p2119_p5, %p2118_p2 }
  0xd6   : > { %p2121_p4 = pnand %p2120_p9, %p2114_p0 }
  0xd8   : > { %2124 = shalt.err (!%p2121_p4)
}
  0xd9   : > { %s2125_s17 = scalar_lea.vmem %s2561_s25, 64  ;;  %s2233_s22 = smov [#allocation3]  }
  0xda   : > { %p2126_p12 = scmp.ne.s32.totalorder %s2561_s25, %s2125_s17  ;;  %s2130_s14 = sshll.u32 %s2233_s22, 4  ;;  %s2131_s14 = int_to_ptr.vmem [resolvable:$false] %s2130_s14 }
  0xdb   : > { %s2132_s10 = scalar_lea.vmem %s2131_s14, 128  ;;  %p2133_p6 = scmp.lt.s32.totalorder %s2561_s25, %s2131_s14 }
  0xdc   : > { %p2128_p13 = pnand %p2126_p12, %p2112_p8  ;;  %p2134_p1 = scmp.lt.s32.totalorder %s2132_s10, %s2125_s17 }
  0xde   : > { %p2129_p10 = pneg %p2128_p13  ;;  %p2135_p3 = por %p2134_p1, %p2133_p6 }
  0xe0   : > { %p2136_p2 = pnand %p2135_p3, %p2129_p10 }
  0xe2   : > { %2139 = shalt.err (!%p2136_p2)
}
  0xe3   : > { %1804 = dma.hbm_to_vmem [thread:$0]  (!%p2557_p11), %s2555_s8, 64, %s2561_s25, %s479_s13  }
  0xe4   : > { %p2825_p0 = scmp.ne.s32.totalorder %s2814_s20, 0 }
  0xe5   : > { %s2591_s18 = sand.u32 (!%p2825_p0), 1, %s2214_s30  }
  0xe6   : > { %504 = sbr.rel (%p2825_p0) target bundleno = 2689 (0xa81), region = 76  ;;  %s1591_s26 = sshll.u32 (!%p2825_p0), %s2591_s18, 2 }
  0xe7   : > { %s507_s12 = scalar_lea.sflag (!%p2825_p0), [#allocation4], %s2591_s18  ;;  %s510_s17 = scalar_lea.vmem (!%p2825_p0), [#allocation3], %s1591_s26 }
  0xed   : > { %2185 = dma.done.wait (%p2537_p7), %s507_s12, 64  }
  0xee   : > { %2187 = vsyncadd (%p2537_p7), %s507_s12, 4294967232  ;;  %p2826_p6 = scmp.eq.s32.totalorder %s2347_s19, 0 }
  0xf0   : > { %2189 = dma.done.wait (%p2826_p6), [#allocation7], 272   ;;  %p2827_p10 = pmov %p2826_p6 }
  0xf1   : > { %p2828_p11 = pmov %p2826_p6 }
  0xf2   : > { %2191 = vsyncadd (%p2827_p10), [#allocation7], 4294967024 }
  0xf3   : > { %2193 = dma.done.wait (%p2828_p11), [#allocation10], 272   ;;  %p2829_p8 = pmov %p2826_p6 }
  0xf4   : > { %p2830_p5 = pmov %p2826_p6 }
  0xf5   : > { %2195 = vsyncadd (%p2829_p8), [#allocation10], 4294967024 }
  0xf6   : > { %2197 = dma.done.wait (%p2830_p5), [#allocation13], 32   ;;  %p2831_p9 = pmov %p2830_p5 }
  0xf7   : > { %p2832_p7 = pmov %p2830_p5 }
  0xf8   : > { %2199 = vsyncadd (%p2831_p9), [#allocation13], 4294967264 }
  0xf9   : > { %2201 = dma.done.wait (%p2832_p7), [#allocation16], 16   ;;  %p2833_p4 = pmov %p2830_p5 }
  0xfa   : > { %v2234_v0 = vmov 0.0   ;;  %vm2235_vm0 = vmmov 0   ;;  %v1882_v1 = vld [vmem:[#allocation6] sm:$0xff]   ;;  %v1883_v2 = vld [vmem:[#allocation6 + $0x8] sm:$0xff]   ;;  %vm615_vm1 = vcmask 261120   ;;  %s2236_s20 = smov 120  }
  0xfb   : > { %2203 = vsyncadd (%p2833_p4), [#allocation16], 4294967280  ;;  %1667 = vmatprep.subr.bf16.mxu0 %v2234_v0  ;;  %1671 = vmatprep.mubr.msk.bf16.mxu0 %vm2235_vm0, %v2234_v0  ;;  %v2624_v3 = vld [vmem:[%s510_s17] sm:$0xf]  ;;  %v1600_v4 = vld [vmem:[#allocation8] ss:$0 sm:$0xff] }
  0xfc   : > { %1675 = vmatprep.subr.bf16.mxu1 %v2234_v0  ;;  %1677 = vmatprep.mubr.msk.bf16.mxu1 %vm2235_vm0, %v2234_v0  ;;  %s2237_s28 = smov 96   ;;  %s2238_s8 = smov 80   ;;  %vm670_vm2 = vcmask 64512   ;;  %vm732_vm3 = vcmask 1043456   ;;  %vm779_vm4 = vcmask 60416   ;;  %vm898_vm5 = vcmask 126016  }
  0xfd   : > { %1668 = vmatpush3.bf16.msra.mxu0 %v1882_v1  ;;  %s2239_s25 = smov 88   ;;  %s2240_s21 = smov 72   ;;  %vm1017_vm6 = vcmask 191616   ;;  %vm1136_vm7 = vcmask 257216   ;;  %vm1416_vm12 = vcmask 257024  }
  0xfe   : > { %1669 = vmatprep.subr.bf16.mxu0 %v2234_v0  ;;  %s2241_s13 = smov 112   ;;  %s2242_s22 = smov 104  }
  0xff   : > { %p586_p12 = scmp.lt.s32.totalorder %s2347_s19, 1  ;;  %s2834_s1 = sld [smem:[#allocation25_spill]] }
 0x100   : > { %s2835_s12 = sld [smem:[#allocation28_spill]]  ;;  %s2837_s10 = sld [smem:[#allocation30_spill]] }
 0x101   : > { %1670 = vmatpush3.bf16.msra.mxu0 %v1883_v2  ;;  %s587_s14 = scalar_select %p586_p12, %s2347_s19, 1 }
 0x102   : > { %1681 = vmatprep.subr.bf16.mxu0 %v2234_v0  ;;  %s2840_s2 = sld [smem:[#allocation33_spill]]  ;;  %p2841_p1 = scmp.ne.s32.totalorder %s2821_s27, 0 }
 0x104   : > { %1672 = vmatmul.mubr.msk.bf16.vlgmr.msra.gmra.mrb[0].mxu0 %vm615_vm1, %v2624_v3 }
 0x105   : > { %1683 = vmatprep.mubr.msk.bf16.mxu0 %vm2235_vm0, %v2234_v0  ;;  %s588_s17 = scalar_lea.vmem %s2834_s1, %s587_s14  ;;  %s585_s14 = scalar_lea.vmem [#allocation17], %s1591_s26 }
 0x106   : > { %v1604_v22 = vld [vmem:[%s588_s17] ss:$0 sm:$0xff]  ;;  %s1419_s17 = scalar_lea.sflag [#allocation5], %s2591_s18 }
 0x1d7   : > { %v653_v5 = vpop.f32.mrb[0].mxu0 }
 0x1d8   : > { %v654_v6 = vadd.f32 %v1600_v4, %v653_v5  ;;  %v1673_v7 = vpop.f32.mrb[1].mxu0 }
 0x1d9   : > { %v656_v8 = vpop.f32.mrb[2].mxu0 }
 0x1da   : > { %v2631_v9 = vpack.c.bf16 %v654_v6, %v654_v6  ;;  %v1674_v10 = vpop.f32.mrb[3].mxu0 }
 0x1dc   : > { %781 = vrot.lane.b32.xlu1 %v2631_v9, %s2236_s20  ;;  %668 = vrot.lane.b32.xlu0 %v2631_v9, %s2237_s28  ;;  %s2243_s20 = smov 56   ;;  %s2244_s28 = smov 64  }
 0x1e0   : > { %902 = vrot.lane.b32.xlu1 %v2631_v9, %s2238_s8  ;;  %783 = vrot.lane.b32.xlu0 %v2631_v9, %s2239_s25  ;;  %s2245_s8 = smov 40   ;;  %s2246_s25 = smov 48  }
 0x1e4   : > { %1021 = vrot.lane.b32.xlu1 %v2631_v9, %s2240_s21  ;;  %900 = vrot.lane.b32.xlu0 %v2631_v9, %s2241_s13  ;;  %s2247_s21 = smov 8   ;;  %s2248_s13 = smov 16  }
 0x1e8   : > { %1019 = vrot.lane.b32.xlu0 %v2631_v9, %s2242_s22  ;;  %s2249_s22 = smov 24  }
 0x24e   : > { %v669_v11 = vpop.permute.xlu0 %668  ;;  %v782_v14 = vpop.permute.xlu1 %781 }
 0x24f   : > { %v675_v12 = vsel %vm670_vm2, %v669_v11, 0 }
 0x250   : > { %1676 = vmatpush3.bf16.xpose.msra.mxu1 %v675_v12 }
 0x251   : > { %1687 = vmatprep.subr.bf16.mxu1 %v2234_v0 }
 0x252   : > { %v784_v13 = vpop.permute.xlu0 %783  ;;  %v903_v16 = vpop.permute.xlu1 %902 }
 0x253   : > { %v789_v15 = vsel %vm670_vm2, %v784_v13, 0  ;;  %v908_v17 = vsel %vm670_vm2, %v903_v16, 0 }
 0x256   : > { %v1022_v18 = vpop.permute.xlu1 %1021  ;;  %v901_v19 = vpop.permute.xlu0 %900 }
 0x257   : > { %1678 = vmatmul.mubr.msk.bf16.vlgmr.msra.gmra.mrb[0].mxu1 %vm670_vm2, %v2631_v9  ;;  %v1027_v20 = vsel %vm670_vm2, %v1022_v18, 0 }
 0x258   : > { %1688 = vmatpush3.bf16.xpose.msra.mxu1 %v789_v15  ;;  %1689 = vmatprep.mubr.msk.bf16.mxu1 %vm2235_vm0, %v2234_v0 }
 0x259   : > { %1699 = vmatprep.subr.bf16.mxu1 %v2234_v0 }
 0x25a   : > { %v1020_v21 = vpop.permute.xlu0 %1019 }
 0x25f   : > { %1690 = vmatmul.mubr.msk.bf16.vlgmr.msra.gmra.mrb[4].mxu1 %vm670_vm2, %v782_v14 }
 0x260   : > { %1700 = vmatpush3.bf16.xpose.msra.mxu1 %v908_v17  ;;  %1701 = vmatprep.mubr.msk.bf16.mxu1 %vm2235_vm0, %v2234_v0 }
 0x261   : > { %1711 = vmatprep.subr.bf16.mxu1 %v2234_v0 }
 0x267   : > { %1702 = vmatmul.mubr.msk.bf16.vlgmr.msra.gmra.mrb[8].mxu1 %vm670_vm2, %v901_v19 }
 0x268   : > { %1712 = vmatpush3.bf16.xpose.msra.mxu1 %v1027_v20  ;;  %1713 = vmatprep.mubr.msk.bf16.mxu1 %vm2235_vm0, %v2234_v0 }
 0x269   : > { %1723 = vmatprep.subr.bf16.mxu1 %v2234_v0 }
 0x26f   : > { %1714 = vmatmul.mubr.msk.bf16.vlgmr.msra.gmra.mrb[12].mxu1 %vm670_vm2, %v1020_v21 }
 0x270   : > { %1727 = vmatprep.mubr.msk.bf16.mxu1 %vm2235_vm0, %v2234_v0 }
 0x32a   : > { %v711_v23 = vpop.f32.mrb[0].mxu1 }
 0x32b   : > { %v712_v24 = vadd.f32 %v1604_v22, %v711_v23  ;;  %v1679_v25 = vpop.f32.mrb[1].mxu1 }
 0x32c   : > { %v714_v26 = vpop.f32.mrb[2].mxu1 }
 0x32d   : > { %v1680_v27 = vpop.f32.mrb[3].mxu1  ;;  %v717_v28 = vsel %vm670_vm2, %v712_v24, -inf }
 0x32e   : > { %718 = vmax.xlane.f32.xlu1 %v717_v28 }
 0x332   : > { %v825_v29 = vpop.f32.mrb[4].mxu1 }
 0x333   : > { %v826_v30 = vadd.f32 %v1604_v22, %v825_v29  ;;  %v1691_v31 = vpop.f32.mrb[5].mxu1 }
 0x334   : > { %v828_v32 = vpop.f32.mrb[6].mxu1 }
 0x335   : > { %v1692_v33 = vpop.f32.mrb[7].mxu1  ;;  %v831_v34 = vsel %vm670_vm2, %v826_v30, -inf }
 0x336   : > { %832 = vmax.xlane.f32.xlu0 %v831_v34 }
 0x33a   : > { %v944_v35 = vpop.f32.mrb[8].mxu1 }
 0x33b   : > { %v945_v36 = vadd.f32 %v1604_v22, %v944_v35  ;;  %v1703_v37 = vpop.f32.mrb[9].mxu1 }
 0x33c   : > { %v947_v38 = vpop.f32.mrb[10].mxu1  ;;  %v1884_v37 = vld [vmem:[#allocation9] sm:$0xff]  }
 0x33d   : > { %v1704_v39 = vpop.f32.mrb[11].mxu1  ;;  %v950_v40 = vsel %vm670_vm2, %v945_v36, -inf  ;;  %1724 = vmatpush3.bf16.msra.mxu1 %v1884_v37 }
 0x33e   : > { %951 = vmax.xlane.f32.xlu0 %v950_v40  ;;  %1725 = vmatprep.subr.bf16.mxu1 %v2234_v0 }
 0x33f   : > { %841 = vrot.lane.b32.xlu1 %v2631_v9, %s2243_s20 }
 0x342   : > { %v1063_v41 = vpop.f32.mrb[12].mxu1 }
 0x343   : > { %v1715_v42 = vpop.f32.mrb[13].mxu1  ;;  %v1064_v45 = vadd.f32 %v1604_v22, %v1063_v41  ;;  %v1885_v41 = vld [vmem:[#allocation9 + $0x8] sm:$0xff]  }
 0x344   : > { %v1066_v43 = vpop.f32.mrb[14].mxu1  ;;  %1726 = vmatpush3.bf16.msra.mxu1 %v1885_v41 }
 0x345   : > { %v1716_v44 = vpop.f32.mrb[15].mxu1  ;;  %v1069_v46 = vsel %vm670_vm2, %v1064_v45, -inf  ;;  %1739 = vmatprep.subr.bf16.mxu1 %v2234_v0 }
 0x354   : > { %727 = vrot.lane.b32.xlu0 %v2631_v9, %s2244_s28  ;;  %s2838_s28 = sld [smem:[#allocation31_spill]] }
 0x358   : > { %1079 = vrot.lane.b32.xlu0 %v2631_v9, %s2245_s8 }
 0x363   : > { %1070 = vmax.xlane.f32.xlu1 %v1069_v46 }
 0x374   : > { %960 = vrot.lane.b32.xlu1 %v2631_v9, %s2246_s25  ;;  %s2836_s25 = sld [smem:[#allocation29_spill]] }
 0x3bb   : > { %v719_v47 = vpop.xlane.xlu1 %718 }
 0x3bc   : > { %v720_v48 = vsub.f32 %v712_v24, %v719_v47 }
 0x3be   : > { %v721_v49 = vmul.f32 1.442695, %v720_v48 }
 0x3bf   : > { %v842_v59 = vpop.permute.xlu1 %841 }
 0x3c0   : > { %1890 = vpow2.f32 %v721_v49  ;;  %v847_v63 = vsel %vm732_vm3, %v842_v59, 0 }
 0x3c3   : > { %v833_v50 = vpop.xlane.xlu0 %832 }
 0x3c4   : > { %v834_v51 = vsub.f32 %v826_v30, %v833_v50 }
 0x3c6   : > { %v835_v52 = vmul.f32 1.442695, %v834_v51 }
 0x3c8   : > { %1892 = vpow2.f32 %v835_v52 }
 0x3ca   : > { %v1891_v56 = vpop.eup %1890 }
 0x3cb   : > { %v952_v53 = vpop.xlane.xlu0 %951  ;;  %v726_v61 = vpack.c.bf16 %v1891_v56, %v1891_v56  ;;  %v723_v1 = vsel %vm670_vm2, %v1891_v56, 0.0  ;;  %v591_v56 = vunpack.c.l.bf16 %v2624_v3  ;;  %v1886_v3 = vld [vmem:[%s2835_s12] sm:$0xff]  }
 0x3cc   : > { %v953_v54 = vsub.f32 %v945_v36, %v952_v53 }
 0x3ce   : > { %v954_v55 = vmul.f32 1.442695, %v953_v54 }
 0x3cf   : > { %v728_v57 = vpop.permute.xlu0 %727 }
 0x3d0   : > { %1894 = vpow2.f32 %v954_v55  ;;  %v734_v58 = vsel %vm732_vm3, %v728_v57, 0  ;;  %v1616_v55 = vld [vmem:[#allocation11] ss:$0 sm:$0xff] }
 0x3d1   : > { %1682 = vmatpush3.bf16.msra.mxu0 %v734_v58 }
 0x3d2   : > { %v1893_v60 = vpop.eup %1892  ;;  %1693 = vmatprep.subr.bf16.mxu0 %v2234_v0 }
 0x3d3   : > { %v837_v62 = vsel %vm670_vm2, %v1893_v60, 0.0  ;;  %v840_v4 = vpack.c.bf16 %v1893_v60, %v1893_v60  ;;  %v1080_v11 = vpop.permute.xlu0 %1079 }
 0x3d4   : > { %838 = vadd.xlane.f32.xlu1 %v837_v62  ;;  %1684 = vmatmul.mubr.msk.bf16.vlgmr.msra.gmra.mrb[4].mxu0 %vm670_vm2, %v726_v61  ;;  %v1085_v13 = vsel %vm732_vm3, %v1080_v11, 0 }
 0x3d5   : > { %1694 = vmatpush3.bf16.msra.mxu0 %v847_v63  ;;  %1695 = vmatprep.mubr.msk.bf16.mxu0 %vm2235_vm0, %v2234_v0 }
 0x3d6   : > { %1705 = vmatprep.subr.bf16.mxu0 %v2234_v0 }
 0x3d8   : > { %724 = vadd.xlane.f32.xlu1 %v723_v1 }
 0x3da   : > { %v1895_v2 = vpop.eup %1894 }
 0x3db   : > { %v956_v5 = vsel %vm670_vm2, %v1895_v2, 0.0  ;;  %v959_v12 = vpack.c.bf16 %v1895_v2, %v1895_v2 }
 0x3dc   : > { %957 = vadd.xlane.f32.xlu0 %v956_v5  ;;  %1696 = vmatmul.mubr.msk.bf16.vlgmr.msra.gmra.mrb[8].mxu0 %vm670_vm2, %v840_v4 }
 0x3dd   : > { %1707 = vmatprep.mubr.msk.bf16.mxu0 %vm2235_vm0, %v2234_v0 }
 0x3f0   : > { %v1071_v6 = vpop.xlane.xlu1 %1070 }
 0x3f1   : > { %v1072_v7 = vsub.f32 %v1064_v45, %v1071_v6 }
 0x3f3   : > { %v1073_v8 = vmul.f32 1.442695, %v1072_v7  ;;  %v1887_v7 = vld [vmem:[%s2835_s12 + $0x8] sm:$0xff]  }
 0x3f4   : > { %v961_v9 = vpop.permute.xlu1 %960 }
 0x3f5   : > { %1896 = vpow2.f32 %v1073_v8  ;;  %v966_v10 = vsel %vm732_vm3, %v961_v9, 0 }
 0x3f6   : > { %1706 = vmatpush3.bf16.msra.mxu0 %v966_v10 }
 0x3f7   : > { %1717 = vmatprep.subr.bf16.mxu0 %v2234_v0 }
 0x3f9   : > { %1708 = vmatmul.mubr.msk.bf16.vlgmr.msra.gmra.mrb[12].mxu0 %vm670_vm2, %v959_v12 }
 0x3fa   : > { %1718 = vmatpush3.bf16.msra.mxu0 %v1085_v13  ;;  %1719 = vmatprep.mubr.msk.bf16.mxu0 %vm2235_vm0, %v2234_v0 }
 0x3fb   : > { %1731 = vmatprep.subr.bf16.mxu0 %v2234_v0 }
 0x3ff   : > { %v1897_v14 = vpop.eup %1896 }
 0x400   : > { %v1075_v15 = vsel %vm670_vm2, %v1897_v14, 0.0  ;;  %v1078_v16 = vpack.c.bf16 %v1897_v14, %v1897_v14 }
 0x401   : > { %1076 = vadd.xlane.f32.xlu0 %v1075_v15 }
 0x402   : > { %1720 = vmatmul.mubr.msk.bf16.vlgmr.msra.gmra.mrb[16].mxu0 %vm670_vm2, %v1078_v16 }
 0x403   : > { %1735 = vmatprep.mubr.msk.bf16.mxu0 %vm2235_vm0, %v2234_v0  ;;  %1732 = vmatpush3.bf16.msra.mxu0 %v1886_v3 }
 0x404   : > { %1733 = vmatprep.subr.bf16.mxu0 %v2234_v0 }
 0x407   : > { %1734 = vmatpush3.bf16.msra.mxu0 %v1887_v7 }
 0x461   : > { %v839_v17 = vpop.xlane.xlu1 %838 }
 0x465   : > { %v725_v18 = vpop.xlane.xlu1 %724 }
 0x466   : > { %1898 = vrcp.f32 %v725_v18 }
 0x467   : > { %1900 = vrcp.f32 %v839_v17  ;;  %v1620_v17 = vld [vmem:[#allocation12] ss:$0 sm:$0xff] }
 0x469   : > { %v958_v33 = vpop.xlane.xlu0 %957 }
 0x46a   : > { %1902 = vrcp.f32 %v958_v33  ;;  %v1626_v33 = vld [vmem:[%s2837_s10] ss:$0 sm:$0xff]  ;;  %s1432_s10 = sshll.u32 %s585_s14, 4  ;;  %s2741_s10 = int_to_ptr.vmem [resolvable:$true] %s1432_s10 }
 0x46b   : > { %s2140_s20 = scalar_lea.vmem %s2741_s10, 64 }
 0x46c   : > { %p2141_p13 = scmp.ne.s32.totalorder %s2741_s10, %s2140_s20 }
 0x46e   : > { %p2142_p3 = pnand %p2141_p13, %p2841_p1 }
 0x470   : > { %v1899_v19 = vpop.eup %1898  ;;  %p2143_p2 = pneg %p2142_p3 }
 0x471   : > { %v1901_v26 = vpop.eup %1900 }
 0x474   : > { %v1903_v35 = vpop.eup %1902 }
 0x48e   : > { %v1077_v34 = vpop.xlane.xlu0 %1076 }
 0x48f   : > { %1904 = vrcp.f32 %v1077_v34 }
 0x499   : > { %v1905_v44 = vpop.eup %1904 }
 0x4a7   : > { %v770_v20 = vpop.f32.mrb[4].mxu0 }
 0x4a8   : > { %v777_v21 = vmul.f32 %v1899_v19, %v770_v20  ;;  %v1685_v22 = vpop.f32.mrb[5].mxu0  ;;  %v1621_v19 = vld [vmem:[#allocation14] ss:$0 sm:$0xff] }
 0x4a9   : > { %v773_v23 = vpop.f32.mrb[6].mxu0 }
 0x4aa   : > { %v778_v24 = vpack.c.bf16 %v777_v21, %v777_v21  ;;  %v1686_v25 = vpop.f32.mrb[7].mxu0  ;;  %v1888_v23 = vld [vmem:[%s2836_s25] sm:$0xff]  }
 0x4ab   : > { %v1622_v25 = vld [vmem:[#allocation15] ss:$0 sm:$0xff] }
 0x4ac   : > { %780 = vst.msk [vmem:[#allocation2] sm:$0xf] %vm779_vm4, %v778_v24  ;;  %v1889_v24 = vld [vmem:[%s2836_s25 + $0x8] sm:$0xff]  }
 0x4af   : > { %v883_v27 = vpop.f32.mrb[8].mxu0 }
 0x4b0   : > { %v890_v28 = vmul.f32 %v1901_v26, %v883_v27  ;;  %v1697_v29 = vpop.f32.mrb[9].mxu0 }
 0x4b1   : > { %v886_v30 = vpop.f32.mrb[10].mxu0 }
 0x4b2   : > { %v1636_v31 = vpack.c.bf16 %v890_v28, %v890_v28  ;;  %v1698_v32 = vpop.f32.mrb[11].mxu0 }
 0x4b4   : > { %895 = vrot.lane.b32.xlu0 %v1636_v31, %s2247_s21 }
 0x4cc   : > { %v1002_v36 = vpop.f32.mrb[12].mxu0 }
 0x4cd   : > { %v1009_v38 = vmul.f32 %v1903_v35, %v1002_v36  ;;  %v1709_v39 = vpop.f32.mrb[13].mxu0 }
 0x4ce   : > { %v1005_v40 = vpop.f32.mrb[14].mxu0 }
 0x4cf   : > { %v1637_v42 = vpack.c.bf16 %v1009_v38, %v1009_v38  ;;  %v1710_v43 = vpop.f32.mrb[15].mxu0 }
 0x4d1   : > { %1014 = vrot.lane.b32.xlu1 %v1637_v42, %s2248_s13  ;;  %s2839_s13 = sld [smem:[#allocation32_spill]] }
 0x4d5   : > { %v1121_v45 = vpop.f32.mrb[16].mxu0 }
 0x4d6   : > { %v1128_v46 = vmul.f32 %v1905_v44, %v1121_v45  ;;  %v1721_v47 = vpop.f32.mrb[17].mxu0 }
 0x4d7   : > { %v1124_v48 = vpop.f32.mrb[18].mxu0 }
 0x4d8   : > { %v1638_v49 = vpack.c.bf16 %v1128_v46, %v1128_v46  ;;  %v1722_v50 = vpop.f32.mrb[19].mxu0 }
 0x4da   : > { %1133 = vrot.lane.b32.xlu1 %v1638_v49, %s2249_s22  ;;  %s1633_s22 = sshll.u32 %s2347_s19, 6  ;;  %s2250_s19 = smov [#allocation17]  }
 0x4db   : > { %s2739_s3 = scalar_lea.hbm %s2840_s2, %s1633_s22  ;;  %s2144_s26 = sshll.u32 %s2250_s19, 4  ;;  %s2145_s26 = int_to_ptr.vmem [resolvable:$false] %s2144_s26 }
 0x4dc   : > { %p2147_p0 = scmp.lt.s32.totalorder %s2741_s10, %s2145_s26 }
 0x526   : > { %v896_v51 = vpop.permute.xlu0 %895 }
 0x527   : > { %899 = vst.msk [vmem:[#allocation2] sm:$0xf] %vm898_vm5, %v896_v51 }
 0x543   : > { %v1015_v52 = vpop.permute.xlu1 %1014 }
 0x544   : > { %1018 = vst.msk [vmem:[#allocation2] sm:$0xf] %vm1017_vm6, %v1015_v52 }
 0x54c   : > { %v1134_v53 = vpop.permute.xlu1 %1133 }
 0x54d   : > { %1137 = vst.msk [vmem:[#allocation2] sm:$0xf] %vm1136_vm7, %v1134_v53 }
 0x554   : > { %v1138_v54 = vld [vmem:[#allocation2] sm:$0xf] }
 0x555   : > { %1728 = vmatmul.mubr.msk.bf16.vlgmr.msra.gmra.mrb[16].mxu1 %vm615_vm1, %v1138_v54  ;;  %v1630_v54 = vld [vmem:[%s2838_s28] ss:$0 sm:$0xff]  ;;  %s2146_s28 = scalar_lea.vmem %s2145_s26, 128 }
 0x556   : > { %1743 = vmatprep.mubr.msk.bf16.mxu1 %vm2235_vm0, %v2234_v0  ;;  %1740 = vmatpush3.bf16.msra.mxu1 %v1888_v23  ;;  %p2148_p6 = scmp.lt.s32.totalorder %s2146_s28, %s2140_s20 }
 0x557   : > { %1741 = vmatprep.subr.bf16.mxu1 %v2234_v0 }
 0x558   : > { %p2149_p10 = por %p2148_p6, %p2147_p0 }
 0x55a   : > { %1742 = vmatpush3.bf16.msra.mxu1 %v1889_v24  ;;  %p2150_p11 = pnand %p2149_p10, %p2143_p2 }
 0x628   : > { %v1199_v57 = vpop.f32.mrb[16].mxu1 }
 0x629   : > { %v1200_v58 = vadd.f32 %v1616_v55, %v1199_v57  ;;  %v1729_v59 = vpop.f32.mrb[17].mxu1 }
 0x62a   : > { %v1202_v60 = vpop.f32.mrb[18].mxu1 }
 0x62b   : > { %v1730_v61 = vpop.f32.mrb[19].mxu1  ;;  %v1205_v62 = vadd.f32 %v1200_v58, %v591_v56  ;;  %v1631_v56 = vld [vmem:[%s2839_s13] ss:$0 sm:$0xff] }
 0x62d   : > { %v1208_v63 = vsel %vm615_vm1, %v1205_v62, 0.0 }
 0x62e   : > { %1209 = vadd.xlane.f32.xlu0 %v1208_v63 }
 0x6bb   : > { %v1210_v1 = vpop.xlane.xlu0 %1209 }
 0x6bc   : > { %v1212_v2 = vmul.f32 0.03125, %v1210_v1 }
 0x6be   : > { %v1213_v4 = vsub.f32 %v1205_v62, %v1212_v2 }
 0x6c0   : > { %v1214_v5 = vmul.f32 %v1213_v4, %v1213_v4 }
 0x6c2   : > { %v1215_v6 = vsel %vm615_vm1, %v1214_v5, 0.0 }
 0x6c3   : > { %1216 = vadd.xlane.f32.xlu1 %v1215_v6 }
 0x750   : > { %v1217_v8 = vpop.xlane.xlu1 %1216 }
 0x751   : > { %v1218_v9 = vmul.f32 0.032258064, %v1217_v8 }
 0x753   : > { %1906 = vrsqrt.f32 %v1218_v9  ;;  %vm1221_vm8 = vcmp.eq.f32.partialorder %v1218_v9, inf  ;;  %v1224_v12 = vand.u32 2147483648, %v1218_v9  ;;  %vm1223_vm9 = vcmp.eq.f32.partialorder %v1218_v9, 0.0 }
 0x75d   : > { %v1907_v10 = vpop.eup %1906 }
 0x75e   : > { %v1220_v11 = vmul.f32 %v1907_v10, %v1218_v9 }
 0x760   : > { %v1222_v13 = vsel %vm1221_vm8, %v1218_v9, %v1220_v11 }
 0x761   : > { %v1225_v14 = vsel %vm1223_vm9, %v1224_v12, %v1222_v13 }
 0x762   : > { %v1226_v15 = vadd.f32 1e-06, %v1225_v14 }
 0x764   : > { %1908 = vrcp.f32 %v1226_v15 }
 0x76e   : > { %v1909_v16 = vpop.eup %1908 }
 0x76f   : > { %v1228_v18 = vmul.f32 %v1909_v16, %v1213_v4 }
 0x771   : > { %v1235_v20 = vmul.f32 %v1620_v17, %v1228_v18 }
 0x773   : > { %v1242_v21 = vadd.f32 %v1621_v19, %v1235_v20 }
 0x775   : > { %v1243_v22 = vpack.c.bf16 %v1242_v21, %v1242_v21 }
 0x777   : > { %1736 = vmatmul.mubr.msk.bf16.vlgmr.msra.gmra.mrb[20].mxu0 %vm615_vm1, %v1243_v22 }
 0x84a   : > { %v1304_v26 = vpop.f32.mrb[20].mxu0 }
 0x84b   : > { %v1305_v27 = vadd.f32 %v1622_v25, %v1304_v26  ;;  %v1737_v28 = vpop.f32.mrb[21].mxu0 }
 0x84c   : > { %v1307_v29 = vpop.f32.mrb[22].mxu0 }
 0x84d   : > { %v1310_v30 = vmax.f32 %v1305_v27, 0.0  ;;  %v1738_v31 = vpop.f32.mrb[23].mxu0 }
 0x84f   : > { %v1311_v32 = vpack.c.bf16 %v1310_v30, %v1310_v30 }
 0x851   : > { %1744 = vmatmul.mubr.msk.bf16.vlgmr.msra.gmra.mrb[20].mxu1 %vm615_vm1, %v1311_v32 }
 0x924   : > { %v1372_v0 = vpop.f32.mrb[20].mxu1 }
 0x925   : > { %v1373_v34 = vadd.f32 %v1626_v33, %v1372_v0  ;;  %v1745_v35 = vpop.f32.mrb[21].mxu1 }
 0x926   : > { %v1375_v36 = vpop.f32.mrb[22].mxu1 }
 0x927   : > { %v1746_v37 = vpop.f32.mrb[23].mxu1  ;;  %v1378_v38 = vadd.f32 %v1373_v34, %v1242_v21 }
 0x929   : > { %v1381_v39 = vsel %vm615_vm1, %v1378_v38, 0.0 }
 0x92a   : > { %1382 = vadd.xlane.f32.xlu0 %v1381_v39 }
 0x9b7   : > { %v1383_v40 = vpop.xlane.xlu0 %1382 }
 0x9b8   : > { %v1384_v41 = vmul.f32 0.03125, %v1383_v40 }
 0x9ba   : > { %v1385_v42 = vsub.f32 %v1378_v38, %v1384_v41 }
 0x9bc   : > { %v1386_v43 = vmul.f32 %v1385_v42, %v1385_v42 }
 0x9be   : > { %v1387_v44 = vsel %vm615_vm1, %v1386_v43, 0.0 }
 0x9bf   : > { %1388 = vadd.xlane.f32.xlu0 %v1387_v44 }
 0xa4c   : > { %v1389_v45 = vpop.xlane.xlu0 %1388 }
 0xa4d   : > { %v1390_v46 = vmul.f32 0.032258064, %v1389_v45 }
 0xa4f   : > { %1910 = vrsqrt.f32 %v1390_v46  ;;  %vm1393_vm10 = vcmp.eq.f32.partialorder %v1390_v46, inf  ;;  %v1396_v49 = vand.u32 2147483648, %v1390_v46  ;;  %vm1395_vm11 = vcmp.eq.f32.partialorder %v1390_v46, 0.0 }
 0xa59   : > { %v1911_v47 = vpop.eup %1910 }
 0xa5a   : > { %v1392_v48 = vmul.f32 %v1911_v47, %v1390_v46 }
 0xa5c   : > { %v1394_v50 = vsel %vm1393_vm10, %v1390_v46, %v1392_v48 }
 0xa5d   : > { %v1397_v51 = vsel %vm1395_vm11, %v1396_v49, %v1394_v50 }
 0xa5e   : > { %v1398_v52 = vadd.f32 1e-06, %v1397_v51 }
 0xa60   : > { %1912 = vrcp.f32 %v1398_v52 }
 0xa6a   : > { %v1913_v53 = vpop.eup %1912 }
 0xa6b   : > { %v1400_v55 = vmul.f32 %v1913_v53, %v1385_v42 }
 0xa6d   : > { %v1407_v57 = vmul.f32 %v1630_v54, %v1400_v55 }
 0xa6f   : > { %v1414_v58 = vadd.f32 %v1631_v56, %v1407_v57 }
 0xa71   : > { %v1415_v59 = vpack.c.bf16 %v1414_v58, %v1414_v58 }
 0xa73   : > { %1417 = vst.msk [vmem:[%s585_s14] sm:$0xf] %vm1416_vm12, %v1415_v59 }
 0xa74   : > { %2153 = shalt.err (!%p2150_p11)
}
 0xa75   : > { %s2154_s0 = scalar_lea.hbm %s2739_s3, 64  ;;  %s2158_s8 = scalar_lea.hbm %s2840_s2, 128 }
 0xa76   : > { %p2155_p8 = scmp.ne.s32.totalorder %s2739_s3, %s2154_s0  ;;  %p2159_p7 = scmp.lt.u32.totalorder %s2739_s3, %s2840_s2 }
 0xa77   : > { %p2160_p4 = scmp.lt.u32.totalorder %s2158_s8, %s2154_s0  ;;  %p2162_p13 = scmp.lt.u32.totalorder %s2154_s0, %s2739_s3 }
 0xa78   : > { %p2156_p5 = pnand %p2155_p8, %p2841_p1 }
 0xa79   : > { %p2161_p12 = por %p2160_p4, %p2159_p7 }
 0xa7a   : > { %p2157_p9 = pneg %p2156_p5 }
 0xa7b   : > { %p2163_p3 = por %p2162_p13, %p2161_p12 }
 0xa7d   : > { %p2164_p2 = pnand %p2163_p3, %p2157_p9 }
 0xa7f   : > { %2167 = shalt.err (!%p2164_p2)
}
 0xa80   : > { %1777 = dma.vmem_to_hbm [thread:$0]  (%p2841_p1), %s2741_s10, 64, %s2739_s3, %s1419_s17  }
 0xa81 PF: > { %s1444_s22 = sand.u32 1, %s2210_s29   ;;  %p2842_p0 = scmp.ne.s32.totalorder %s2822_s24, 0 }
 0xa82   : > { %p2843_p6 = scmp.ge.s32.totalorder %s2222_s16, 2  ;;  %s1445_s14 = scalar_lea.sflag [#allocation5], %s1444_s22 }
 0xa84   : > { %p1806_p10 = pnand %p2843_p6, %p2842_p0 }
 0xa86   : > { %2205 = dma.done.wait (!%p1806_p10), %s1445_s14, 64  }
 0xa87   : > { %2207 = vsyncadd (!%p1806_p10), %s1445_s14, 4294967232  ;;  %p31_p11 = scmp.ge.s32.totalorder %s2521_s23, 4   ;;  %s2844_s29 = smov %s2214_s30 }
 0xa88   : > { %s2845_s30 = smov %s2218_s15  ;;  %s2846_s15 = smov %s2533_s11 }
 0xa89   : > { %s2847_s16 = smov %s2521_s23  ;;  %33 = sbr.rel (!%p31_p11) target bundleno = 20 (0x14), region = 152 }
 0xa90   :  { %1450 = vsyncpa [#allocation4], 1 }
 0xa91   :  { %1452 = vsyncpa [#allocation4 + $0x1], 1 }
 0xa92   :  { %1453 = vsyncpa [#allocation7], 1 }
 0xa93   :  { %1454 = vsyncpa [#allocation10], 1 }
 0xa94   :  { %1455 = vsyncpa [#allocation13], 1 }
 0xa95   :  { %1456 = vsyncpa [#allocation16], 1 }
 0xa96   :  { %1457 = vsyncpa [#allocation5], 1 }
 0xa97   :  { %1459 = vsyncpa [#allocation5 + $0x1], 1 }

</bundles_post_ra>
